<compile_context>
chip_gen: v5e
topology: v5e:2x2
jax: 0.10.0
libtpu: 0.0.40
codegen_flags: <defaults>
</compile_context>

<pallas_src>
import functools

import jax
import jax.numpy as jnp
from jax.experimental import pallas as pl
from jax.experimental.pallas import tpu as pltpu


IN_FEATURES = 28 * 28      # 784
HIDDEN = 200
HIDDEN_PAD = 256           # lane-padded hidden width
CLASSES_PAD = 128          # lane-padded logits width
TILE_N = 256               # batch tile (sublane-friendly, fits all VMEM budgets)


# ----------------------------------------------------------------------------- kernel
def _uber_mlp_kernel(x_ref, w1_ref, b1_ref, w2_ref, b2_ref, w3_ref, b3_ref, o_ref):
    """One batch tile of the fused (PCA-folded) MLP.

    x_ref : (TILE_N, 784)        f32   (cast to bf16 in VMEM)
    w*_ref: (in, out)            bf16  PCA-folded, zero-padded weights
    b*_ref: (1, out)             f32   PCA-folded, zero-padded biases
    o_ref : (TILE_N, 128)        f32   padded logits
    """
    f32 = jnp.float32
    bf16 = jnp.bfloat16

    x = x_ref[...].astype(bf16)                                    # cast in VMEM

    # Linear(784, 200) + folded PCA, then ReLU
    h = jnp.dot(x, w1_ref[...], preferred_element_type=f32) + b1_ref[...]
    h = jnp.maximum(h, 0.0)

    # Linear(200, 200) + folded PCA, then ReLU
    h = jnp.dot(h.astype(bf16), w2_ref[...], preferred_element_type=f32) + b2_ref[...]
    h = jnp.maximum(h, 0.0)

    # Linear(200, 10) (padded to 128 lanes)
    o_ref[...] = jnp.dot(h.astype(bf16), w3_ref[...],
                         preferred_element_type=f32) + b3_ref[...]


# ----------------------------------------------------------------------------- wrapper
@functools.partial(jax.jit, static_argnames=("num_classes",))
def uber_forward(x, prepared, num_classes=10):
    """x: any array with 784 elements per sample (PyTorch does x.view(-1, 784))."""
    xf = x.reshape(-1, IN_FEATURES).astype(jnp.float32)            # reshape only; no bf16 pass
    n = xf.shape[0]
    grid = (pl.cdiv(n, TILE_N),)

    const = lambda i: (0, 0)                                       # weights stay resident
    in_specs = [
        pl.BlockSpec((TILE_N, IN_FEATURES), lambda i: (i, 0)),     # x tile
        pl.BlockSpec((IN_FEATURES, HIDDEN_PAD), const),            # w1'
        pl.BlockSpec((1, HIDDEN_PAD), const),                      # b1'
        pl.BlockSpec((HIDDEN_PAD, HIDDEN_PAD), const),             # w2'
        pl.BlockSpec((1, HIDDEN_PAD), const),                      # b2'
        pl.BlockSpec((HIDDEN_PAD, CLASSES_PAD), const),            # w3
        pl.BlockSpec((1, CLASSES_PAD), const),                     # b3
    ]
    out_specs = pl.BlockSpec((TILE_N, CLASSES_PAD), lambda i: (i, 0))

    out_pad = pl.pallas_call(
        _uber_mlp_kernel,
        out_shape=jax.ShapeDtypeStruct((n, CLASSES_PAD), jnp.float32),
        grid=grid,
        in_specs=in_specs,
        out_specs=out_specs,
        compiler_params=pltpu.CompilerParams(
            dimension_semantics=("parallel",),
            vmem_limit_bytes=32 * 1024 * 1024,
        ),
    )(xf, prepared["w1"], prepared["b1"], prepared["w2"], prepared["b2"],
      prepared["w3"], prepared["b3"])

    return out_pad[:, :num_classes]


# ----------------------------------------------------------------------------- params
def init_params(key, in_features=IN_FEATURES, hidden=HIDDEN, num_classes=10):
    """Mirrors PyTorch defaults: Linear = U(-1/sqrt(fan_in), 1/sqrt(fan_in));
    LinearPCALayer = fresh statistics (mean=0, projection=I). Weights are stored
    in (in, out) layout (transpose real PyTorch (out, in) checkpoints)."""
    ks = jax.random.split(key, 6)

    def linear_init(kw, kb, fi, fo):
        bound = 1.0 / (fi ** 0.5)
        w = jax.random.uniform(kw, (fi, fo), jnp.float32, -bound, bound)   # (in, out)
        b = jax.random.uniform(kb, (fo,), jnp.float32, -bound, bound)
        return w, b

    w1, b1 = linear_init(ks[0], ks[1], in_features, hidden)
    w2, b2 = linear_init(ks[2], ks[3], hidden, hidden)
    w3, b3 = linear_init(ks[4], ks[5], hidden, num_classes)

    # TODO(synk): LinearPCALayer running-covariance tracking and variance-threshold
    # eigendecomposition (train-mode statistics updates) are not implemented; the
    # eval-mode projection is parameterised as (x - mean) @ T + mean, which is the
    # identity for a freshly-initialised layer.
    eye = jnp.eye(hidden, dtype=jnp.float32)
    zeros = jnp.zeros((hidden,), jnp.float32)

    return dict(w1=w1, b1=b1, t1=eye, m1=zeros,
                w2=w2, b2=b2, t2=eye, m2=zeros,
                w3=w3, b3=b3)


def prepare_params(params, hidden=HIDDEN, num_classes=10):
    """One-time host-side constant fold: fuse PCA projections into the adjacent
    Linear layers (in f32), zero-pad to lane-friendly widths, cast weights to bf16."""
    f32 = jnp.float32

    def fold(w, b, t, m):
        # Linear then PCA-eval:  ((x @ w + b) - m) @ t + m  ==  x @ (w @ t) + ((b - m) @ t + m)
        return jnp.dot(w, t), jnp.dot(b - m, t) + m

    w1, b1 = fold(params["w1"].astype(f32), params["b1"].astype(f32),
                  params["t1"].astype(f32), params["m1"].astype(f32))
    w2, b2 = fold(params["w2"].astype(f32), params["b2"].astype(f32),
                  params["t2"].astype(f32), params["m2"].astype(f32))
    w3, b3 = params["w3"].astype(f32), params["b3"].astype(f32)

    def pad2(a, rows, cols):
        return jnp.pad(a, ((0, rows - a.shape[0]), (0, cols - a.shape[1])))

    def pad_bias(b, cols):
        return jnp.pad(b, (0, cols - b.shape[0])).reshape(1, cols)

    bf16 = jnp.bfloat16
    return dict(
        w1=pad2(w1, IN_FEATURES, HIDDEN_PAD).astype(bf16),
        b1=pad_bias(b1, HIDDEN_PAD),
        w2=pad2(w2, HIDDEN_PAD, HIDDEN_PAD).astype(bf16),
        b2=pad_bias(b2, HIDDEN_PAD),
        w3=pad2(w3, HIDDEN_PAD, CLASSES_PAD).astype(bf16),
        b3=pad_bias(b3, CLASSES_PAD),
    )


def reference_forward(x, params):
    """Pure-JAX f32 reference (fresh PCA stats => PCA layers are identity)."""
    xf = x.reshape(-1, IN_FEATURES).astype(jnp.float32)
    h = jnp.maximum(xf @ params["w1"] + params["b1"], 0.0)
    h = jnp.maximum(h @ params["w2"] + params["b2"], 0.0)
    return h @ params["w3"] + params["b3"]


# ----------------------------------------------------------------------------- main
if __name__ == "__main__":
    key = jax.random.PRNGKey(0)
    k_x, k_p = jax.random.split(key)

    N, H, W = 2, 28, 28           # module requires 28*28 = 784 features per sample
    NUM_CLASSES = 10

    x = jax.random.normal(k_x, (N, 1, H, W), jnp.float32)   # MNIST-style NCHW input
    params = init_params(k_p, in_features=H * W, hidden=HIDDEN, num_classes=NUM_CLASSES)
    prepared = prepare_params(params, hidden=HIDDEN, num_classes=NUM_CLASSES)

    out = jax.block_until_ready(uber_forward(x, prepared, num_classes=NUM_CLASSES))

    assert out.shape == (N, NUM_CLASSES), out.shape
    assert out.dtype == jnp.float32

    ref = reference_forward(x, params)
    assert jnp.allclose(out, ref, atol=1e-1, rtol=5e-2), (out, ref)

    print("KERNEL_OK")
</pallas_src>

<mosaic_0001>
module attributes {stable_mosaic.version = 11 : i64} {
  func.func @_uber_mlp_kernel(%arg0: i32, %arg1: memref<256x784xf32, #tpu.memory_space<vmem>>, %arg2: memref<784x256xbf16, #tpu.memory_space<vmem>>, %arg3: memref<1x256xf32, #tpu.memory_space<vmem>>, %arg4: memref<256x256xbf16, #tpu.memory_space<vmem>>, %arg5: memref<1x256xf32, #tpu.memory_space<vmem>>, %arg6: memref<256x128xbf16, #tpu.memory_space<vmem>>, %arg7: memref<1x128xf32, #tpu.memory_space<vmem>>, %arg8: memref<256x128xf32, #tpu.memory_space<vmem>>) attributes {dimension_semantics = [#tpu.dimension_semantics<parallel>], iteration_bounds = array<i64: 1>, scalar_prefetch = 0 : i64, scratch_operands = 0 : i64, tpu.core_type = #tpu.core_type<tc>, window_params = [{transform_indices = @transform_0, window_bounds = array<i64: 256, 784>}, {pipeline_mode = #tpu.pipeline_mode<synchronous>, transform_indices = @transform_1, window_bounds = array<i64: 784, 256>}, {pipeline_mode = #tpu.pipeline_mode<synchronous>, transform_indices = @transform_2, window_bounds = array<i64: 1, 256>}, {pipeline_mode = #tpu.pipeline_mode<synchronous>, transform_indices = @transform_3, window_bounds = array<i64: 256, 256>}, {pipeline_mode = #tpu.pipeline_mode<synchronous>, transform_indices = @transform_4, window_bounds = array<i64: 1, 256>}, {pipeline_mode = #tpu.pipeline_mode<synchronous>, transform_indices = @transform_5, window_bounds = array<i64: 256, 128>}, {pipeline_mode = #tpu.pipeline_mode<synchronous>, transform_indices = @transform_6, window_bounds = array<i64: 1, 128>}, {transform_indices = @transform_7, window_bounds = array<i64: 256, 128>}]} {
    %c0 = arith.constant 0 : index
    %c0_0 = arith.constant 0 : index
    %0 = vector.load %arg1[%c0, %c0_0] : memref<256x784xf32, #tpu.memory_space<vmem>>, vector<256x784xf32>
    %1 = arith.truncf %0 : vector<256x784xf32> to vector<256x784xbf16>
    %c0_1 = arith.constant 0 : index
    %c0_2 = arith.constant 0 : index
    %2 = vector.load %arg2[%c0_1, %c0_2] : memref<784x256xbf16, #tpu.memory_space<vmem>>, vector<784x256xbf16>
    %cst = arith.constant dense<0.000000e+00> : vector<256x256xf32>
    %3 = tpu.matmul %1, %2, %cst {dimension_numbers = #tpu.dot_dimension_numbers<[1], [0], [0], [1], [0, 0, 1, 1], [], []>} : vector<256x784xbf16>, vector<784x256xbf16>, vector<256x256xf32> -> vector<256x256xf32>
    %c0_3 = arith.constant 0 : index
    %c0_4 = arith.constant 0 : index
    %4 = vector.load %arg3[%c0_3, %c0_4] : memref<1x256xf32, #tpu.memory_space<vmem>>, vector<1x256xf32>
    %5 = vector.broadcast %4 : vector<1x256xf32> to vector<256x256xf32>
    %6 = arith.addf %3, %5 : vector<256x256xf32>
    %cst_5 = arith.constant 0.000000e+00 : f32
    %7 = vector.broadcast %cst_5 : f32 to vector<256x256xf32>
    %8 = arith.maximumf %6, %7 : vector<256x256xf32>
    %9 = arith.truncf %8 : vector<256x256xf32> to vector<256x256xbf16>
    %c0_6 = arith.constant 0 : index
    %c0_7 = arith.constant 0 : index
    %10 = vector.load %arg4[%c0_6, %c0_7] : memref<256x256xbf16, #tpu.memory_space<vmem>>, vector<256x256xbf16>
    %cst_8 = arith.constant dense<0.000000e+00> : vector<256x256xf32>
    %11 = tpu.matmul %9, %10, %cst_8 {dimension_numbers = #tpu.dot_dimension_numbers<[1], [0], [0], [1], [0, 0, 1, 1], [], []>} : vector<256x256xbf16>, vector<256x256xbf16>, vector<256x256xf32> -> vector<256x256xf32>
    %c0_9 = arith.constant 0 : index
    %c0_10 = arith.constant 0 : index
    %12 = vector.load %arg5[%c0_9, %c0_10] : memref<1x256xf32, #tpu.memory_space<vmem>>, vector<1x256xf32>
    %13 = vector.broadcast %12 : vector<1x256xf32> to vector<256x256xf32>
    %14 = arith.addf %11, %13 : vector<256x256xf32>
    %cst_11 = arith.constant 0.000000e+00 : f32
    %15 = vector.broadcast %cst_11 : f32 to vector<256x256xf32>
    %16 = arith.maximumf %14, %15 : vector<256x256xf32>
    %17 = arith.truncf %16 : vector<256x256xf32> to vector<256x256xbf16>
    %c0_12 = arith.constant 0 : index
    %c0_13 = arith.constant 0 : index
    %18 = vector.load %arg6[%c0_12, %c0_13] : memref<256x128xbf16, #tpu.memory_space<vmem>>, vector<256x128xbf16>
    %cst_14 = arith.constant dense<0.000000e+00> : vector<256x128xf32>
    %19 = tpu.matmul %17, %18, %cst_14 {dimension_numbers = #tpu.dot_dimension_numbers<[1], [0], [0], [1], [0, 0, 1, 1], [], []>} : vector<256x256xbf16>, vector<256x128xbf16>, vector<256x128xf32> -> vector<256x128xf32>
    %c0_15 = arith.constant 0 : index
    %c0_16 = arith.constant 0 : index
    %20 = vector.load %arg7[%c0_15, %c0_16] : memref<1x128xf32, #tpu.memory_space<vmem>>, vector<1x128xf32>
    %21 = vector.broadcast %20 : vector<1x128xf32> to vector<256x128xf32>
    %22 = arith.addf %19, %21 : vector<256x128xf32>
    %c0_17 = arith.constant 0 : index
    %c0_18 = arith.constant 0 : index
    %23 = vector.load %arg8[%c0_17, %c0_18] : memref<256x128xf32, #tpu.memory_space<vmem>>, vector<256x128xf32>
    tpu.vector_store %arg8[%c0_17, %c0_18], %22 {strides = array<i32>} : memref<256x128xf32, #tpu.memory_space<vmem>>, vector<256x128xf32>,
    return
  }
  func.func @transform_0(%arg0: i32) -> (i32, i32) {
    %c0_i32 = arith.constant 0 : i32
    %c0_i32_0 = arith.constant 0 : i32
    return %arg0, %c0_i32 : i32, i32
  }
  func.func @transform_1(%arg0: i32) -> (i32, i32) {
    %c0_i32 = arith.constant 0 : i32
    %c0_i32_0 = arith.constant 0 : i32
    %c0_i32_1 = arith.constant 0 : i32
    return %c0_i32, %c0_i32_0 : i32, i32
  }
  func.func @transform_2(%arg0: i32) -> (i32, i32) {
    %c0_i32 = arith.constant 0 : i32
    %c0_i32_0 = arith.constant 0 : i32
    %c0_i32_1 = arith.constant 0 : i32
    return %c0_i32, %c0_i32_0 : i32, i32
  }
  func.func @transform_3(%arg0: i32) -> (i32, i32) {
    %c0_i32 = arith.constant 0 : i32
    %c0_i32_0 = arith.constant 0 : i32
    %c0_i32_1 = arith.constant 0 : i32
    return %c0_i32, %c0_i32_0 : i32, i32
  }
  func.func @transform_4(%arg0: i32) -> (i32, i32) {
    %c0_i32 = arith.constant 0 : i32
    %c0_i32_0 = arith.constant 0 : i32
    %c0_i32_1 = arith.constant 0 : i32
    return %c0_i32, %c0_i32_0 : i32, i32
  }
  func.func @transform_5(%arg0: i32) -> (i32, i32) {
    %c0_i32 = arith.constant 0 : i32
    %c0_i32_0 = arith.constant 0 : i32
    %c0_i32_1 = arith.constant 0 : i32
    return %c0_i32, %c0_i32_0 : i32, i32
  }
  func.func @transform_6(%arg0: i32) -> (i32, i32) {
    %c0_i32 = arith.constant 0 : i32
    %c0_i32_0 = arith.constant 0 : i32
    %c0_i32_1 = arith.constant 0 : i32
    return %c0_i32, %c0_i32_0 : i32, i32
  }
  func.func @transform_7(%arg0: i32) -> (i32, i32) {
    %c0_i32 = arith.constant 0 : i32
    %c0_i32_0 = arith.constant 0 : i32
    return %arg0, %c0_i32 : i32, i32
  }
}

</mosaic_0001>

<bundles_post_ra>
// kernel: uber_forward.1
= control target key start
LH: loop header
LB: loop body
LE: loop exit
PB: predicated region body
PF: predicated region fallthrough
CT: control target
= control target key end

     0   :  { %12 = vsyncpa [#allocation3], 0  ;;  %s7672_s0 = inlined_call_operand.vmem [shape: f32[2,784], index: 0, kind: input, shape index: {}]   ;;  %s7673_s1 = inlined_call_operand.hbm [shape: bf16[784,256], index: 1, kind: input, shape index: {}]   ;;  %s7674_s2 = inlined_call_operand.vmem [shape: f32[1,256], index: 2, kind: input, shape index: {}]   ;;  %s7675_s3 = inlined_call_operand.hbm [shape: bf16[256,256], index: 3, kind: input, shape index: {}]   ;;  %s7676_s4 = inlined_call_operand.vmem [shape: f32[1,256], index: 4, kind: input, shape index: {}]   ;;  %s7677_s5 = inlined_call_operand.vmem [shape: bf16[256,128], index: 5, kind: input, shape index: {}]   ;;  %s7678_s6 = inlined_call_operand.vmem [shape: f32[1,128], index: 6, kind: input, shape index: {}]   ;;  %s7679_s7 = inlined_call_operand.hbm [shape: f32[2,128], index: 7, kind: output, shape index: {}]  }
   0x1   :  { %13 = vsyncpa [#allocation6], 0 }
   0x2   :  { %14 = vsyncpa [#allocation4], 0  ;;  %s21_s26 = sshll.u32 %s7673_s1, 4  ;;  %s5241_s27 = smov [#allocation2]   ;;  %s22_s26 = int_to_ptr.hbm [resolvable:$true] %s21_s26 }
   0x3   :  { %s23_s28 = sshll.u32 %s5241_s27, 4  ;;  %s36_s8 = sshll.u32 %s7675_s3, 4  ;;  %s24_s28 = int_to_ptr.vmem [resolvable:$true] %s23_s28  ;;  %s37_s8 = int_to_ptr.hbm [resolvable:$true] %s36_s8 }
   0x4   :  { %s5242_s9 = smov 128   ;;  %s5243_s10 = smov 8  }
   0x5   :  { %29 = dma.hbm_to_vmem [thread:$0]  %s22_s26, 12544, %s24_s28, [#allocation3], %s5242_s9, %s5242_s9, %s5243_s10  }
   0x6   :  { %s5244_s11 = smov [#allocation5]  }
   0x7   :  { %s38_s12 = sshll.u32 %s5244_s11, 4  ;;  %s39_s12 = int_to_ptr.vmem [resolvable:$true] %s38_s12 }
   0x8   :  { %44 = dma.hbm_to_vmem [thread:$0]  %s37_s8, 4096, %s39_s12, [#allocation6], %s5242_s9, %s5242_s9, %s5243_s10  }
   0x9   :  { %5235 = dma.done.wait [#allocation3], 12544  }
   0xa   :  { %5236 = vsyncadd [#allocation3], 4294954752 }
   0xb   :  { %5237 = dma.done.wait [#allocation6], 4096  }
   0xc   :  { %5238 = vsyncadd [#allocation6], 4294963200  ;;  %v4450_v0 = vld [vmem:[#allocation2 + $0x70] sm:$0xf]  ;;  %v5023_v1 = vld [vmem:[#allocation2 + $0x74] sm:$0xf0] }
   0xd   :  { %v4514_v2 = vld [vmem:[#allocation2 + $0xf0] sm:$0xf]  ;;  %v4451_v3 = vor.u32 %v5023_v1, %v4450_v0  ;;  %v5039_v4 = vld [vmem:[#allocation2 + $0xf4] sm:$0xf0]  ;;  %v4442_v11 = vld [vmem:[#allocation2 + $0x60] sm:$0xf] }
   0xe   :  { %v4578_v5 = vld [vmem:[#allocation2 + $0x170] sm:$0xf]  ;;  %v5055_v6 = vld [vmem:[#allocation2 + $0x174] sm:$0xf0]  ;;  %v4515_v7 = vor.u32 %v5039_v4, %v4514_v2  ;;  %v5021_v13 = vld [vmem:[#allocation2 + $0x64] sm:$0xf0] }
   0xf   :  { %v4579_v8 = vor.u32 %v5055_v6, %v4578_v5  ;;  %v4642_v9 = vld [vmem:[#allocation2 + $0x1f0] sm:$0xf]  ;;  %v5071_v10 = vld [vmem:[#allocation2 + $0x1f4] sm:$0xf0]  ;;  %2038 = vmatpush.bf16.msra.mxu0 %v4451_v3  ;;  %v4506_v14 = vld [vmem:[#allocation2 + $0xe0] sm:$0xf]  ;;  %v4443_v16 = vor.u32 %v5021_v13, %v4442_v11 }
  0x10   :  { %v4643_v12 = vor.u32 %v5071_v10, %v4642_v9  ;;  %v5037_v15 = vld [vmem:[#allocation2 + $0xe4] sm:$0xf0]  ;;  %2127 = vmatpush.bf16.msra.mxu1 %v4515_v7  ;;  %v4570_v18 = vld [vmem:[#allocation2 + $0x160] sm:$0xf]  ;;  %v4434_v23 = vld [vmem:[#allocation2 + $0x50] sm:$0xf] }
  0x11   :  { %2216 = vmatpush.bf16.msra.mxu2 %v4579_v8  ;;  %v4507_v17 = vor.u32 %v5037_v15, %v4506_v14  ;;  %v5053_v19 = vld [vmem:[#allocation2 + $0x164] sm:$0xf0]  ;;  %v4634_v20 = vld [vmem:[#allocation2 + $0x1e0] sm:$0xf]  ;;  %v5019_v24 = vld [vmem:[#allocation2 + $0x54] sm:$0xf0] }
  0x12   :  { %2305 = vmatpush.bf16.msra.mxu3 %v4643_v12  ;;  %v4571_v21 = vor.u32 %v5053_v19, %v4570_v18  ;;  %v5069_v22 = vld [vmem:[#allocation2 + $0x1e4] sm:$0xf0]  ;;  %v4498_v26 = vld [vmem:[#allocation2 + $0xd0] sm:$0xf]  ;;  %v5035_v27 = vld [vmem:[#allocation2 + $0xd4] sm:$0xf0]  ;;  %v4435_v29 = vor.u32 %v5019_v24, %v4434_v23 }
  0x13   :  { %v4635_v25 = vor.u32 %v5069_v22, %v4634_v20  ;;  %v4562_v28 = vld [vmem:[#allocation2 + $0x150] sm:$0xf]  ;;  %2039 = vmatpush.bf16.msra.mxu0 %v4443_v16  ;;  %v5051_v30 = vld [vmem:[#allocation2 + $0x154] sm:$0xf0]  ;;  %v4499_v33 = vor.u32 %v5035_v27, %v4498_v26  ;;  %v4426_v35 = vld [vmem:[#allocation2 + $0x40] sm:$0xf] }
  0x14   :  { %v4626_v31 = vld [vmem:[#allocation2 + $0x1d0] sm:$0xf]  ;;  %v5067_v32 = vld [vmem:[#allocation2 + $0x1d4] sm:$0xf0]  ;;  %2128 = vmatpush.bf16.msra.mxu1 %v4507_v17  ;;  %v4563_v34 = vor.u32 %v5051_v30, %v4562_v28  ;;  %v5017_v36 = vld [vmem:[#allocation2 + $0x44] sm:$0xf0] }
  0x15   :  { %2217 = vmatpush.bf16.msra.mxu2 %v4571_v21  ;;  %v4490_v37 = vld [vmem:[#allocation2 + $0xc0] sm:$0xf]  ;;  %v4627_v38 = vor.u32 %v5067_v32, %v4626_v31  ;;  %v5033_v39 = vld [vmem:[#allocation2 + $0xc4] sm:$0xf0]  ;;  %v4427_v44 = vor.u32 %v5017_v36, %v4426_v35  ;;  %v4418_v47 = vld [vmem:[#allocation2 + $0x30] sm:$0xf] }
  0x16   :  { %2306 = vmatpush.bf16.msra.mxu3 %v4635_v25  ;;  %v4554_v40 = vld [vmem:[#allocation2 + $0x140] sm:$0xf]  ;;  %v5049_v41 = vld [vmem:[#allocation2 + $0x144] sm:$0xf0]  ;;  %v4491_v45 = vor.u32 %v5033_v39, %v4490_v37  ;;  %v5015_v48 = vld [vmem:[#allocation2 + $0x34] sm:$0xf0] }
  0x17   :  { %v4618_v42 = vld [vmem:[#allocation2 + $0x1c0] sm:$0xf]  ;;  %v5065_v43 = vld [vmem:[#allocation2 + $0x1c4] sm:$0xf0]  ;;  %2040 = vmatpush.bf16.msra.mxu0 %v4435_v29  ;;  %v4555_v46 = vor.u32 %v5049_v41, %v4554_v40  ;;  %v4482_v49 = vld [vmem:[#allocation2 + $0xb0] sm:$0xf]  ;;  %v4419_v56 = vor.u32 %v5015_v48, %v4418_v47 }
  0x18   :  { %2129 = vmatpush.bf16.msra.mxu1 %v4499_v33  ;;  %v4619_v50 = vor.u32 %v5065_v43, %v4618_v42  ;;  %v5031_v51 = vld [vmem:[#allocation2 + $0xb4] sm:$0xf0]  ;;  %v4546_v52 = vld [vmem:[#allocation2 + $0x130] sm:$0xf]  ;;  %v4410_v59 = vld [vmem:[#allocation2 + $0x20] sm:$0xf] }
  0x19   :  { %2218 = vmatpush.bf16.msra.mxu2 %v4563_v34  ;;  %v5047_v53 = vld [vmem:[#allocation2 + $0x134] sm:$0xf0]  ;;  %v4610_v54 = vld [vmem:[#allocation2 + $0x1b0] sm:$0xf]  ;;  %v4483_v57 = vor.u32 %v5031_v51, %v4482_v49  ;;  %v5013_v60 = vld [vmem:[#allocation2 + $0x24] sm:$0xf0] }
  0x1a   :  { %2307 = vmatpush.bf16.msra.mxu3 %v4627_v38  ;;  %v5063_v55 = vld [vmem:[#allocation2 + $0x1b4] sm:$0xf0]  ;;  %v4547_v58 = vor.u32 %v5047_v53, %v4546_v52  ;;  %v4474_v61 = vld [vmem:[#allocation2 + $0xa0] sm:$0xf]  ;;  %v5029_v63 = vld [vmem:[#allocation2 + $0xa4] sm:$0xf0]  ;;  %v4411_v5 = vor.u32 %v5013_v60, %v4410_v59 }
  0x1b   :  { %2041 = vmatpush.bf16.msra.mxu0 %v4427_v44  ;;  %v4611_v62 = vor.u32 %v5063_v55, %v4610_v54  ;;  %v4538_v0 = vld [vmem:[#allocation2 + $0x120] sm:$0xf]  ;;  %v5045_v1 = vld [vmem:[#allocation2 + $0x124] sm:$0xf0]  ;;  %v4402_v4 = vld [vmem:[#allocation2 + $0x10] sm:$0xf]  ;;  %v4475_v9 = vor.u32 %v5029_v63, %v4474_v61 }
  0x1c   :  { %2130 = vmatpush.bf16.msra.mxu1 %v4491_v45  ;;  %v4602_v2 = vld [vmem:[#allocation2 + $0x1a0] sm:$0xf]  ;;  %v5061_v3 = vld [vmem:[#allocation2 + $0x1a4] sm:$0xf0]  ;;  %v5011_v6 = vld [vmem:[#allocation2 + $0x14] sm:$0xf0]  ;;  %v4539_v10 = vor.u32 %v5045_v1, %v4538_v0 }
  0x1d   :  { %2219 = vmatpush.bf16.msra.mxu2 %v4555_v46  ;;  %v4466_v7 = vld [vmem:[#allocation2 + $0x90] sm:$0xf]  ;;  %v5027_v8 = vld [vmem:[#allocation2 + $0x94] sm:$0xf0]  ;;  %v4603_v14 = vor.u32 %v5061_v3, %v4602_v2  ;;  %v62_v17 = vld [vmem:[%s7672_s0 + $0xe] sm:$0xff]  ;;  %v4403_v21 = vor.u32 %v5011_v6, %v4402_v4  ;;  %vm1989_vm0 = vcmask 130048  }
  0x1e   :  { %2308 = vmatpush.bf16.msra.mxu3 %v4619_v50  ;;  %v4530_v11 = vld [vmem:[#allocation2 + $0x110] sm:$0xf]  ;;  %v5043_v12 = vld [vmem:[#allocation2 + $0x114] sm:$0xf0]  ;;  %v4394_v18 = vld [vmem:[#allocation2] sm:$0xf]  ;;  %v4467_v24 = vor.u32 %v5027_v8, %v4466_v7 }
  0x1f   :  { %2042 = vmatpush.bf16.msra.mxu0 %v4419_v56  ;;  %v4594_v13 = vld [vmem:[#allocation2 + $0x190] sm:$0xf]  ;;  %v5059_v15 = vld [vmem:[#allocation2 + $0x194] sm:$0xf0]  ;;  %v66_v20 = vld [vmem:[%s7672_s0 + $0x2a] sm:$0xff]  ;;  %v4531_v25 = vor.u32 %v5043_v12, %v4530_v11 }
  0x20   :  { %2131 = vmatpush.bf16.msra.mxu1 %v4483_v57  ;;  %v60_v16 = vld [vmem:[%s7672_s0] sm:$0xff]  ;;  %v5009_v22 = vld [vmem:[#allocation2 + $0x4] sm:$0xf0]  ;;  %v4458_v23 = vld [vmem:[#allocation2 + $0x80] sm:$0xf]  ;;  %v4595_v28 = vor.u32 %v5059_v15, %v4594_v13 }
  0x21   :  { %2220 = vmatpush.bf16.msra.mxu2 %v4547_v58  ;;  %v64_v19 = vld [vmem:[%s7672_s0 + $0x1c] sm:$0xff]  ;;  %572 = vst [vmem:[#allocation1] ss:$4 sm:$0xff] %v60_v16  ;;  %v5025_v26 = vld [vmem:[#allocation2 + $0x84] sm:$0xf0]  ;;  %v4395_v34 = vor.u32 %v5009_v22, %v4394_v18  ;;  %v70_v43 = vld [vmem:[%s7672_s0 + $0x46] sm:$0xff] }
  0x22   :  { %2309 = vmatpush.bf16.msra.mxu3 %v4611_v62  ;;  %574 = vst [vmem:[#allocation1 + $0x1] ss:$4 sm:$0xff] %v62_v17  ;;  %v4522_v27 = vld [vmem:[#allocation2 + $0x100] sm:$0xf]  ;;  %v5041_v29 = vld [vmem:[#allocation2 + $0x104] sm:$0xf0]  ;;  %v4459_v37 = vor.u32 %v5025_v26, %v4458_v23 }
  0x23   :  { %2043 = vmatpush.bf16.msra.mxu0 %v4411_v5  ;;  %576 = vst [vmem:[#allocation1 + $0x2] ss:$4 sm:$0xff] %v64_v19  ;;  %v4586_v30 = vld [vmem:[#allocation2 + $0x180] sm:$0xf]  ;;  %v5057_v31 = vld [vmem:[#allocation2 + $0x184] sm:$0xf0]  ;;  %v4523_v38 = vor.u32 %v5041_v29, %v4522_v27 }
  0x24   :  { %2132 = vmatpush.bf16.msra.mxu1 %v4475_v9  ;;  %578 = vst [vmem:[#allocation1 + $0x3] ss:$4 sm:$0xff] %v66_v20  ;;  %v4706_v32 = vld [vmem:[#allocation2 + $0x270] sm:$0xf]  ;;  %v5087_v33 = vld [vmem:[#allocation2 + $0x274] sm:$0xf0]  ;;  %v4587_v39 = vor.u32 %v5057_v31, %v4586_v30 }
  0x25   :  { %2221 = vmatpush.bf16.msra.mxu2 %v4539_v10  ;;  %v4770_v35 = vld [vmem:[#allocation2 + $0x2f0] sm:$0xf]  ;;  %v5103_v36 = vld [vmem:[#allocation2 + $0x2f4] sm:$0xf0]  ;;  %v4707_v40 = vor.u32 %v5087_v33, %v4706_v32  ;;  %v76_v50 = vld [vmem:[%s7672_s0 + $0x70] sm:$0xff] }
  0x26   :  { %2310 = vmatpush.bf16.msra.mxu3 %v4603_v14  ;;  %v4771_v41 = vor.u32 %v5103_v36, %v4770_v35  ;;  %v68_v42 = vld [vmem:[%s7672_s0 + $0x38] sm:$0xff]  ;;  %v74_v49 = vld [vmem:[%s7672_s0 + $0x62] sm:$0xff]  ;;  %v80_v52 = vld [vmem:[%s7672_s0 + $0x8c] sm:$0xff] }
  0x27   :  { %2044 = vmatpush.bf16.msra.mxu0 %v4403_v21  ;;  %v72_v44 = vld [vmem:[%s7672_s0 + $0x54] sm:$0xff]  ;;  %v78_v51 = vld [vmem:[%s7672_s0 + $0x7e] sm:$0xff]  ;;  %v84_v62 = vld [vmem:[%s7672_s0 + $0xa8] sm:$0xff] }
  0x28   :  { %2133 = vmatpush.bf16.msra.mxu1 %v4467_v24  ;;  %v82_v61 = vld [vmem:[%s7672_s0 + $0x9a] sm:$0xff]  ;;  %v88_v0 = vld [vmem:[%s7672_s0 + $0xc4] sm:$0xff]  ;;  %v90_v5 = vld [vmem:[%s7672_s0 + $0xd2] sm:$0xff] }
  0x29   :  { %2222 = vmatpush.bf16.msra.mxu2 %v4531_v25  ;;  %v86_v63 = vld [vmem:[%s7672_s0 + $0xb6] sm:$0xff]  ;;  %v4698_v6 = vld [vmem:[#allocation2 + $0x260] sm:$0xf]  ;;  %v5085_v7 = vld [vmem:[#allocation2 + $0x264] sm:$0xf0] }
  0x2a   :  { %2311 = vmatpush.bf16.msra.mxu3 %v4595_v28  ;;  %v4762_v8 = vld [vmem:[#allocation2 + $0x2e0] sm:$0xf]  ;;  %v4699_v9 = vor.u32 %v5085_v7, %v4698_v6  ;;  %v5101_v10 = vld [vmem:[#allocation2 + $0x2e4] sm:$0xf0]  ;;  %v92_v12 = vld [vmem:[%s7672_s0 + $0xe0] sm:$0xff] }
  0x2b   :  { %2045 = vmatpush.bf16.msra.mxu0 %v4395_v34  ;;  %v587_v45 = vld.sshfl [vmem:[#allocation1] sm:$0xff pattern:$0x73625140]  ;;  %v588_v46 = vld.sshfl [vmem:[#allocation1 + $0x8] sm:$0xff pattern:$0x73625140]  ;;  %v4763_v11 = vor.u32 %v5101_v10, %v4762_v8 }
  0x2c   :  { %2134 = vmatpush.bf16.msra.mxu1 %v4459_v37  ;;  %v589_v47 = vld.sshfl [vmem:[#allocation1 + $0x10] sm:$0xff pattern:$0x73625140]  ;;  %v590_v48 = vld.sshfl [vmem:[#allocation1 + $0x18] sm:$0xff pattern:$0x73625140] }
  0x2d   :  { %2223 = vmatpush.bf16.msra.mxu2 %v4523_v38  ;;  %594 = vst [vmem:[#allocation1] ss:$4 sm:$0xff] %v68_v42  ;;  %v94_v13 = vld [vmem:[%s7672_s0 + $0xee] sm:$0xff]  ;;  %v96_v14 = vld [vmem:[%s7672_s0 + $0xfc] sm:$0xff]  ;;  %v102_v25 = vld [vmem:[%s7672_s0 + $0x126] sm:$0xff] }
  0x2e   :  { %2312 = vmatpush.bf16.msra.mxu3 %v4587_v39  ;;  %595 = vst [vmem:[#allocation1 + $0x1] ss:$4 sm:$0xff] %v70_v43  ;;  %v98_v23 = vld [vmem:[%s7672_s0 + $0x10a] sm:$0xff]  ;;  %v100_v24 = vld [vmem:[%s7672_s0 + $0x118] sm:$0xff]  ;;  %v106_v31 = vld [vmem:[%s7672_s0 + $0x142] sm:$0xff] }
  0x2f   :  { %2394 = vmatpush.bf16.msrb.mxu0 %v4707_v40  ;;  %596 = vst [vmem:[#allocation1 + $0x2] ss:$4 sm:$0xff] %v72_v44  ;;  %v104_v26 = vld [vmem:[%s7672_s0 + $0x134] sm:$0xff]  ;;  %v110_v33 = vld [vmem:[%s7672_s0 + $0x15e] sm:$0xff]  ;;  %v112_v34 = vld [vmem:[%s7672_s0 + $0x16c] sm:$0xff] }
  0x30   :  { %2483 = vmatpush.bf16.msrb.mxu1 %v4771_v41  ;;  %597 = vst [vmem:[#allocation1 + $0x3] ss:$4 sm:$0xff] %v74_v49  ;;  %v108_v32 = vld [vmem:[%s7672_s0 + $0x150] sm:$0xff]  ;;  %v114_v43 = vld [vmem:[%s7672_s0 + $0x17a] sm:$0xff]  ;;  %v116_v44 = vld [vmem:[%s7672_s0 + $0x188] sm:$0xff] }
  0x31   :  { %v132_v10 = vld [vmem:[%s7672_s0 + $0x1f8] sm:$0xff] }
  0x33   :  { %2395 = vmatpush.bf16.msrb.mxu0 %v4699_v9  ;;  %v130_v9 = vld [vmem:[%s7672_s0 + $0x1ea] sm:$0xff] }
  0x34   :  { %2484 = vmatpush.bf16.msrb.mxu1 %v4763_v11  ;;  %v134_v11 = vld [vmem:[%s7672_s0 + $0x206] sm:$0xff] }
  0x37   :  { %v602_v53 = vld.sshfl [vmem:[#allocation1] sm:$0xff pattern:$0x73625140]  ;;  %v603_v54 = vld.sshfl [vmem:[#allocation1 + $0x8] sm:$0xff pattern:$0x73625140] }
  0x38   :  { %v5327_v55 = vpack.c.bf16 %v602_v53, %v587_v45  ;;  %v5329_v56 = vpack.c.bf16 %v603_v54, %v588_v46  ;;  %v604_v57 = vld.sshfl [vmem:[#allocation1 + $0x10] sm:$0xff pattern:$0x73625140]  ;;  %v605_v58 = vld.sshfl [vmem:[#allocation1 + $0x18] sm:$0xff pattern:$0x73625140] }
  0x39   :  { %v5331_v59 = vpack.c.bf16 %v604_v57, %v589_v47  ;;  %v5333_v60 = vpack.c.bf16 %v605_v58, %v590_v48  ;;  %609 = vst [vmem:[#allocation1] ss:$4 sm:$0xff] %v76_v50  ;;  %v118_v45 = vld [vmem:[%s7672_s0 + $0x196] sm:$0xff]  ;;  %v120_v46 = vld [vmem:[%s7672_s0 + $0x1a4] sm:$0xff]  ;;  %v5083_v53 = vld [vmem:[#allocation2 + $0x254] sm:$0xf0] }
  0x3a   :  { %2046 = vmatmul.bf16.vlgmr.msra.gmra.mxu0 %v5327_v55  ;;  %2135 = vmatmul.bf16.vlgmr.msra.gmra.mxu1 %v5329_v56  ;;  %610 = vst [vmem:[#allocation1 + $0x1] ss:$4 sm:$0xff] %v78_v51  ;;  %v122_v51 = vld [vmem:[%s7672_s0 + $0x1b2] sm:$0xff]  ;;  %v5099_v58 = vld [vmem:[#allocation2 + $0x2d4] sm:$0xf0] }
  0x3b   :  { %2224 = vmatmul.bf16.vlgmr.msra.gmra.mxu2 %v5331_v59  ;;  %2313 = vmatmul.bf16.vlgmr.msra.gmra.mxu3 %v5333_v60  ;;  %611 = vst [vmem:[#allocation1 + $0x2] ss:$4 sm:$0xff] %v80_v52  ;;  %v4690_v52 = vld [vmem:[#allocation2 + $0x250] sm:$0xf] }
  0x3c   :  { %612 = vst [vmem:[#allocation1 + $0x3] ss:$4 sm:$0xff] %v82_v61  ;;  %v4754_v54 = vld [vmem:[#allocation2 + $0x2d0] sm:$0xf]  ;;  %v4691_v57 = vor.u32 %v5083_v53, %v4690_v52  ;;  %v156_v52 = vld [vmem:[%s7672_s0 + $0x2a0] sm:$0xff]  ;;  %v158_v53 = vld [vmem:[%s7672_s0 + $0x2ae] sm:$0xff] }
  0x3d   :  { %v4755_v61 = vor.u32 %v5099_v58, %v4754_v54  ;;  %v160_v54 = vld [vmem:[%s7672_s0 + $0x2bc] sm:$0xff] }
  0x3e   :  { %2396 = vmatpush.bf16.msrb.mxu0 %v4691_v57 }
  0x3f   :  { %2485 = vmatpush.bf16.msrb.mxu1 %v4755_v61 }
  0x43   :  { %v617_v1 = vld.sshfl [vmem:[#allocation1] sm:$0xff pattern:$0x73625140]  ;;  %v618_v2 = vld.sshfl [vmem:[#allocation1 + $0x8] sm:$0xff pattern:$0x73625140] }
  0x44   :  { %v619_v3 = vld.sshfl [vmem:[#allocation1 + $0x10] sm:$0xff pattern:$0x73625140]  ;;  %v620_v4 = vld.sshfl [vmem:[#allocation1 + $0x18] sm:$0xff pattern:$0x73625140] }
  0x45   :  { %624 = vst [vmem:[#allocation1] ss:$4 sm:$0xff] %v84_v62  ;;  %v124_v62 = vld [vmem:[%s7672_s0 + $0x1c0] sm:$0xff] }
  0x46   :  { %625 = vst [vmem:[#allocation1 + $0x1] ss:$4 sm:$0xff] %v86_v63  ;;  %v126_v63 = vld [vmem:[%s7672_s0 + $0x1ce] sm:$0xff] }
  0x47   :  { %626 = vst [vmem:[#allocation1 + $0x2] ss:$4 sm:$0xff] %v88_v0  ;;  %v128_v0 = vld [vmem:[%s7672_s0 + $0x1dc] sm:$0xff] }
  0x48   :  { %627 = vst [vmem:[#allocation1 + $0x3] ss:$4 sm:$0xff] %v90_v5 }
  0x4f   :  { %v632_v15 = vld.sshfl [vmem:[#allocation1] sm:$0xff pattern:$0x73625140]  ;;  %v633_v16 = vld.sshfl [vmem:[#allocation1 + $0x8] sm:$0xff pattern:$0x73625140] }
  0x50   :  { %v5363_v17 = vpack.c.bf16 %v632_v15, %v617_v1  ;;  %v5365_v18 = vpack.c.bf16 %v633_v16, %v618_v2  ;;  %v634_v19 = vld.sshfl [vmem:[#allocation1 + $0x10] sm:$0xff pattern:$0x73625140]  ;;  %v635_v20 = vld.sshfl [vmem:[#allocation1 + $0x18] sm:$0xff pattern:$0x73625140] }
  0x51   :  { %v5367_v21 = vpack.c.bf16 %v634_v19, %v619_v3  ;;  %v5369_v22 = vpack.c.bf16 %v635_v20, %v620_v4  ;;  %639 = vst [vmem:[#allocation1] ss:$4 sm:$0xff] %v92_v12  ;;  %v136_v12 = vld [vmem:[%s7672_s0 + $0x214] sm:$0xff]  ;;  %v138_v19 = vld [vmem:[%s7672_s0 + $0x222] sm:$0xff] }
  0x52   :  { %2051 = vmatmul.bf16.gmra.mxu0 %v5363_v17  ;;  %2140 = vmatmul.bf16.gmra.mxu1 %v5365_v18  ;;  %640 = vst [vmem:[#allocation1 + $0x1] ss:$4 sm:$0xff] %v94_v13  ;;  %v140_v20 = vld [vmem:[%s7672_s0 + $0x230] sm:$0xff] }
  0x53   :  { %2229 = vmatmul.bf16.gmra.mxu2 %v5367_v21  ;;  %2318 = vmatmul.bf16.gmra.mxu3 %v5369_v22  ;;  %641 = vst [vmem:[#allocation1 + $0x2] ss:$4 sm:$0xff] %v96_v14 }
  0x54   :  { %642 = vst [vmem:[#allocation1 + $0x3] ss:$4 sm:$0xff] %v98_v23  ;;  %v142_v23 = vld [vmem:[%s7672_s0 + $0x23e] sm:$0xff] }
  0x5b   :  { %v647_v27 = vld.sshfl [vmem:[#allocation1] sm:$0xff pattern:$0x73625140]  ;;  %v648_v28 = vld.sshfl [vmem:[#allocation1 + $0x8] sm:$0xff pattern:$0x73625140] }
  0x5c   :  { %v649_v29 = vld.sshfl [vmem:[#allocation1 + $0x10] sm:$0xff pattern:$0x73625140]  ;;  %v650_v30 = vld.sshfl [vmem:[#allocation1 + $0x18] sm:$0xff pattern:$0x73625140] }
  0x5d   :  { %654 = vst [vmem:[#allocation1] ss:$4 sm:$0xff] %v100_v24  ;;  %v144_v24 = vld [vmem:[%s7672_s0 + $0x24c] sm:$0xff] }
  0x5e   :  { %655 = vst [vmem:[#allocation1 + $0x1] ss:$4 sm:$0xff] %v102_v25 }
  0x5f   :  { %656 = vst [vmem:[#allocation1 + $0x2] ss:$4 sm:$0xff] %v104_v26 }
  0x60   :  { %657 = vst [vmem:[#allocation1 + $0x3] ss:$4 sm:$0xff] %v106_v31 }
  0x67   :  { %v662_v35 = vld.sshfl [vmem:[#allocation1] sm:$0xff pattern:$0x73625140]  ;;  %v663_v36 = vld.sshfl [vmem:[#allocation1 + $0x8] sm:$0xff pattern:$0x73625140] }
  0x68   :  { %v5399_v37 = vpack.c.bf16 %v662_v35, %v647_v27  ;;  %v5401_v38 = vpack.c.bf16 %v663_v36, %v648_v28  ;;  %v664_v39 = vld.sshfl [vmem:[#allocation1 + $0x10] sm:$0xff pattern:$0x73625140]  ;;  %v665_v40 = vld.sshfl [vmem:[#allocation1 + $0x18] sm:$0xff pattern:$0x73625140] }
  0x69   :  { %v5403_v41 = vpack.c.bf16 %v664_v39, %v649_v29  ;;  %v5405_v42 = vpack.c.bf16 %v665_v40, %v650_v30  ;;  %669 = vst [vmem:[#allocation1] ss:$4 sm:$0xff] %v108_v32  ;;  %v150_v35 = vld [vmem:[%s7672_s0 + $0x276] sm:$0xff]  ;;  %v152_v36 = vld [vmem:[%s7672_s0 + $0x284] sm:$0xff] }
  0x6a   :  { %2056 = vmatmul.bf16.gmra.mxu0 %v5399_v37  ;;  %2145 = vmatmul.bf16.gmra.mxu1 %v5401_v38  ;;  %670 = vst [vmem:[#allocation1 + $0x1] ss:$4 sm:$0xff] %v110_v33  ;;  %v146_v33 = vld [vmem:[%s7672_s0 + $0x25a] sm:$0xff] }
  0x6b   :  { %2234 = vmatmul.bf16.gmra.mxu2 %v5403_v41  ;;  %2323 = vmatmul.bf16.gmra.mxu3 %v5405_v42  ;;  %671 = vst [vmem:[#allocation1 + $0x2] ss:$4 sm:$0xff] %v112_v34  ;;  %v148_v34 = vld [vmem:[%s7672_s0 + $0x268] sm:$0xff] }
  0x6c   :  { %672 = vst [vmem:[#allocation1 + $0x3] ss:$4 sm:$0xff] %v114_v43 }
  0x73   :  { %v677_v47 = vld.sshfl [vmem:[#allocation1] sm:$0xff pattern:$0x73625140]  ;;  %v678_v48 = vld.sshfl [vmem:[#allocation1 + $0x8] sm:$0xff pattern:$0x73625140] }
  0x74   :  { %v679_v49 = vld.sshfl [vmem:[#allocation1 + $0x10] sm:$0xff pattern:$0x73625140]  ;;  %v680_v50 = vld.sshfl [vmem:[#allocation1 + $0x18] sm:$0xff pattern:$0x73625140] }
  0x75   :  { %684 = vst [vmem:[#allocation1] ss:$4 sm:$0xff] %v116_v44 }
  0x76   :  { %685 = vst [vmem:[#allocation1 + $0x1] ss:$4 sm:$0xff] %v118_v45  ;;  %v154_v45 = vld [vmem:[%s7672_s0 + $0x292] sm:$0xff] }
  0x77   :  { %686 = vst [vmem:[#allocation1 + $0x2] ss:$4 sm:$0xff] %v120_v46  ;;  %v4682_v46 = vld [vmem:[#allocation2 + $0x240] sm:$0xf] }
  0x78   :  { %687 = vst [vmem:[#allocation1 + $0x3] ss:$4 sm:$0xff] %v122_v51 }
  0x7f   :  { %v692_v1 = vld.sshfl [vmem:[#allocation1] sm:$0xff pattern:$0x73625140]  ;;  %v693_v2 = vld.sshfl [vmem:[#allocation1 + $0x8] sm:$0xff pattern:$0x73625140] }
  0x80   :  { %v5435_v3 = vpack.c.bf16 %v692_v1, %v677_v47  ;;  %v5437_v4 = vpack.c.bf16 %v693_v2, %v678_v48  ;;  %v694_v5 = vld.sshfl [vmem:[#allocation1 + $0x10] sm:$0xff pattern:$0x73625140]  ;;  %v695_v6 = vld.sshfl [vmem:[#allocation1 + $0x18] sm:$0xff pattern:$0x73625140] }
  0x81   :  { %v5439_v7 = vpack.c.bf16 %v694_v5, %v679_v49  ;;  %v5441_v8 = vpack.c.bf16 %v695_v6, %v680_v50  ;;  %699 = vst [vmem:[#allocation1] ss:$4 sm:$0xff] %v124_v62  ;;  %v5081_v47 = vld [vmem:[#allocation2 + $0x244] sm:$0xf0]  ;;  %v4746_v48 = vld [vmem:[#allocation2 + $0x2c0] sm:$0xf] }
  0x82   :  { %2061 = vmatmul.bf16.gmra.mxu0 %v5435_v3  ;;  %2150 = vmatmul.bf16.gmra.mxu1 %v5437_v4  ;;  %700 = vst [vmem:[#allocation1 + $0x1] ss:$4 sm:$0xff] %v126_v63  ;;  %v4683_v49 = vor.u32 %v5081_v47, %v4682_v46  ;;  %v5097_v50 = vld [vmem:[#allocation2 + $0x2c4] sm:$0xf0]  ;;  %v164_v6 = vld [vmem:[%s7672_s0 + $0x2d8] sm:$0xff]  ;;  %v180_v46 = vld [vmem:[%s7672_s0 + $0x348] sm:$0xff] }
  0x83   :  { %2239 = vmatmul.bf16.gmra.mxu2 %v5439_v7  ;;  %2328 = vmatmul.bf16.gmra.mxu3 %v5441_v8  ;;  %701 = vst [vmem:[#allocation1 + $0x2] ss:$4 sm:$0xff] %v128_v0  ;;  %v4747_v51 = vor.u32 %v5097_v50, %v4746_v48  ;;  %v162_v5 = vld [vmem:[%s7672_s0 + $0x2ca] sm:$0xff]  ;;  %v182_v47 = vld [vmem:[%s7672_s0 + $0x356] sm:$0xff] }
  0x84   :  { %702 = vst [vmem:[#allocation1 + $0x3] ss:$4 sm:$0xff] %v130_v9  ;;  %2397 = vmatpush.bf16.msrb.mxu0 %v4683_v49  ;;  %v166_v9 = vld [vmem:[%s7672_s0 + $0x2e6] sm:$0xff] }
  0x85   :  { %2486 = vmatpush.bf16.msrb.mxu1 %v4747_v51  ;;  %v184_v48 = vld [vmem:[%s7672_s0 + $0x364] sm:$0xff] }
  0x8b   :  { %v707_v13 = vld.sshfl [vmem:[#allocation1] sm:$0xff pattern:$0x73625140]  ;;  %v708_v14 = vld.sshfl [vmem:[#allocation1 + $0x8] sm:$0xff pattern:$0x73625140] }
  0x8c   :  { %v709_v15 = vld.sshfl [vmem:[#allocation1 + $0x10] sm:$0xff pattern:$0x73625140]  ;;  %v710_v16 = vld.sshfl [vmem:[#allocation1 + $0x18] sm:$0xff pattern:$0x73625140] }
  0x8d   :  { %714 = vst [vmem:[#allocation1] ss:$4 sm:$0xff] %v132_v10  ;;  %v168_v10 = vld [vmem:[%s7672_s0 + $0x2f4] sm:$0xff] }
  0x8e   :  { %715 = vst [vmem:[#allocation1 + $0x1] ss:$4 sm:$0xff] %v134_v11 }
  0x8f   :  { %716 = vst [vmem:[#allocation1 + $0x2] ss:$4 sm:$0xff] %v136_v12 }
  0x90   :  { %717 = vst [vmem:[#allocation1 + $0x3] ss:$4 sm:$0xff] %v138_v19 }
  0x97   :  { %v722_v25 = vld.sshfl [vmem:[#allocation1] sm:$0xff pattern:$0x73625140]  ;;  %v723_v26 = vld.sshfl [vmem:[#allocation1 + $0x8] sm:$0xff pattern:$0x73625140] }
  0x98   :  { %v5471_v27 = vpack.c.bf16 %v722_v25, %v707_v13  ;;  %v5473_v28 = vpack.c.bf16 %v723_v26, %v708_v14  ;;  %v724_v29 = vld.sshfl [vmem:[#allocation1 + $0x10] sm:$0xff pattern:$0x73625140]  ;;  %v725_v30 = vld.sshfl [vmem:[#allocation1 + $0x18] sm:$0xff pattern:$0x73625140] }
  0x99   :  { %v5475_v31 = vpack.c.bf16 %v724_v29, %v709_v15  ;;  %v5477_v32 = vpack.c.bf16 %v725_v30, %v710_v16  ;;  %729 = vst [vmem:[#allocation1] ss:$4 sm:$0xff] %v140_v20  ;;  %v170_v15 = vld [vmem:[%s7672_s0 + $0x302] sm:$0xff]  ;;  %v1493_v16 = vld [vmem:[%s7674_s2] sm:$0x3]  ;;  %v176_v25 = vld [vmem:[%s7672_s0 + $0x32c] sm:$0xff] }
  0x9a   :  { %2066 = vmatmul.bf16.gmra.mxu0 %v5471_v27  ;;  %2155 = vmatmul.bf16.gmra.mxu1 %v5473_v28  ;;  %730 = vst [vmem:[#allocation1 + $0x1] ss:$4 sm:$0xff] %v142_v23  ;;  %v5537_v20 = vperm.slane %v1493_v16, 0  ;;  %v172_v23 = vld [vmem:[%s7672_s0 + $0x310] sm:$0xff]  ;;  %v5022_v16 = vld [vmem:[#allocation2 + $0x74] sm:$0xf] }
  0x9b   :  { %7760 = vst [vmem:[#allocation11_spill] sm:$0xff] %v5475_v31  ;;  %2244 = vmatmul.bf16.gmra.mxu2 %v5475_v31  ;;  %2333 = vmatmul.bf16.gmra.mxu3 %v5477_v32 }
  0x9c   :  { %7761 = vst [vmem:[#allocation12_spill] sm:$0xff] %v5477_v32 }
  0x9d   :  { %731 = vst [vmem:[#allocation1 + $0x2] ss:$4 sm:$0xff] %v144_v24  ;;  %v174_v24 = vld [vmem:[%s7672_s0 + $0x31e] sm:$0xff] }
  0x9e   :  { %732 = vst [vmem:[#allocation1 + $0x3] ss:$4 sm:$0xff] %v146_v33 }
  0xa5   :  { %v737_v39 = vld.sshfl [vmem:[#allocation1] sm:$0xff pattern:$0x73625140]  ;;  %v738_v40 = vld.sshfl [vmem:[#allocation1 + $0x8] sm:$0xff pattern:$0x73625140] }
  0xa6   :  { %v739_v43 = vld.sshfl [vmem:[#allocation1 + $0x10] sm:$0xff pattern:$0x73625140]  ;;  %v740_v44 = vld.sshfl [vmem:[#allocation1 + $0x18] sm:$0xff pattern:$0x73625140] }
  0xa7   :  { %744 = vst [vmem:[#allocation1] ss:$4 sm:$0xff] %v148_v34 }
  0xa8   :  { %745 = vst [vmem:[#allocation1 + $0x1] ss:$4 sm:$0xff] %v150_v35 }
  0xa9   :  { %746 = vst [vmem:[#allocation1 + $0x2] ss:$4 sm:$0xff] %v152_v36 }
  0xaa   :  { %747 = vst [vmem:[#allocation1 + $0x3] ss:$4 sm:$0xff] %v154_v45  ;;  %v178_v45 = vld [vmem:[%s7672_s0 + $0x33a] sm:$0xff] }
  0xb1   :  { %v752_v57 = vld.sshfl [vmem:[#allocation1] sm:$0xff pattern:$0x73625140]  ;;  %v753_v58 = vld.sshfl [vmem:[#allocation1 + $0x8] sm:$0xff pattern:$0x73625140] }
  0xb2   :  { %v5507_v61 = vpack.c.bf16 %v752_v57, %v737_v39  ;;  %v5509_v62 = vpack.c.bf16 %v753_v58, %v738_v40  ;;  %v754_v63 = vld.sshfl [vmem:[#allocation1 + $0x10] sm:$0xff pattern:$0x73625140]  ;;  %v755_v0 = vld.sshfl [vmem:[#allocation1 + $0x18] sm:$0xff pattern:$0x73625140] }
  0xb3   :  { %v5511_v1 = vpack.c.bf16 %v754_v63, %v739_v43  ;;  %v5513_v2 = vpack.c.bf16 %v755_v0, %v740_v44  ;;  %759 = vst [vmem:[#allocation1] ss:$4 sm:$0xff] %v156_v52  ;;  %v5079_v57 = vld [vmem:[#allocation2 + $0x234] sm:$0xf0]  ;;  %v4738_v58 = vld [vmem:[#allocation2 + $0x2b0] sm:$0xf] }
  0xb4   :  { %7762 = vst [vmem:[#allocation13_spill] sm:$0xff] %v5509_v62  ;;  %2071 = vmatmul.bf16.gmra.mxu0 %v5507_v61  ;;  %2160 = vmatmul.bf16.gmra.mxu1 %v5509_v62 }
  0xb5   :  { %7763 = vst [vmem:[#allocation14_spill] sm:$0xff] %v5511_v1  ;;  %2249 = vmatmul.bf16.gmra.mxu2 %v5511_v1  ;;  %2338 = vmatmul.bf16.gmra.mxu3 %v5513_v2 }
  0xb6   :  { %7764 = vst [vmem:[#allocation15_spill] sm:$0xff] %v5513_v2 }
  0xb7   :  { %760 = vst [vmem:[#allocation1 + $0x1] ss:$4 sm:$0xff] %v158_v53  ;;  %v2047_v19 = vpop.f32.mrf.mxu0  ;;  %v2136_v33 = vpop.f32.mrf.mxu1  ;;  %v186_v53 = vld [vmem:[%s7672_s0 + $0x372] sm:$0xff] }
  0xb8   :  { %761 = vst [vmem:[#allocation1 + $0x2] ss:$4 sm:$0xff] %v160_v54  ;;  %v2048_v26 = vadd.f32 %v2047_v19, %v5537_v20  ;;  %v4674_v54 = vld [vmem:[#allocation2 + $0x230] sm:$0xf]  ;;  %v4452_v19 = vld [vmem:[#allocation2 + $0x78] sm:$0xf0] }
  0xb9   :  { %762 = vst [vmem:[#allocation1 + $0x3] ss:$4 sm:$0xff] %v162_v5  ;;  %v4675_v5 = vor.u32 %v5079_v57, %v4674_v54  ;;  %v196_v54 = vld [vmem:[%s7672_s0 + $0x3b8] sm:$0xff]  ;;  %v198_v57 = vld [vmem:[%s7672_s0 + $0x3c6] sm:$0xff] }
  0xba   :  { %v2137_v40 = vadd.f32 %v2136_v33, %v2048_v26 }
  0xbb   :  { %2398 = vmatpush.bf16.msrb.mxu0 %v4675_v5 }
  0xbe   :  { %v2225_v63 = vpop.f32.mrf.mxu2 }
  0xbf   :  { %v5576_v0 = vpop.f32.mrf.mxu0 }
  0xc0   :  { %v767_v11 = vld.sshfl [vmem:[#allocation1] sm:$0xff pattern:$0x73625140]  ;;  %v768_v12 = vld.sshfl [vmem:[#allocation1 + $0x8] sm:$0xff pattern:$0x73625140] }
  0xc1   :  { %v769_v13 = vld.sshfl [vmem:[#allocation1 + $0x10] sm:$0xff pattern:$0x73625140]  ;;  %v770_v14 = vld.sshfl [vmem:[#allocation1 + $0x18] sm:$0xff pattern:$0x73625140] }
  0xc2   :  { %774 = vst [vmem:[#allocation1] ss:$4 sm:$0xff] %v164_v6  ;;  %v5095_v6 = vld [vmem:[#allocation2 + $0x2b4] sm:$0xf0] }
  0xc3   :  { %775 = vst [vmem:[#allocation1 + $0x1] ss:$4 sm:$0xff] %v166_v9  ;;  %v2226_v9 = vadd.f32 %v2225_v63, %v2137_v40 }
  0xc4   :  { %776 = vst [vmem:[#allocation1 + $0x2] ss:$4 sm:$0xff] %v168_v10  ;;  %v5578_v10 = vpop.f32.mrf.mxu1 }
  0xc5   :  { %777 = vst [vmem:[#allocation1 + $0x3] ss:$4 sm:$0xff] %v170_v15 }
  0xc6   :  { %7768 = vst [vmem:[#allocation19_spill] sm:$0xff] %v5576_v0 }
  0xc7   :  { %7769 = vst [vmem:[#allocation20_spill] sm:$0xff] %v5578_v10  ;;  %v242_v10 = vld [vmem:[%s7672_s0 + $0x4fa] sm:$0xff] }
  0xcc   :  { %v782_v29 = vld.sshfl [vmem:[#allocation1] sm:$0xff pattern:$0x73625140]  ;;  %v783_v30 = vld.sshfl [vmem:[#allocation1 + $0x8] sm:$0xff pattern:$0x73625140] }
  0xcd   :  { %v5549_v34 = vpack.c.bf16 %v782_v29, %v767_v11  ;;  %v5551_v35 = vpack.c.bf16 %v783_v30, %v768_v12  ;;  %v784_v36 = vld.sshfl [vmem:[#allocation1 + $0x10] sm:$0xff pattern:$0x73625140]  ;;  %v785_v39 = vld.sshfl [vmem:[#allocation1 + $0x18] sm:$0xff pattern:$0x73625140]  ;;  %v2314_v11 = vpop.f32.mrf.mxu3  ;;  %v4455_v29 = vor.u32 %v5022_v16, %v4452_v19 }
  0xce   :  { %v5553_v43 = vpack.c.bf16 %v784_v36, %v769_v13  ;;  %v5555_v44 = vpack.c.bf16 %v785_v39, %v770_v14  ;;  %789 = vst [vmem:[#allocation1] ss:$4 sm:$0xff] %v172_v23  ;;  %v4778_v12 = vld [vmem:[#allocation2 + $0x300] sm:$0xf]  ;;  %v5105_v13 = vld [vmem:[#allocation2 + $0x304] sm:$0xf0]  ;;  %v4739_v14 = vor.u32 %v5095_v6, %v4738_v58  ;;  %v5589_v26 = vadd.f32 %v2314_v11, %v2226_v9 }
  0xcf   :  { %7765 = vst [vmem:[#allocation16_spill] sm:$0xff] %v5551_v35  ;;  %2076 = vmatmul.bf16.gmra.mxu0 %v5549_v34  ;;  %2165 = vmatmul.bf16.gmra.mxu1 %v5551_v35  ;;  %v4779_v15 = vor.u32 %v5105_v13, %v4778_v12  ;;  %v188_v23 = vld [vmem:[%s7672_s0 + $0x380] sm:$0xff]  ;;  %v200_v58 = vld [vmem:[%s7672_s0 + $0x3d4] sm:$0xff] }
  0xd0   :  { %7766 = vst [vmem:[#allocation17_spill] sm:$0xff] %v5553_v43  ;;  %2254 = vmatmul.bf16.gmra.mxu2 %v5553_v43  ;;  %2343 = vmatmul.bf16.gmra.mxu3 %v5555_v44  ;;  %v202_v12 = vld [vmem:[%s7672_s0 + $0x3e2] sm:$0xff] }
  0xd1   :  { %7767 = vst [vmem:[#allocation18_spill] sm:$0xff] %v5555_v44  ;;  %2487 = vmatpush.bf16.msrb.mxu1 %v4739_v14  ;;  %2579 = vmatpush.bf16.msrb.mxu2 %v4779_v15 }
  0xd2   :  { %790 = vst [vmem:[#allocation1 + $0x1] ss:$4 sm:$0xff] %v174_v24  ;;  %v190_v24 = vld [vmem:[%s7672_s0 + $0x38e] sm:$0xff]  ;;  %2661 = vmatpush.bf16.msrb.mxu3 %v4455_v29 }
  0xd3   :  { %791 = vst [vmem:[#allocation1 + $0x2] ss:$4 sm:$0xff] %v176_v25  ;;  %v192_v25 = vld [vmem:[%s7672_s0 + $0x39c] sm:$0xff] }
  0xd4   :  { %792 = vst [vmem:[#allocation1 + $0x3] ss:$4 sm:$0xff] %v178_v45 }
  0xd5   :  { %v5618_v63 = vpop.f32.mrf.mxu3 }
  0xd6   :  { %7774 = vst [vmem:[#allocation25_spill] sm:$0xff] %v5618_v63 }
  0xdb   :  { %v797_v49 = vld.sshfl [vmem:[#allocation1] sm:$0xff pattern:$0x73625140]  ;;  %v798_v50 = vld.sshfl [vmem:[#allocation1 + $0x8] sm:$0xff pattern:$0x73625140] }
  0xdc   :  { %v799_v51 = vld.sshfl [vmem:[#allocation1 + $0x10] sm:$0xff pattern:$0x73625140]  ;;  %v800_v52 = vld.sshfl [vmem:[#allocation1 + $0x18] sm:$0xff pattern:$0x73625140] }
  0xdd   :  { %804 = vst [vmem:[#allocation1] ss:$4 sm:$0xff] %v180_v46  ;;  %v2319_v19 = vpop.f32.mrf.mxu3 }
  0xde   :  { %805 = vst [vmem:[#allocation1 + $0x1] ss:$4 sm:$0xff] %v182_v47 }
  0xdf   :  { %806 = vst [vmem:[#allocation1 + $0x2] ss:$4 sm:$0xff] %v184_v48  ;;  %v194_v48 = vld [vmem:[%s7672_s0 + $0x3aa] sm:$0xff] }
  0xe0   :  { %807 = vst [vmem:[#allocation1 + $0x3] ss:$4 sm:$0xff] %v186_v53  ;;  %v5607_v53 = vpop.f32.mrf.mxu2 }
  0xe1   :  { %7773 = vst [vmem:[#allocation24_spill] sm:$0xff] %v5607_v53 }
  0xe7   :  { %v812_v30 = vld.sshfl [vmem:[#allocation1] sm:$0xff pattern:$0x73625140]  ;;  %v813_v33 = vld.sshfl [vmem:[#allocation1 + $0x8] sm:$0xff pattern:$0x73625140] }
  0xe8   :  { %v5591_v36 = vpack.c.bf16 %v812_v30, %v797_v49  ;;  %v5593_v39 = vpack.c.bf16 %v813_v33, %v798_v50  ;;  %v814_v40 = vld.sshfl [vmem:[#allocation1 + $0x10] sm:$0xff pattern:$0x73625140]  ;;  %v815_v45 = vld.sshfl [vmem:[#allocation1 + $0x18] sm:$0xff pattern:$0x73625140]  ;;  %v2052_v49 = vpop.f32.mrf.mxu0  ;;  %v2230_v13 = vpop.f32.mrf.mxu2 }
  0xe9   :  { %v5595_v46 = vpack.c.bf16 %v814_v40, %v799_v51  ;;  %v5597_v47 = vpack.c.bf16 %v815_v45, %v800_v52  ;;  %819 = vst [vmem:[#allocation1] ss:$4 sm:$0xff] %v188_v23  ;;  %v2053_v50 = vadd.f32 %v2052_v49, %v5537_v20  ;;  %v2141_v51 = vpop.f32.mrf.mxu1  ;;  %v204_v23 = vld [vmem:[%s7672_s0 + $0x3f0] sm:$0xff] }
  0xea   :  { %7770 = vst [vmem:[#allocation21_spill] sm:$0xff] %v5593_v39  ;;  %2081 = vmatmul.bf16.gmra.mxu0 %v5591_v36  ;;  %2170 = vmatmul.bf16.gmra.mxu1 %v5593_v39 }
  0xeb   :  { %7771 = vst [vmem:[#allocation22_spill] sm:$0xff] %v5595_v46  ;;  %2259 = vmatmul.bf16.gmra.mxu2 %v5595_v46  ;;  %2348 = vmatmul.bf16.gmra.mxu3 %v5597_v47  ;;  %v2142_v52 = vadd.f32 %v2141_v51, %v2053_v50 }
  0xec   :  { %7772 = vst [vmem:[#allocation23_spill] sm:$0xff] %v5597_v47  ;;  %v4428_v47 = vld [vmem:[#allocation2 + $0x48] sm:$0xf0] }
  0xed   :  { %820 = vst [vmem:[#allocation1 + $0x1] ss:$4 sm:$0xff] %v190_v24  ;;  %v2231_v15 = vadd.f32 %v2230_v13, %v2142_v52  ;;  %v206_v24 = vld [vmem:[%s7672_s0 + $0x3fe] sm:$0xff]  ;;  %v5665_v13 = vpop.f32.mrf.mxu3 }
  0xee   :  { %821 = vst [vmem:[#allocation1 + $0x2] ss:$4 sm:$0xff] %v192_v25  ;;  %v208_v25 = vld [vmem:[%s7672_s0 + $0x40c] sm:$0xff]  ;;  %v210_v52 = vld [vmem:[%s7672_s0 + $0x41a] sm:$0xff] }
  0xef   :  { %822 = vst [vmem:[#allocation1 + $0x3] ss:$4 sm:$0xff] %v194_v48  ;;  %v5636_v29 = vadd.f32 %v2319_v19, %v2231_v15 }
  0xf0   :  { %v5623_v14 = vpop.f32.mrf.mxu0  ;;  %7781 = vst [vmem:[#allocation32_spill] sm:$0xff] %v5665_v13 }
  0xf1   :  { %7775 = vst [vmem:[#allocation26_spill] sm:$0xff] %v5623_v14  ;;  %v5625_v16 = vpop.f32.mrf.mxu1  ;;  %v4444_v14 = vld [vmem:[#allocation2 + $0x68] sm:$0xf0] }
  0xf2   :  { %7776 = vst [vmem:[#allocation27_spill] sm:$0xff] %v5625_v16  ;;  %v5020_v16 = vld [vmem:[#allocation2 + $0x64] sm:$0xf] }
  0xf3   :  { %v4447_v53 = vor.u32 %v5020_v16, %v4444_v14 }
  0xf5   :  { %2662 = vmatpush.bf16.msrb.mxu3 %v4447_v53 }
  0xf6   :  { %v827_v5 = vld.sshfl [vmem:[#allocation1] sm:$0xff pattern:$0x73625140]  ;;  %v828_v6 = vld.sshfl [vmem:[#allocation1 + $0x8] sm:$0xff pattern:$0x73625140] }
  0xf7   :  { %v829_v9 = vld.sshfl [vmem:[#allocation1 + $0x10] sm:$0xff pattern:$0x73625140]  ;;  %v830_v11 = vld.sshfl [vmem:[#allocation1 + $0x18] sm:$0xff pattern:$0x73625140] }
  0xf8   :  { %834 = vst [vmem:[#allocation1] ss:$4 sm:$0xff] %v196_v54  ;;  %v2057_v54 = vpop.f32.mrf.mxu0 }
  0xf9   :  { %835 = vst [vmem:[#allocation1 + $0x1] ss:$4 sm:$0xff] %v198_v57  ;;  %v2058_v57 = vadd.f32 %v2057_v54, %v5537_v20 }
  0xfa   :  { %836 = vst [vmem:[#allocation1 + $0x2] ss:$4 sm:$0xff] %v200_v58  ;;  %v2146_v58 = vpop.f32.mrf.mxu1 }
  0xfb   :  { %837 = vst [vmem:[#allocation1 + $0x3] ss:$4 sm:$0xff] %v202_v12  ;;  %v216_v12 = vld [vmem:[%s7672_s0 + $0x444] sm:$0xff] }
 0x102   :  { %v842_v30 = vld.sshfl [vmem:[#allocation1] sm:$0xff pattern:$0x73625140]  ;;  %v843_v33 = vld.sshfl [vmem:[#allocation1 + $0x8] sm:$0xff pattern:$0x73625140]  ;;  %v5672_v13 = vpop.f32.mrf.mxu1 }
 0x103   :  { %v5638_v40 = vpack.c.bf16 %v842_v30, %v827_v5  ;;  %v5640_v45 = vpack.c.bf16 %v843_v33, %v828_v6  ;;  %v844_v48 = vld.sshfl [vmem:[#allocation1 + $0x10] sm:$0xff pattern:$0x73625140]  ;;  %v845_v49 = vld.sshfl [vmem:[#allocation1 + $0x18] sm:$0xff pattern:$0x73625140]  ;;  %v2147_v5 = vadd.f32 %v2146_v58, %v2058_v57  ;;  %v5654_v6 = vpop.f32.mrf.mxu2 }
 0x104   :  { %v5642_v50 = vpack.c.bf16 %v844_v48, %v829_v9  ;;  %v5644_v51 = vpack.c.bf16 %v845_v49, %v830_v11  ;;  %849 = vst [vmem:[#allocation1] ss:$4 sm:$0xff] %v204_v23  ;;  %v212_v9 = vld [vmem:[%s7672_s0 + $0x428] sm:$0xff]  ;;  %v214_v11 = vld [vmem:[%s7672_s0 + $0x436] sm:$0xff]  ;;  %v5077_v33 = vld [vmem:[#allocation2 + $0x224] sm:$0xf0] }
 0x105   :  { %7777 = vst [vmem:[#allocation28_spill] sm:$0xff] %v5640_v45  ;;  %2086 = vmatmul.bf16.gmra.mxu0 %v5638_v40  ;;  %2175 = vmatmul.bf16.gmra.mxu1 %v5640_v45  ;;  %v4666_v30 = vld [vmem:[#allocation2 + $0x220] sm:$0xf]  ;;  %v5093_v57 = vld [vmem:[#allocation2 + $0x2a4] sm:$0xf0] }
 0x106   :  { %7778 = vst [vmem:[#allocation29_spill] sm:$0xff] %v5642_v50  ;;  %2264 = vmatmul.bf16.gmra.mxu2 %v5642_v50  ;;  %2353 = vmatmul.bf16.gmra.mxu3 %v5644_v51  ;;  %v4730_v48 = vld [vmem:[#allocation2 + $0x2a0] sm:$0xf]  ;;  %v4667_v54 = vor.u32 %v5077_v33, %v4666_v30  ;;  %v5016_v45 = vld [vmem:[#allocation2 + $0x44] sm:$0xf] }
 0x107   :  { %7779 = vst [vmem:[#allocation30_spill] sm:$0xff] %v5644_v51  ;;  %v4731_v63 = vor.u32 %v5093_v57, %v4730_v48  ;;  %v4431_v39 = vor.u32 %v5016_v45, %v4428_v47 }
 0x108   :  { %850 = vst [vmem:[#allocation1 + $0x1] ss:$4 sm:$0xff] %v206_v24  ;;  %2399 = vmatpush.bf16.msrb.mxu0 %v4667_v54  ;;  %v226_v54 = vld [vmem:[%s7672_s0 + $0x48a] sm:$0xff] }
 0x109   :  { %851 = vst [vmem:[#allocation1 + $0x2] ss:$4 sm:$0xff] %v208_v25  ;;  %v218_v25 = vld [vmem:[%s7672_s0 + $0x452] sm:$0xff]  ;;  %2488 = vmatpush.bf16.msrb.mxu1 %v4731_v63 }
 0x10a   :  { %852 = vst [vmem:[#allocation1 + $0x3] ss:$4 sm:$0xff] %v210_v52  ;;  %v5670_v52 = vpop.f32.mrf.mxu0 }
 0x10b   :  { %7780 = vst [vmem:[#allocation31_spill] sm:$0xff] %v5654_v6  ;;  %v2235_v49 = vpop.f32.mrf.mxu2  ;;  %v2324_v6 = vpop.f32.mrf.mxu3 }
 0x10c   :  { %7782 = vst [vmem:[#allocation33_spill] sm:$0xff] %v5670_v52  ;;  %v2236_v58 = vadd.f32 %v2235_v49, %v2147_v5 }
 0x10d   :  { %7783 = vst [vmem:[#allocation34_spill] sm:$0xff] %v5672_v13 }
 0x10e   :  { %v5683_v5 = vadd.f32 %v2324_v6, %v2236_v58  ;;  %v2151_v6 = vpop.f32.mrf.mxu1  ;;  %v232_v58 = vld [vmem:[%s7672_s0 + $0x4b4] sm:$0xff] }
 0x111   :  { %v857_v15 = vld.sshfl [vmem:[#allocation1] sm:$0xff pattern:$0x73625140]  ;;  %v858_v19 = vld.sshfl [vmem:[#allocation1 + $0x8] sm:$0xff pattern:$0x73625140] }
 0x112   :  { %v859_v23 = vld.sshfl [vmem:[#allocation1 + $0x10] sm:$0xff pattern:$0x73625140]  ;;  %v860_v24 = vld.sshfl [vmem:[#allocation1 + $0x18] sm:$0xff pattern:$0x73625140]  ;;  %v2062_v53 = vpop.f32.mrf.mxu0 }
 0x113   :  { %864 = vst [vmem:[#allocation1] ss:$4 sm:$0xff] %v212_v9  ;;  %v220_v9 = vld [vmem:[%s7672_s0 + $0x460] sm:$0xff]  ;;  %v2063_v63 = vadd.f32 %v2062_v53, %v5537_v20 }
 0x114   :  { %865 = vst [vmem:[#allocation1 + $0x1] ss:$4 sm:$0xff] %v214_v11  ;;  %v222_v11 = vld [vmem:[%s7672_s0 + $0x46e] sm:$0xff] }
 0x115   :  { %866 = vst [vmem:[#allocation1 + $0x2] ss:$4 sm:$0xff] %v216_v12  ;;  %v224_v12 = vld [vmem:[%s7672_s0 + $0x47c] sm:$0xff] }
 0x116   :  { %867 = vst [vmem:[#allocation1 + $0x3] ss:$4 sm:$0xff] %v218_v25 }
 0x11d   :  { %v872_v25 = vld.sshfl [vmem:[#allocation1] sm:$0xff pattern:$0x73625140]  ;;  %v873_v30 = vld.sshfl [vmem:[#allocation1 + $0x8] sm:$0xff pattern:$0x73625140] }
 0x11e   :  { %v5685_v14 = vpack.c.bf16 %v872_v25, %v857_v15  ;;  %v5687_v16 = vpack.c.bf16 %v873_v30, %v858_v19  ;;  %v874_v33 = vld.sshfl [vmem:[#allocation1 + $0x10] sm:$0xff pattern:$0x73625140]  ;;  %v875_v48 = vld.sshfl [vmem:[#allocation1 + $0x18] sm:$0xff pattern:$0x73625140]  ;;  %v2152_v15 = vadd.f32 %v2151_v6, %v2063_v63  ;;  %v5701_v19 = vpop.f32.mrf.mxu2  ;;  %v5719_v63 = vpop.f32.mrf.mxu1 }
 0x11f   :  { %v5689_v49 = vpack.c.bf16 %v874_v33, %v859_v23  ;;  %v5691_v57 = vpack.c.bf16 %v875_v48, %v860_v24  ;;  %879 = vst [vmem:[#allocation1] ss:$4 sm:$0xff] %v220_v9  ;;  %v228_v23 = vld [vmem:[%s7672_s0 + $0x498] sm:$0xff]  ;;  %v230_v24 = vld [vmem:[%s7672_s0 + $0x4a6] sm:$0xff]  ;;  %v5712_v9 = vpop.f32.mrf.mxu3 }
 0x120   :  { %7784 = vst [vmem:[#allocation35_spill] sm:$0xff] %v5687_v16  ;;  %2091 = vmatmul.bf16.gmra.mxu0 %v5685_v14  ;;  %2180 = vmatmul.bf16.gmra.mxu1 %v5687_v16  ;;  %v234_v33 = vld [vmem:[%s7672_s0 + $0x4c2] sm:$0xff] }
 0x121   :  { %7785 = vst [vmem:[#allocation36_spill] sm:$0xff] %v5689_v49  ;;  %2269 = vmatmul.bf16.gmra.mxu2 %v5689_v49  ;;  %2358 = vmatmul.bf16.gmra.mxu3 %v5691_v57  ;;  %v5018_v49 = vld [vmem:[#allocation2 + $0x54] sm:$0xf]  ;;  %v4436_v16 = vld [vmem:[#allocation2 + $0x58] sm:$0xf0] }
 0x122   :  { %7786 = vst [vmem:[#allocation37_spill] sm:$0xff] %v5691_v57  ;;  %v4439_v50 = vor.u32 %v5018_v49, %v4436_v16 }
 0x123   :  { %880 = vst [vmem:[#allocation1 + $0x1] ss:$4 sm:$0xff] %v222_v11 }
 0x124   :  { %881 = vst [vmem:[#allocation1 + $0x2] ss:$4 sm:$0xff] %v224_v12  ;;  %2663 = vmatpush.bf16.msrb.mxu3 %v4439_v50 }
 0x125   :  { %882 = vst [vmem:[#allocation1 + $0x3] ss:$4 sm:$0xff] %v226_v54  ;;  %v5717_v54 = vpop.f32.mrf.mxu0 }
 0x126   :  { %7787 = vst [vmem:[#allocation38_spill] sm:$0xff] %v5701_v19  ;;  %v2240_v48 = vpop.f32.mrf.mxu2  ;;  %v238_v19 = vld [vmem:[%s7672_s0 + $0x4de] sm:$0xff] }
 0x127   :  { %7788 = vst [vmem:[#allocation39_spill] sm:$0xff] %v5712_v9  ;;  %v2241_v53 = vadd.f32 %v2240_v48, %v2152_v15  ;;  %v2329_v6 = vpop.f32.mrf.mxu3  ;;  %v236_v9 = vld [vmem:[%s7672_s0 + $0x4d0] sm:$0xff] }
 0x128   :  { %7789 = vst [vmem:[#allocation40_spill] sm:$0xff] %v5717_v54  ;;  %2664 = vmatpush.bf16.msrb.mxu3 %v4431_v39 }
 0x129   :  { %7790 = vst [vmem:[#allocation41_spill] sm:$0xff] %v5719_v63 }
 0x12c   :  { %v887_v11 = vld.sshfl [vmem:[#allocation1] sm:$0xff pattern:$0x73625140]  ;;  %v888_v12 = vld.sshfl [vmem:[#allocation1 + $0x8] sm:$0xff pattern:$0x73625140] }
 0x12d   :  { %v889_v25 = vld.sshfl [vmem:[#allocation1 + $0x10] sm:$0xff pattern:$0x73625140]  ;;  %v890_v30 = vld.sshfl [vmem:[#allocation1 + $0x18] sm:$0xff pattern:$0x73625140] }
 0x12e   :  { %894 = vst [vmem:[#allocation1] ss:$4 sm:$0xff] %v228_v23  ;;  %v240_v23 = vld [vmem:[%s7672_s0 + $0x4ec] sm:$0xff] }
 0x12f   :  { %895 = vst [vmem:[#allocation1 + $0x1] ss:$4 sm:$0xff] %v230_v24  ;;  %v5730_v24 = vadd.f32 %v2329_v6, %v2241_v53  ;;  %v248_v53 = vld [vmem:[%s7672_s0 + $0x524] sm:$0xff] }
 0x130   :  { %896 = vst [vmem:[#allocation1 + $0x2] ss:$4 sm:$0xff] %v232_v58 }
 0x131   :  { %897 = vst [vmem:[#allocation1 + $0x3] ss:$4 sm:$0xff] %v234_v33 }
 0x138   :  { %v902_v58 = vld.sshfl [vmem:[#allocation1] sm:$0xff pattern:$0x73625140]  ;;  %v903_v33 = vld.sshfl [vmem:[#allocation1 + $0x8] sm:$0xff pattern:$0x73625140] }
 0x139   :  { %v5732_v15 = vpack.c.bf16 %v902_v58, %v887_v11  ;;  %v5734_v48 = vpack.c.bf16 %v903_v33, %v888_v12  ;;  %v904_v63 = vld.sshfl [vmem:[#allocation1 + $0x10] sm:$0xff pattern:$0x73625140]  ;;  %v905_v54 = vld.sshfl [vmem:[#allocation1 + $0x18] sm:$0xff pattern:$0x73625140]  ;;  %v2067_v11 = vpop.f32.mrf.mxu0 }
 0x13a   :  { %v5736_v13 = vpack.c.bf16 %v904_v63, %v889_v25  ;;  %v5738_v52 = vpack.c.bf16 %v905_v54, %v890_v30  ;;  %909 = vst [vmem:[#allocation1] ss:$4 sm:$0xff] %v236_v9  ;;  %v2068_v12 = vadd.f32 %v2067_v11, %v5537_v20  ;;  %v2156_v25 = vpop.f32.mrf.mxu1  ;;  %v5748_v54 = vpop.f32.mrf.mxu2  ;;  %v244_v9 = vld [vmem:[%s7672_s0 + $0x508] sm:$0xff]  ;;  %v250_v33 = vld [vmem:[%s7672_s0 + $0x532] sm:$0xff] }
 0x13b   :  { %7791 = vst [vmem:[#allocation42_spill] sm:$0xff] %v5734_v48  ;;  %2096 = vmatmul.bf16.gmra.mxu0 %v5732_v15  ;;  %2185 = vmatmul.bf16.gmra.mxu1 %v5734_v48  ;;  %v5759_v63 = vpop.f32.mrf.mxu3  ;;  %v4658_v11 = vld [vmem:[#allocation2 + $0x210] sm:$0xf] }
 0x13c   :  { %7792 = vst [vmem:[#allocation43_spill] sm:$0xff] %v5736_v13  ;;  %2274 = vmatmul.bf16.gmra.mxu2 %v5736_v13  ;;  %2363 = vmatmul.bf16.gmra.mxu3 %v5738_v52  ;;  %v2157_v30 = vadd.f32 %v2156_v25, %v2068_v12  ;;  %v5075_v12 = vld [vmem:[#allocation2 + $0x214] sm:$0xf0]  ;;  %v4722_v25 = vld [vmem:[#allocation2 + $0x290] sm:$0xf] }
 0x13d   :  { %7793 = vst [vmem:[#allocation44_spill] sm:$0xff] %v5738_v52  ;;  %v4659_v52 = vor.u32 %v5075_v12, %v4658_v11 }
 0x13e   :  { %910 = vst [vmem:[#allocation1 + $0x1] ss:$4 sm:$0xff] %v238_v19  ;;  %v246_v19 = vld [vmem:[%s7672_s0 + $0x516] sm:$0xff] }
 0x13f   :  { %911 = vst [vmem:[#allocation1 + $0x2] ss:$4 sm:$0xff] %v240_v23  ;;  %2400 = vmatpush.bf16.msrb.mxu0 %v4659_v52  ;;  %v258_v52 = vld [vmem:[%s7672_s0 + $0x56a] sm:$0xff] }
 0x140   :  { %912 = vst [vmem:[#allocation1 + $0x3] ss:$4 sm:$0xff] %v242_v10 }
 0x141   :  { %7794 = vst [vmem:[#allocation45_spill] sm:$0xff] %v5748_v54  ;;  %v5764_v0 = vpop.f32.mrf.mxu0 }
 0x142   :  { %7795 = vst [vmem:[#allocation46_spill] sm:$0xff] %v5759_v63  ;;  %v2245_v54 = vpop.f32.mrf.mxu2  ;;  %v5091_v63 = vld [vmem:[#allocation2 + $0x294] sm:$0xf0]  ;;  %v5766_v48 = vpop.f32.mrf.mxu1 }
 0x143   :  { %7796 = vst [vmem:[#allocation47_spill] sm:$0xff] %v5764_v0  ;;  %v2246_v13 = vadd.f32 %v2245_v54, %v2157_v30  ;;  %v2334_v57 = vpop.f32.mrf.mxu3  ;;  %v4723_v51 = vor.u32 %v5091_v63, %v4722_v25 }
 0x144   :  { %7797 = vst [vmem:[#allocation48_spill] sm:$0xff] %v5766_v48 }
 0x145   :  { %v5777_v30 = vadd.f32 %v2334_v57, %v2246_v13  ;;  %2489 = vmatpush.bf16.msrb.mxu1 %v4723_v51 }
 0x147   :  { %v917_v10 = vld.sshfl [vmem:[#allocation1] sm:$0xff pattern:$0x73625140]  ;;  %v918_v6 = vld.sshfl [vmem:[#allocation1 + $0x8] sm:$0xff pattern:$0x73625140] }
 0x148   :  { %v919_v23 = vld.sshfl [vmem:[#allocation1 + $0x10] sm:$0xff pattern:$0x73625140]  ;;  %v920_v58 = vld.sshfl [vmem:[#allocation1 + $0x18] sm:$0xff pattern:$0x73625140] }
 0x149   :  { %924 = vst [vmem:[#allocation1] ss:$4 sm:$0xff] %v244_v9  ;;  %v252_v9 = vld [vmem:[%s7672_s0 + $0x540] sm:$0xff]  ;;  %v2072_v50 = vpop.f32.mrf.mxu0 }
 0x14a   :  { %925 = vst [vmem:[#allocation1 + $0x1] ss:$4 sm:$0xff] %v246_v19  ;;  %v254_v19 = vld [vmem:[%s7672_s0 + $0x54e] sm:$0xff]  ;;  %v2073_v51 = vadd.f32 %v2072_v50, %v5537_v20  ;;  %v2161_v13 = vpop.f32.mrf.mxu1 }
 0x14b   :  { %926 = vst [vmem:[#allocation1 + $0x2] ss:$4 sm:$0xff] %v248_v53  ;;  %v256_v53 = vld [vmem:[%s7672_s0 + $0x55c] sm:$0xff] }
 0x14c   :  { %927 = vst [vmem:[#allocation1 + $0x3] ss:$4 sm:$0xff] %v250_v33  ;;  %v2162_v57 = vadd.f32 %v2161_v13, %v2073_v51 }
 0x152   :  { %v5813_v51 = vpop.f32.mrf.mxu1 }
 0x153   :  { %v932_v54 = vld.sshfl [vmem:[#allocation1] sm:$0xff pattern:$0x73625140]  ;;  %v933_v33 = vld.sshfl [vmem:[#allocation1 + $0x8] sm:$0xff pattern:$0x73625140] }
 0x154   :  { %v5779_v16 = vpack.c.bf16 %v932_v54, %v917_v10  ;;  %v5781_v49 = vpack.c.bf16 %v933_v33, %v918_v6  ;;  %v934_v63 = vld.sshfl [vmem:[#allocation1 + $0x10] sm:$0xff pattern:$0x73625140]  ;;  %v935_v11 = vld.sshfl [vmem:[#allocation1 + $0x18] sm:$0xff pattern:$0x73625140]  ;;  %v5795_v10 = vpop.f32.mrf.mxu2 }
 0x155   :  { %v5783_v12 = vpack.c.bf16 %v934_v63, %v919_v23  ;;  %v5785_v25 = vpack.c.bf16 %v935_v11, %v920_v58  ;;  %939 = vst [vmem:[#allocation1] ss:$4 sm:$0xff] %v252_v9  ;;  %v260_v6 = vld [vmem:[%s7672_s0 + $0x578] sm:$0xff]  ;;  %v262_v23 = vld [vmem:[%s7672_s0 + $0x586] sm:$0xff]  ;;  %v5806_v9 = vpop.f32.mrf.mxu3 }
 0x156   :  { %7798 = vst [vmem:[#allocation49_spill] sm:$0xff] %v5781_v49  ;;  %2101 = vmatmul.bf16.gmra.mxu0 %v5779_v16  ;;  %2190 = vmatmul.bf16.gmra.mxu1 %v5781_v49  ;;  %v264_v58 = vld [vmem:[%s7672_s0 + $0x594] sm:$0xff]  ;;  %v266_v63 = vld [vmem:[%s7672_s0 + $0x5a2] sm:$0xff] }
 0x157   :  { %7799 = vst [vmem:[#allocation50_spill] sm:$0xff] %v5783_v12  ;;  %2279 = vmatmul.bf16.gmra.mxu2 %v5783_v12  ;;  %2368 = vmatmul.bf16.gmra.mxu3 %v5785_v25 }
 0x158   :  { %7800 = vst [vmem:[#allocation51_spill] sm:$0xff] %v5785_v25  ;;  %v274_v25 = vld [vmem:[%s7672_s0 + $0x5da] sm:$0xff] }
 0x159   :  { %940 = vst [vmem:[#allocation1 + $0x1] ss:$4 sm:$0xff] %v254_v19 }
 0x15a   :  { %941 = vst [vmem:[#allocation1 + $0x2] ss:$4 sm:$0xff] %v256_v53 }
 0x15b   :  { %942 = vst [vmem:[#allocation1 + $0x3] ss:$4 sm:$0xff] %v258_v52  ;;  %v5811_v52 = vpop.f32.mrf.mxu0 }
 0x15c   :  { %7801 = vst [vmem:[#allocation52_spill] sm:$0xff] %v5795_v10  ;;  %v2250_v11 = vpop.f32.mrf.mxu2  ;;  %v270_v10 = vld [vmem:[%s7672_s0 + $0x5be] sm:$0xff] }
 0x15d   :  { %7802 = vst [vmem:[#allocation53_spill] sm:$0xff] %v5806_v9  ;;  %v2251_v50 = vadd.f32 %v2250_v11, %v2162_v57  ;;  %v2339_v13 = vpop.f32.mrf.mxu3  ;;  %v268_v9 = vld [vmem:[%s7672_s0 + $0x5b0] sm:$0xff] }
 0x15e   :  { %7803 = vst [vmem:[#allocation54_spill] sm:$0xff] %v5811_v52 }
 0x15f   :  { %7804 = vst [vmem:[#allocation55_spill] sm:$0xff] %v5813_v51 }
 0x162   :  { %v947_v19 = vld.sshfl [vmem:[#allocation1] sm:$0xff pattern:$0x73625140]  ;;  %v948_v53 = vld.sshfl [vmem:[#allocation1 + $0x8] sm:$0xff pattern:$0x73625140] }
 0x163   :  { %v949_v54 = vld.sshfl [vmem:[#allocation1 + $0x10] sm:$0xff pattern:$0x73625140]  ;;  %v950_v33 = vld.sshfl [vmem:[#allocation1 + $0x18] sm:$0xff pattern:$0x73625140] }
 0x164   :  { %954 = vst [vmem:[#allocation1] ss:$4 sm:$0xff] %v260_v6  ;;  %v272_v6 = vld [vmem:[%s7672_s0 + $0x5cc] sm:$0xff] }
 0x165   :  { %955 = vst [vmem:[#allocation1 + $0x1] ss:$4 sm:$0xff] %v262_v23  ;;  %v5824_v23 = vadd.f32 %v2339_v13, %v2251_v50  ;;  %v280_v50 = vld [vmem:[%s7672_s0 + $0x604] sm:$0xff] }
 0x166   :  { %956 = vst [vmem:[#allocation1 + $0x2] ss:$4 sm:$0xff] %v264_v58 }
 0x167   :  { %957 = vst [vmem:[#allocation1 + $0x3] ss:$4 sm:$0xff] %v266_v63 }
 0x16e   :  { %v962_v58 = vld.sshfl [vmem:[#allocation1] sm:$0xff pattern:$0x73625140]  ;;  %v963_v63 = vld.sshfl [vmem:[#allocation1 + $0x8] sm:$0xff pattern:$0x73625140] }
 0x16f   :  { %v5826_v57 = vpack.c.bf16 %v962_v58, %v947_v19  ;;  %v5828_v11 = vpack.c.bf16 %v963_v63, %v948_v53  ;;  %v964_v51 = vld.sshfl [vmem:[#allocation1 + $0x10] sm:$0xff pattern:$0x73625140]  ;;  %v965_v52 = vld.sshfl [vmem:[#allocation1 + $0x18] sm:$0xff pattern:$0x73625140]  ;;  %v2077_v19 = vpop.f32.mrf.mxu0 }
 0x170   :  { %v5830_v48 = vpack.c.bf16 %v964_v51, %v949_v54  ;;  %v5832_v0 = vpack.c.bf16 %v965_v52, %v950_v33  ;;  %969 = vst [vmem:[#allocation1] ss:$4 sm:$0xff] %v268_v9  ;;  %v2078_v53 = vadd.f32 %v2077_v19, %v5537_v20  ;;  %v2166_v54 = vpop.f32.mrf.mxu1  ;;  %v5842_v52 = vpop.f32.mrf.mxu2  ;;  %v276_v9 = vld [vmem:[%s7672_s0 + $0x5e8] sm:$0xff]  ;;  %v282_v63 = vld [vmem:[%s7672_s0 + $0x612] sm:$0xff] }
 0x171   :  { %7805 = vst [vmem:[#allocation56_spill] sm:$0xff] %v5828_v11  ;;  %2106 = vmatmul.bf16.gmra.mxu0 %v5826_v57  ;;  %2195 = vmatmul.bf16.gmra.mxu1 %v5828_v11  ;;  %v5853_v51 = vpop.f32.mrf.mxu3  ;;  %v4650_v19 = vld [vmem:[#allocation2 + $0x200] sm:$0xf] }
 0x172   :  { %7806 = vst [vmem:[#allocation57_spill] sm:$0xff] %v5830_v48  ;;  %2284 = vmatmul.bf16.gmra.mxu2 %v5830_v48  ;;  %2373 = vmatmul.bf16.gmra.mxu3 %v5832_v0  ;;  %v2167_v33 = vadd.f32 %v2166_v54, %v2078_v53  ;;  %v5073_v53 = vld [vmem:[#allocation2 + $0x204] sm:$0xf0]  ;;  %v4714_v54 = vld [vmem:[#allocation2 + $0x280] sm:$0xf] }
 0x173   :  { %7807 = vst [vmem:[#allocation58_spill] sm:$0xff] %v5832_v0  ;;  %v4651_v48 = vor.u32 %v5073_v53, %v4650_v19 }
 0x174   :  { %970 = vst [vmem:[#allocation1 + $0x1] ss:$4 sm:$0xff] %v270_v10  ;;  %v278_v10 = vld [vmem:[%s7672_s0 + $0x5f6] sm:$0xff] }
 0x175   :  { %971 = vst [vmem:[#allocation1 + $0x2] ss:$4 sm:$0xff] %v272_v6  ;;  %2401 = vmatpush.bf16.msrb.mxu0 %v4651_v48  ;;  %v290_v48 = vld [vmem:[%s7672_s0 + $0x64a] sm:$0xff] }
 0x176   :  { %972 = vst [vmem:[#allocation1 + $0x3] ss:$4 sm:$0xff] %v274_v25 }
 0x177   :  { %7808 = vst [vmem:[#allocation59_spill] sm:$0xff] %v5842_v52  ;;  %v5858_v0 = vpop.f32.mrf.mxu0 }
 0x178   :  { %7809 = vst [vmem:[#allocation60_spill] sm:$0xff] %v5853_v51  ;;  %v2255_v52 = vpop.f32.mrf.mxu2  ;;  %v5089_v51 = vld [vmem:[#allocation2 + $0x284] sm:$0xf0]  ;;  %v5860_v12 = vpop.f32.mrf.mxu1 }
 0x179   :  { %7810 = vst [vmem:[#allocation61_spill] sm:$0xff] %v5858_v0  ;;  %v2256_v11 = vadd.f32 %v2255_v52, %v2167_v33  ;;  %v2344_v49 = vpop.f32.mrf.mxu3  ;;  %v4715_v46 = vor.u32 %v5089_v51, %v4714_v54  ;;  %v300_v0 = vld [vmem:[%s7672_s0 + $0x690] sm:$0xff] }
 0x17a   :  { %7811 = vst [vmem:[#allocation62_spill] sm:$0xff] %v5860_v12  ;;  %v4412_v12 = vld [vmem:[#allocation2 + $0x28] sm:$0xf0] }
 0x17b   :  { %v5871_v33 = vadd.f32 %v2344_v49, %v2256_v11  ;;  %2490 = vmatpush.bf16.msrb.mxu1 %v4715_v46 }
 0x17d   :  { %v977_v25 = vld.sshfl [vmem:[#allocation1] sm:$0xff pattern:$0x73625140]  ;;  %v978_v13 = vld.sshfl [vmem:[#allocation1 + $0x8] sm:$0xff pattern:$0x73625140] }
 0x17e   :  { %v979_v6 = vld.sshfl [vmem:[#allocation1 + $0x10] sm:$0xff pattern:$0x73625140]  ;;  %v980_v58 = vld.sshfl [vmem:[#allocation1 + $0x18] sm:$0xff pattern:$0x73625140] }
 0x17f   :  { %984 = vst [vmem:[#allocation1] ss:$4 sm:$0xff] %v276_v9  ;;  %v284_v9 = vld [vmem:[%s7672_s0 + $0x620] sm:$0xff]  ;;  %v2082_v39 = vpop.f32.mrf.mxu0 }
 0x180   :  { %985 = vst [vmem:[#allocation1 + $0x1] ss:$4 sm:$0xff] %v278_v10  ;;  %v286_v10 = vld [vmem:[%s7672_s0 + $0x62e] sm:$0xff]  ;;  %v2083_v46 = vadd.f32 %v2082_v39, %v5537_v20  ;;  %v2171_v49 = vpop.f32.mrf.mxu1 }
 0x181   :  { %986 = vst [vmem:[#allocation1 + $0x2] ss:$4 sm:$0xff] %v280_v50  ;;  %v288_v50 = vld [vmem:[%s7672_s0 + $0x63c] sm:$0xff] }
 0x182   :  { %987 = vst [vmem:[#allocation1 + $0x3] ss:$4 sm:$0xff] %v282_v63  ;;  %v2172_v11 = vadd.f32 %v2171_v49, %v2083_v46  ;;  %v5014_v46 = vld [vmem:[#allocation2 + $0x34] sm:$0xf]  ;;  %v4420_v49 = vld [vmem:[#allocation2 + $0x38] sm:$0xf0] }
 0x189   :  { %v992_v52 = vld.sshfl [vmem:[#allocation1] sm:$0xff pattern:$0x73625140]  ;;  %v993_v63 = vld.sshfl [vmem:[#allocation1 + $0x8] sm:$0xff pattern:$0x73625140] }
 0x18a   :  { %v5873_v47 = vpack.c.bf16 %v992_v52, %v977_v25  ;;  %v5875_v45 = vpack.c.bf16 %v993_v63, %v978_v13  ;;  %v994_v51 = vld.sshfl [vmem:[#allocation1 + $0x10] sm:$0xff pattern:$0x73625140]  ;;  %v995_v19 = vld.sshfl [vmem:[#allocation1 + $0x18] sm:$0xff pattern:$0x73625140]  ;;  %v5889_v25 = vpop.f32.mrf.mxu2 }
 0x18b   :  { %v5877_v53 = vpack.c.bf16 %v994_v51, %v979_v6  ;;  %v5879_v54 = vpack.c.bf16 %v995_v19, %v980_v58  ;;  %999 = vst [vmem:[#allocation1] ss:$4 sm:$0xff] %v284_v9  ;;  %v292_v13 = vld [vmem:[%s7672_s0 + $0x658] sm:$0xff]  ;;  %v294_v6 = vld [vmem:[%s7672_s0 + $0x666] sm:$0xff]  ;;  %v5900_v9 = vpop.f32.mrf.mxu3 }
 0x18c   :  { %7812 = vst [vmem:[#allocation63_spill] sm:$0xff] %v5875_v45  ;;  %2111 = vmatmul.bf16.gmra.mxu0 %v5873_v47  ;;  %2200 = vmatmul.bf16.gmra.mxu1 %v5875_v45  ;;  %v296_v58 = vld [vmem:[%s7672_s0 + $0x674] sm:$0xff]  ;;  %v298_v51 = vld [vmem:[%s7672_s0 + $0x682] sm:$0xff] }
 0x18d   :  { %7813 = vst [vmem:[#allocation64_spill] sm:$0xff] %v5877_v53  ;;  %2289 = vmatmul.bf16.gmra.mxu2 %v5877_v53  ;;  %2378 = vmatmul.bf16.gmra.mxu3 %v5879_v54  ;;  %v61_v19 = vld [vmem:[%s7672_s0 + $0x8] sm:$0x3f] }
 0x18e   :  { %7814 = vst [vmem:[#allocation65_spill] sm:$0xff] %v5879_v54 }
 0x18f   :  { %1000 = vst [vmem:[#allocation1 + $0x1] ss:$4 sm:$0xff] %v286_v10 }
 0x190   :  { %1001 = vst [vmem:[#allocation1 + $0x2] ss:$4 sm:$0xff] %v288_v50 }
 0x191   :  { %1002 = vst [vmem:[#allocation1 + $0x3] ss:$4 sm:$0xff] %v290_v48  ;;  %v63_v48 = vld [vmem:[%s7672_s0 + $0x16] sm:$0x3f] }
 0x192   :  { %7815 = vst [vmem:[#allocation66_spill] sm:$0xff] %v5889_v25  ;;  %v2260_v39 = vpop.f32.mrf.mxu2 }
 0x193   :  { %7816 = vst [vmem:[#allocation67_spill] sm:$0xff] %v5900_v9  ;;  %v5911_v9 = vpop.f32.mrf.mxu0  ;;  %v2261_v25 = vadd.f32 %v2260_v39, %v2172_v11 }
 0x194   :  { %580 = vst [vmem:[#allocation1 + $0x20] ss:$4 sm:$0xff] %v61_v19  ;;  %v302_v19 = vld [vmem:[%s7672_s0 + $0x69e] sm:$0xff] }
 0x195   :  { %582 = vst [vmem:[#allocation1 + $0x21] ss:$4 sm:$0xff] %v63_v48  ;;  %v304_v48 = vld [vmem:[%s7672_s0 + $0x6ac] sm:$0xff] }
 0x196   :  { %7817 = vst [vmem:[#allocation68_spill] sm:$0xff] %v5911_v9 }
 0x198   :  { %v1007_v10 = vld.sshfl [vmem:[#allocation1] sm:$0xff pattern:$0x73625140]  ;;  %v1008_v50 = vld.sshfl [vmem:[#allocation1 + $0x8] sm:$0xff pattern:$0x73625140] }
 0x199   :  { %v1009_v52 = vld.sshfl [vmem:[#allocation1 + $0x10] sm:$0xff pattern:$0x73625140]  ;;  %v1010_v63 = vld.sshfl [vmem:[#allocation1 + $0x18] sm:$0xff pattern:$0x73625140] }
 0x19a   :  { %1014 = vst [vmem:[#allocation1] ss:$4 sm:$0xff] %v292_v13  ;;  %v4423_v13 = vor.u32 %v5014_v46, %v4420_v49  ;;  %v306_v49 = vld [vmem:[%s7672_s0 + $0x6ba] sm:$0xff] }
 0x19b   :  { %1015 = vst [vmem:[#allocation1 + $0x1] ss:$4 sm:$0xff] %v294_v6  ;;  %v5913_v6 = vpop.f32.mrf.mxu1 }
 0x19c   :  { %1016 = vst [vmem:[#allocation1 + $0x2] ss:$4 sm:$0xff] %v296_v58  ;;  %v2349_v58 = vpop.f32.mrf.mxu3  ;;  %2665 = vmatpush.bf16.msrb.mxu3 %v4423_v13  ;;  %v4404_v13 = vld [vmem:[#allocation2 + $0x18] sm:$0xf0] }
 0x19d   :  { %1017 = vst [vmem:[#allocation1 + $0x3] ss:$4 sm:$0xff] %v298_v51  ;;  %v5012_v51 = vld [vmem:[#allocation2 + $0x24] sm:$0xf]  ;;  %v5924_v11 = vadd.f32 %v2349_v58, %v2261_v25  ;;  %v5010_v25 = vld [vmem:[#allocation2 + $0x14] sm:$0xf] }
 0x19e   :  { %7818 = vst [vmem:[#allocation69_spill] sm:$0xff] %v5913_v6  ;;  %v4415_v45 = vor.u32 %v5012_v51, %v4412_v12  ;;  %v5944_v12 = vpop.f32.mrf.mxu2  ;;  %v5008_v58 = vld [vmem:[#allocation2 + $0x4] sm:$0xf]  ;;  %v4396_v51 = vld [vmem:[#allocation2 + $0x8] sm:$0xf0] }
 0x19f   :  { %7822 = vst [vmem:[#allocation73_spill] sm:$0xff] %v5944_v12 }
 0x1a0   :  { %2666 = vmatpush.bf16.msrb.mxu3 %v4415_v45  ;;  %v310_v45 = vld [vmem:[%s7672_s0 + $0x6d6] sm:$0xff] }
 0x1a4   :  { %v1022_v39 = vld.sshfl [vmem:[#allocation1] sm:$0xff pattern:$0x73625140]  ;;  %v1023_v46 = vld.sshfl [vmem:[#allocation1 + $0x8] sm:$0xff pattern:$0x73625140] }
 0x1a5   :  { %v5929_v6 = vpack.c.bf16 %v1022_v39, %v1007_v10  ;;  %v5931_v9 = vpack.c.bf16 %v1023_v46, %v1008_v50  ;;  %v1024_v54 = vld.sshfl [vmem:[#allocation1 + $0x10] sm:$0xff pattern:$0x73625140]  ;;  %v1025_v53 = vld.sshfl [vmem:[#allocation1 + $0x18] sm:$0xff pattern:$0x73625140] }
 0x1a6   :  { %v5933_v44 = vpack.c.bf16 %v1024_v54, %v1009_v52  ;;  %v5935_v43 = vpack.c.bf16 %v1025_v53, %v1010_v63  ;;  %1029 = vst [vmem:[#allocation1] ss:$4 sm:$0xff] %v300_v0  ;;  %v65_v10 = vld [vmem:[%s7672_s0 + $0x24] sm:$0x3f]  ;;  %v2087_v53 = vpop.f32.mrf.mxu0  ;;  %v67_v0 = vld [vmem:[%s7672_s0 + $0x32] sm:$0x3f]  ;;  %v4407_v54 = vor.u32 %v5010_v25, %v4404_v13  ;;  %v2176_v52 = vpop.f32.mrf.mxu1 }
 0x1a7   :  { %7819 = vst [vmem:[#allocation70_spill] sm:$0xff] %v5931_v9  ;;  %2116 = vmatmul.bf16.gmra.mxu0 %v5929_v6  ;;  %2205 = vmatmul.bf16.gmra.mxu1 %v5931_v9  ;;  %v2088_v50 = vadd.f32 %v2087_v53, %v5537_v20  ;;  %v5950_v63 = vpop.f32.mrf.mxu3  ;;  %v308_v39 = vld [vmem:[%s7672_s0 + $0x6c8] sm:$0xff]  ;;  %v2265_v13 = vpop.f32.mrf.mxu2  ;;  %v5054_v9 = vld [vmem:[#allocation2 + $0x174] sm:$0xf] }
 0x1a8   :  { %7820 = vst [vmem:[#allocation71_spill] sm:$0xff] %v5933_v44  ;;  %2294 = vmatmul.bf16.gmra.mxu2 %v5933_v44  ;;  %2383 = vmatmul.bf16.gmra.mxu3 %v5935_v43  ;;  %v312_v46 = vld [vmem:[%s7672_s0 + $0x6e4] sm:$0xff] }
 0x1a9   :  { %7821 = vst [vmem:[#allocation72_spill] sm:$0xff] %v5935_v43  ;;  %2667 = vmatpush.bf16.msrb.mxu3 %v4407_v54  ;;  %v69_v54 = vld [vmem:[%s7672_s0 + $0x40] sm:$0x3f] }
 0x1aa   :  { %1030 = vst [vmem:[#allocation1 + $0x1] ss:$4 sm:$0xff] %v302_v19  ;;  %v2177_v19 = vadd.f32 %v2176_v52, %v2088_v50  ;;  %v4516_v43 = vld [vmem:[#allocation2 + $0xf8] sm:$0xf0] }
 0x1ab   :  { %1031 = vst [vmem:[#allocation1 + $0x2] ss:$4 sm:$0xff] %v304_v48  ;;  %v4399_v48 = vor.u32 %v5008_v58, %v4396_v51  ;;  %v314_v51 = vld [vmem:[%s7672_s0 + $0x6f2] sm:$0xff] }
 0x1ac   :  { %1032 = vst [vmem:[#allocation1 + $0x3] ss:$4 sm:$0xff] %v306_v49  ;;  %v2266_v50 = vadd.f32 %v2265_v13, %v2177_v19  ;;  %v75_v13 = vld [vmem:[%s7672_s0 + $0x6a] sm:$0x3f] }
 0x1ad   :  { %7823 = vst [vmem:[#allocation74_spill] sm:$0xff] %v5950_v63  ;;  %2668 = vmatpush.bf16.msrb.mxu3 %v4399_v48  ;;  %v73_v48 = vld [vmem:[%s7672_s0 + $0x5c] sm:$0x3f] }
 0x1ae   :  { %584 = vst [vmem:[#allocation1 + $0x22] ss:$4 sm:$0xff] %v65_v10  ;;  %v5961_v10 = vpop.f32.mrf.mxu0  ;;  %v5966_v52 = vpop.f32.mrf.mxu1 }
 0x1af   :  { %586 = vst [vmem:[#allocation1 + $0x23] ss:$4 sm:$0xff] %v67_v0  ;;  %v2354_v58 = vpop.f32.mrf.mxu3  ;;  %v5982_v2 = vpop.f32.mrf.mxu2 }
 0x1b0   :  { %7824 = vst [vmem:[#allocation75_spill] sm:$0xff] %v5961_v10  ;;  %v71_v10 = vld [vmem:[%s7672_s0 + $0x4e] sm:$0x3f]  ;;  %v5977_v19 = vadd.f32 %v2354_v58, %v2266_v50 }
 0x1b1   :  { %7825 = vst [vmem:[#allocation76_spill] sm:$0xff] %v5966_v52 }
 0x1b2   :  { %7826 = vst [vmem:[#allocation77_spill] sm:$0xff] %v5982_v2 }
 0x1b3   :  { %v1037_v49 = vld.sshfl [vmem:[#allocation1] sm:$0xff pattern:$0x73625140]  ;;  %v1038_v25 = vld.sshfl [vmem:[#allocation1 + $0x8] sm:$0xff pattern:$0x73625140] }
 0x1b4   :  { %v1039_v53 = vld.sshfl [vmem:[#allocation1 + $0x10] sm:$0xff pattern:$0x73625140]  ;;  %v1040_v0 = vld.sshfl [vmem:[#allocation1 + $0x18] sm:$0xff pattern:$0x73625140] }
 0x1b5   :  { %1044 = vst [vmem:[#allocation1] ss:$4 sm:$0xff] %v308_v39  ;;  %v5038_v39 = vld [vmem:[#allocation2 + $0xf4] sm:$0xf] }
 0x1b6   :  { %v591_v63 = vld.sshfl [vmem:[#allocation1 + $0x20] sm:$0xff pattern:$0x73625140]  ;;  %1045 = vst [vmem:[#allocation1 + $0x1] ss:$4 sm:$0xff] %v310_v45  ;;  %v4519_v44 = vor.u32 %v5038_v39, %v4516_v43  ;;  %v2092_v50 = vpop.f32.mrf.mxu0  ;;  %v2181_v58 = vpop.f32.mrf.mxu1 }
 0x1b7   :  { %v592_v12 = vld.sshfl [vmem:[#allocation1 + $0x28] sm:$0xff pattern:$0x73625140]  ;;  %1046 = vst [vmem:[#allocation1 + $0x2] ss:$4 sm:$0xff] %v312_v46  ;;  %v2093_v46 = vadd.f32 %v2092_v50, %v5537_v20  ;;  %v5985_v1 = vpop.f32.mrf.mxu3 }
 0x1b8   :  { %v593_v52 = vld.sshfl [vmem:[#allocation1 + $0x30] sm:$0xff pattern:$0x73625140]  ;;  %1047 = vst [vmem:[#allocation1 + $0x3] ss:$4 sm:$0xff] %v314_v51  ;;  %2750 = vmatpush.bf16.msra.mxu0 %v4519_v44 }
 0x1b9   :  { %598 = vst [vmem:[#allocation1 + $0x20] ss:$4 sm:$0xff] %v69_v54  ;;  %v4580_v45 = vld [vmem:[#allocation2 + $0x178] sm:$0xf0]  ;;  %v2182_v51 = vadd.f32 %v2181_v58, %v2093_v46 }
 0x1ba   :  { %599 = vst [vmem:[#allocation1 + $0x21] ss:$4 sm:$0xff] %v71_v10  ;;  %v4583_v35 = vor.u32 %v5054_v9, %v4580_v45  ;;  %v81_v45 = vld [vmem:[%s7672_s0 + $0x94] sm:$0x3f] }
 0x1bb   :  { %600 = vst [vmem:[#allocation1 + $0x22] ss:$4 sm:$0xff] %v73_v48 }
 0x1bc   :  { %601 = vst [vmem:[#allocation1 + $0x23] ss:$4 sm:$0xff] %v75_v13  ;;  %2839 = vmatpush.bf16.msra.mxu1 %v4583_v35  ;;  %v77_v35 = vld [vmem:[%s7672_s0 + $0x78] sm:$0x3f] }
 0x1bd   :  { %7827 = vst [vmem:[#allocation78_spill] sm:$0xff] %v5985_v1 }
 0x1be   :  { %v6010_v46 = vpop.f32.mrf.mxu1 }
 0x1bf   :  { %v1052_v62 = vld.sshfl [vmem:[#allocation1] sm:$0xff pattern:$0x73625140]  ;;  %v1053_v54 = vld.sshfl [vmem:[#allocation1 + $0x8] sm:$0xff pattern:$0x73625140]  ;;  %v2359_v58 = vpop.f32.mrf.mxu3 }
 0x1c0   :  { %v5987_v43 = vpack.c.bf16 %v1052_v62, %v1037_v49  ;;  %v5989_v39 = vpack.c.bf16 %v1053_v54, %v1038_v25  ;;  %v1054_v9 = vld.sshfl [vmem:[#allocation1 + $0x10] sm:$0xff pattern:$0x73625140]  ;;  %v1055_v10 = vld.sshfl [vmem:[#allocation1 + $0x18] sm:$0xff pattern:$0x73625140] }
 0x1c1   :  { %v5991_v44 = vpack.c.bf16 %v1054_v9, %v1039_v53  ;;  %v5993_v48 = vpack.c.bf16 %v1055_v10, %v1040_v0  ;;  %v79_v62 = vld [vmem:[%s7672_s0 + $0x86] sm:$0x3f]  ;;  %v2270_v53 = vpop.f32.mrf.mxu2  ;;  %v6005_v0 = vpop.f32.mrf.mxu0  ;;  %7832 = vst [vmem:[#allocation83_spill] sm:$0xff] %v6010_v46  ;;  %v85_v46 = vld [vmem:[%s7672_s0 + $0xb0] sm:$0x3f] }
 0x1c2   :  { %7828 = vst [vmem:[#allocation79_spill] sm:$0xff] %v5989_v39  ;;  %2121 = vmatmul.bf16.gmra.mxu0 %v5987_v43  ;;  %2210 = vmatmul.bf16.gmra.mxu1 %v5989_v39  ;;  %v2271_v50 = vadd.f32 %v2270_v53, %v2182_v51  ;;  %v83_v54 = vld [vmem:[%s7672_s0 + $0xa2] sm:$0x3f]  ;;  %v4556_v39 = vld [vmem:[#allocation2 + $0x148] sm:$0xf0] }
 0x1c3   :  { %7829 = vst [vmem:[#allocation80_spill] sm:$0xff] %v5991_v44  ;;  %2299 = vmatmul.bf16.gmra.mxu2 %v5991_v44  ;;  %2388 = vmatmul.bf16.gmra.mxu3 %v5993_v48  ;;  %v606_v49 = vld.sshfl [vmem:[#allocation1 + $0x20] sm:$0xff pattern:$0x73625140] }
 0x1c4   :  { %7830 = vst [vmem:[#allocation81_spill] sm:$0xff] %v5993_v48  ;;  %v607_v25 = vld.sshfl [vmem:[#allocation1 + $0x28] sm:$0xff pattern:$0x73625140]  ;;  %v6015_v9 = vadd.f32 %v2359_v58, %v2271_v50  ;;  %v6020_v51 = vpack.c.bf16 %v606_v49, %v591_v63  ;;  %v91_v49 = vld [vmem:[%s7672_s0 + $0xda] sm:$0x3f] }
 0x1c5   :  { %7831 = vst [vmem:[#allocation82_spill] sm:$0xff] %v6005_v0  ;;  %v608_v13 = vld.sshfl [vmem:[#allocation1 + $0x30] sm:$0xff pattern:$0x73625140]  ;;  %v6022_v53 = vpack.c.bf16 %v607_v25, %v592_v12  ;;  %v5052_v25 = vld [vmem:[#allocation2 + $0x164] sm:$0xf] }
 0x1c6   :  { %613 = vst [vmem:[#allocation1 + $0x20] ss:$4 sm:$0xff] %v77_v35  ;;  %v2186_v2 = vpop.f32.mrf.mxu1  ;;  %v87_v35 = vld [vmem:[%s7672_s0 + $0xbe] sm:$0x3f]  ;;  %v6032_v50 = vpack.c.bf16 %v608_v13, %v593_v52  ;;  %v89_v12 = vld [vmem:[%s7672_s0 + $0xcc] sm:$0x3f] }
 0x1c7   :  { %614 = vst [vmem:[#allocation1 + $0x21] ss:$4 sm:$0xff] %v79_v62  ;;  %v4508_v52 = vld [vmem:[#allocation2 + $0xe8] sm:$0xf0] }
 0x1c8   :  { %615 = vst [vmem:[#allocation1 + $0x22] ss:$4 sm:$0xff] %v81_v45  ;;  %v6030_v45 = vpop.f32.mrf.mxu3 }
 0x1c9   :  { %616 = vst [vmem:[#allocation1 + $0x23] ss:$4 sm:$0xff] %v83_v54  ;;  %v2097_v10 = vpop.f32.mrf.mxu0  ;;  %v6018_v1 = vpop.f32.mrf.mxu2 }
 0x1ca   :  { %v2098_v0 = vadd.f32 %v2097_v10, %v5537_v20  ;;  %7833 = vst [vmem:[#allocation84_spill] sm:$0xff] %v6018_v1 }
 0x1cb   :  { %7834 = vst [vmem:[#allocation85_spill] sm:$0xff] %v6022_v53 }
 0x1cc   :  { %v2187_v62 = vadd.f32 %v2186_v2, %v2098_v0  ;;  %7835 = vst [vmem:[#allocation86_spill] sm:$0xff] %v6030_v45  ;;  %v5036_v2 = vld [vmem:[#allocation2 + $0xe4] sm:$0xf] }
 0x1cd   :  { %7836 = vst [vmem:[#allocation87_spill] sm:$0xff] %v6032_v50  ;;  %v4511_v10 = vor.u32 %v5036_v2, %v4508_v52  ;;  %v99_v52 = vld [vmem:[%s7672_s0 + $0x112] sm:$0x3f] }
 0x1ce   :  { %v6047_v1 = vpop.f32.mrf.mxu1 }
 0x1cf   :  { %7838 = vst [vmem:[#allocation89_spill] sm:$0xff] %v6047_v1  ;;  %2751 = vmatpush.bf16.msra.mxu0 %v4511_v10 }
 0x1d0   :  { %v621_v58 = vld.sshfl [vmem:[#allocation1 + $0x20] sm:$0xff pattern:$0x73625140]  ;;  %v622_v54 = vld.sshfl [vmem:[#allocation1 + $0x28] sm:$0xff pattern:$0x73625140] }
 0x1d1   :  { %v623_v63 = vld.sshfl [vmem:[#allocation1 + $0x30] sm:$0xff pattern:$0x73625140]  ;;  %v2275_v0 = vpop.f32.mrf.mxu2  ;;  %v6045_v13 = vpop.f32.mrf.mxu0 }
 0x1d2   :  { %628 = vst [vmem:[#allocation1 + $0x20] ss:$4 sm:$0xff] %v85_v46  ;;  %2402 = vmatmul.bf16.vlgmr.msrb.gmra.mxu0 %v6020_v51  ;;  %2491 = vmatmul.bf16.vlgmr.msrb.gmra.mxu1 %v6022_v53  ;;  %v4572_v46 = vld [vmem:[#allocation2 + $0x168] sm:$0xf0]  ;;  %v2276_v45 = vadd.f32 %v2275_v0, %v2187_v62  ;;  %v2364_v53 = vpop.f32.mrf.mxu3  ;;  %v97_v62 = vld [vmem:[%s7672_s0 + $0x104] sm:$0x3f] }
 0x1d3   :  { %629 = vst [vmem:[#allocation1 + $0x21] ss:$4 sm:$0xff] %v87_v35  ;;  %4784 = vmatmul.msk.bf16.vlgmr.msrb.gmra.mxu2 %vm1989_vm0, %v6032_v50  ;;  %2669 = vmatmul.bf16.vlgmr.msrb.gmra.mxu3 %v5327_v55  ;;  %v4575_v35 = vor.u32 %v5052_v25, %v4572_v46  ;;  %v93_v50 = vld [vmem:[%s7672_s0 + $0xe8] sm:$0x3f]  ;;  %v95_v55 = vld [vmem:[%s7672_s0 + $0xf6] sm:$0x3f] }
 0x1d4   :  { %630 = vst [vmem:[#allocation1 + $0x22] ss:$4 sm:$0xff] %v89_v12  ;;  %v6055_v12 = vadd.f32 %v2364_v53, %v2276_v45 }
 0x1d5   :  { %631 = vst [vmem:[#allocation1 + $0x23] ss:$4 sm:$0xff] %v91_v49  ;;  %2840 = vmatpush.bf16.msra.mxu1 %v4575_v35 }
 0x1d6   :  { %7837 = vst [vmem:[#allocation88_spill] sm:$0xff] %v6045_v13  ;;  %v2191_v46 = vpop.f32.mrf.mxu1 }
 0x1d9   :  { %v2102_v45 = vpop.f32.mrf.mxu0 }
 0x1da   :  { %v2103_v10 = vadd.f32 %v2102_v45, %v5537_v20 }
 0x1dc   :  { %v636_v49 = vld.sshfl [vmem:[#allocation1 + $0x20] sm:$0xff pattern:$0x73625140]  ;;  %v637_v13 = vld.sshfl [vmem:[#allocation1 + $0x28] sm:$0xff pattern:$0x73625140]  ;;  %v2192_v35 = vadd.f32 %v2191_v46, %v2103_v10 }
 0x1dd   :  { %v638_v2 = vld.sshfl [vmem:[#allocation1 + $0x30] sm:$0xff pattern:$0x73625140]  ;;  %v6063_v25 = vpack.c.bf16 %v636_v49, %v621_v58  ;;  %v6065_v0 = vpack.c.bf16 %v637_v13, %v622_v54  ;;  %v101_v58 = vld [vmem:[%s7672_s0 + $0x120] sm:$0x3f] }
 0x1de   :  { %643 = vst [vmem:[#allocation1 + $0x20] ss:$4 sm:$0xff] %v93_v50  ;;  %v6067_v53 = vpack.c.bf16 %v638_v2, %v623_v63  ;;  %v6075_v50 = vpop.f32.mrf.mxu2  ;;  %v103_v54 = vld [vmem:[%s7672_s0 + $0x12e] sm:$0x3f]  ;;  %v6083_v63 = vpop.f32.mrf.mxu3  ;;  %v105_v49 = vld [vmem:[%s7672_s0 + $0x13c] sm:$0x3f] }
 0x1df   :  { %7839 = vst [vmem:[#allocation90_spill] sm:$0xff] %v6065_v0  ;;  %v6093_v10 = vpop.f32.mrf.mxu1 }
 0x1e0   :  { %644 = vst [vmem:[#allocation1 + $0x21] ss:$4 sm:$0xff] %v95_v55 }
 0x1e1   :  { %7840 = vst [vmem:[#allocation91_spill] sm:$0xff] %v6067_v53 }
 0x1e2   :  { %645 = vst [vmem:[#allocation1 + $0x22] ss:$4 sm:$0xff] %v97_v62  ;;  %2407 = vmatmul.bf16.gmra.mxu0 %v6063_v25  ;;  %2496 = vmatmul.bf16.gmra.mxu1 %v6065_v0 }
 0x1e3   :  { %646 = vst [vmem:[#allocation1 + $0x23] ss:$4 sm:$0xff] %v99_v52  ;;  %4785 = vmatmul.msk.bf16.gmra.mxu2 %vm1989_vm0, %v6067_v53  ;;  %2674 = vmatmul.bf16.gmra.mxu3 %v5363_v17  ;;  %v107_v17 = vld [vmem:[%s7672_s0 + $0x14a] sm:$0x3f]  ;;  %v6091_v52 = vpop.f32.mrf.mxu0 }
 0x1e4   :  { %7841 = vst [vmem:[#allocation92_spill] sm:$0xff] %v6075_v50  ;;  %v111_v50 = vld [vmem:[%s7672_s0 + $0x166] sm:$0x3f] }
 0x1e5   :  { %7842 = vst [vmem:[#allocation93_spill] sm:$0xff] %v6083_v63  ;;  %v109_v63 = vld [vmem:[%s7672_s0 + $0x158] sm:$0x3f] }
 0x1e6   :  { %v2280_v62 = vpop.f32.mrf.mxu2  ;;  %7843 = vst [vmem:[#allocation94_spill] sm:$0xff] %v6091_v52  ;;  %v2369_v46 = vpop.f32.mrf.mxu3 }
 0x1e7   :  { %v2281_v45 = vadd.f32 %v2280_v62, %v2192_v35  ;;  %7844 = vst [vmem:[#allocation95_spill] sm:$0xff] %v6093_v10  ;;  %v113_v62 = vld [vmem:[%s7672_s0 + $0x174] sm:$0x3f] }
 0x1e9   :  { %v6101_v1 = vadd.f32 %v2369_v46, %v2281_v45  ;;  %v115_v45 = vld [vmem:[%s7672_s0 + $0x182] sm:$0x3f] }
 0x1ea   :  { %v651_v13 = vld.sshfl [vmem:[#allocation1 + $0x20] sm:$0xff pattern:$0x73625140]  ;;  %v652_v55 = vld.sshfl [vmem:[#allocation1 + $0x28] sm:$0xff pattern:$0x73625140] }
 0x1eb   :  { %v653_v2 = vld.sshfl [vmem:[#allocation1 + $0x30] sm:$0xff pattern:$0x73625140] }
 0x1ec   :  { %658 = vst [vmem:[#allocation1 + $0x20] ss:$4 sm:$0xff] %v101_v58 }
 0x1ed   :  { %659 = vst [vmem:[#allocation1 + $0x21] ss:$4 sm:$0xff] %v103_v54 }
 0x1ee   :  { %660 = vst [vmem:[#allocation1 + $0x22] ss:$4 sm:$0xff] %v105_v49  ;;  %v6121_v46 = vpop.f32.mrf.mxu2 }
 0x1ef   :  { %661 = vst [vmem:[#allocation1 + $0x23] ss:$4 sm:$0xff] %v107_v17 }
 0x1f0   :  { %7847 = vst [vmem:[#allocation98_spill] sm:$0xff] %v6121_v46 }
 0x1f3   :  { %2679 = vmatmul.bf16.gmra.mxu3 %v5399_v37  ;;  %v2107_v37 = vpop.f32.mrf.mxu0 }
 0x1f6   :  { %v666_v58 = vld.sshfl [vmem:[#allocation1 + $0x20] sm:$0xff pattern:$0x73625140]  ;;  %v667_v54 = vld.sshfl [vmem:[#allocation1 + $0x28] sm:$0xff pattern:$0x73625140]  ;;  %v2285_v46 = vpop.f32.mrf.mxu2 }
 0x1f7   :  { %v6104_v49 = vpack.c.bf16 %v666_v58, %v651_v13  ;;  %v6106_v35 = vpack.c.bf16 %v667_v54, %v652_v55  ;;  %v668_v17 = vld.sshfl [vmem:[#allocation1 + $0x30] sm:$0xff pattern:$0x73625140]  ;;  %v2108_v13 = vadd.f32 %v2107_v37, %v5537_v20  ;;  %v2196_v55 = vpop.f32.mrf.mxu1  ;;  %v6129_v58 = vpop.f32.mrf.mxu3  ;;  %v123_v37 = vld [vmem:[%s7672_s0 + $0x1ba] sm:$0x3f] }
 0x1f8   :  { %v6111_v10 = vpack.c.bf16 %v668_v17, %v653_v2  ;;  %673 = vst [vmem:[#allocation1 + $0x20] ss:$4 sm:$0xff] %v109_v63  ;;  %v117_v63 = vld [vmem:[%s7672_s0 + $0x190] sm:$0x3f] }
 0x1f9   :  { %7845 = vst [vmem:[#allocation96_spill] sm:$0xff] %v6106_v35  ;;  %2412 = vmatmul.bf16.gmra.mxu0 %v6104_v49  ;;  %2501 = vmatmul.bf16.gmra.mxu1 %v6106_v35  ;;  %v2197_v2 = vadd.f32 %v2196_v55, %v2108_v13  ;;  %v5034_v13 = vld [vmem:[#allocation2 + $0xd4] sm:$0xf]  ;;  %v4500_v55 = vld [vmem:[#allocation2 + $0xd8] sm:$0xf0] }
 0x1fa   :  { %7846 = vst [vmem:[#allocation97_spill] sm:$0xff] %v6111_v10  ;;  %4786 = vmatmul.msk.bf16.gmra.mxu2 %vm1989_vm0, %v6111_v10  ;;  %v4503_v10 = vor.u32 %v5034_v13, %v4500_v55  ;;  %v4564_v35 = vld [vmem:[#allocation2 + $0x158] sm:$0xf0]  ;;  %v135_v55 = vld [vmem:[%s7672_s0 + $0x20e] sm:$0x3f] }
 0x1fb   :  { %674 = vst [vmem:[#allocation1 + $0x21] ss:$4 sm:$0xff] %v111_v50  ;;  %v119_v50 = vld [vmem:[%s7672_s0 + $0x19e] sm:$0x3f]  ;;  %v6138_v52 = vpop.f32.mrf.mxu0  ;;  %v2286_v53 = vadd.f32 %v2285_v46, %v2197_v2 }
 0x1fc   :  { %675 = vst [vmem:[#allocation1 + $0x22] ss:$4 sm:$0xff] %v113_v62  ;;  %v121_v62 = vld [vmem:[%s7672_s0 + $0x1ac] sm:$0x3f]  ;;  %2752 = vmatpush.bf16.msra.mxu0 %v4503_v10  ;;  %v131_v10 = vld [vmem:[%s7672_s0 + $0x1f2] sm:$0x3f] }
 0x1fd   :  { %676 = vst [vmem:[#allocation1 + $0x23] ss:$4 sm:$0xff] %v115_v45 }
 0x1fe   :  { %7848 = vst [vmem:[#allocation99_spill] sm:$0xff] %v6129_v58  ;;  %v5050_v58 = vld [vmem:[#allocation2 + $0x154] sm:$0xf] }
 0x1ff   :  { %7849 = vst [vmem:[#allocation100_spill] sm:$0xff] %v6138_v52  ;;  %v6140_v0 = vpop.f32.mrf.mxu1  ;;  %v2374_v48 = vpop.f32.mrf.mxu3  ;;  %v4567_v44 = vor.u32 %v5050_v58, %v4564_v35  ;;  %v129_v35 = vld [vmem:[%s7672_s0 + $0x1e4] sm:$0x3f] }
 0x200   :  { %7850 = vst [vmem:[#allocation101_spill] sm:$0xff] %v6140_v0 }
 0x201   :  { %2841 = vmatpush.bf16.msra.mxu1 %v4567_v44 }
 0x203   :  { %2684 = vmatmul.bf16.gmra.mxu3 %v5435_v3  ;;  %v127_v3 = vld [vmem:[%s7672_s0 + $0x1d6] sm:$0x3f] }
 0x204   :  { %v681_v54 = vld.sshfl [vmem:[#allocation1 + $0x20] sm:$0xff pattern:$0x73625140]  ;;  %v682_v17 = vld.sshfl [vmem:[#allocation1 + $0x28] sm:$0xff pattern:$0x73625140] }
 0x205   :  { %v683_v45 = vld.sshfl [vmem:[#allocation1 + $0x30] sm:$0xff pattern:$0x73625140] }
 0x206   :  { %688 = vst [vmem:[#allocation1 + $0x20] ss:$4 sm:$0xff] %v117_v63  ;;  %v125_v63 = vld [vmem:[%s7672_s0 + $0x1c8] sm:$0x3f] }
 0x207   :  { %689 = vst [vmem:[#allocation1 + $0x21] ss:$4 sm:$0xff] %v119_v50  ;;  %v6148_v50 = vadd.f32 %v2374_v48, %v2286_v53 }
 0x208   :  { %690 = vst [vmem:[#allocation1 + $0x22] ss:$4 sm:$0xff] %v121_v62 }
 0x209   :  { %691 = vst [vmem:[#allocation1 + $0x23] ss:$4 sm:$0xff] %v123_v37  ;;  %v2112_v44 = vpop.f32.mrf.mxu0  ;;  %v2201_v53 = vpop.f32.mrf.mxu1 }
 0x20a   :  { %v2113_v48 = vadd.f32 %v2112_v44, %v5537_v20 }
 0x210   :  { %v696_v62 = vld.sshfl [vmem:[#allocation1 + $0x20] sm:$0xff pattern:$0x73625140]  ;;  %v697_v37 = vld.sshfl [vmem:[#allocation1 + $0x28] sm:$0xff pattern:$0x73625140] }
 0x211   :  { %v6150_v13 = vpack.c.bf16 %v696_v62, %v681_v54  ;;  %v6152_v2 = vpack.c.bf16 %v697_v37, %v682_v17  ;;  %v698_v46 = vld.sshfl [vmem:[#allocation1 + $0x30] sm:$0xff pattern:$0x73625140]  ;;  %v2202_v54 = vadd.f32 %v2201_v53, %v2113_v48  ;;  %v6168_v17 = vpop.f32.mrf.mxu2  ;;  %v137_v37 = vld [vmem:[%s7672_s0 + $0x21c] sm:$0x3f]  ;;  %v6186_v48 = vpop.f32.mrf.mxu1 }
 0x212   :  { %v6157_v58 = vpack.c.bf16 %v698_v46, %v683_v45  ;;  %703 = vst [vmem:[#allocation1 + $0x20] ss:$4 sm:$0xff] %v125_v63  ;;  %v133_v45 = vld [vmem:[%s7672_s0 + $0x200] sm:$0x3f]  ;;  %v6176_v63 = vpop.f32.mrf.mxu3 }
 0x213   :  { %7851 = vst [vmem:[#allocation102_spill] sm:$0xff] %v6152_v2  ;;  %2417 = vmatmul.bf16.gmra.mxu0 %v6150_v13  ;;  %2506 = vmatmul.bf16.gmra.mxu1 %v6152_v2 }
 0x214   :  { %7852 = vst [vmem:[#allocation103_spill] sm:$0xff] %v6157_v58  ;;  %4787 = vmatmul.msk.bf16.gmra.mxu2 %vm1989_vm0, %v6157_v58  ;;  %2689 = vmatmul.bf16.gmra.mxu3 %v5471_v27  ;;  %v139_v27 = vld [vmem:[%s7672_s0 + $0x22a] sm:$0x3f] }
 0x215   :  { %704 = vst [vmem:[#allocation1 + $0x21] ss:$4 sm:$0xff] %v127_v3 }
 0x216   :  { %705 = vst [vmem:[#allocation1 + $0x22] ss:$4 sm:$0xff] %v129_v35 }
 0x217   :  { %706 = vst [vmem:[#allocation1 + $0x23] ss:$4 sm:$0xff] %v131_v10  ;;  %v6184_v10 = vpop.f32.mrf.mxu0 }
 0x218   :  { %7853 = vst [vmem:[#allocation104_spill] sm:$0xff] %v6168_v17  ;;  %v143_v17 = vld [vmem:[%s7672_s0 + $0x246] sm:$0x3f] }
 0x219   :  { %7854 = vst [vmem:[#allocation105_spill] sm:$0xff] %v6176_v63  ;;  %v2290_v35 = vpop.f32.mrf.mxu2  ;;  %v141_v63 = vld [vmem:[%s7672_s0 + $0x238] sm:$0x3f] }
 0x21a   :  { %v2291_v44 = vadd.f32 %v2290_v35, %v2202_v54  ;;  %v2379_v53 = vpop.f32.mrf.mxu3  ;;  %v145_v35 = vld [vmem:[%s7672_s0 + $0x254] sm:$0x3f] }
 0x21c   :  { %v6194_v0 = vadd.f32 %v2379_v53, %v2291_v44  ;;  %v147_v44 = vld [vmem:[%s7672_s0 + $0x262] sm:$0x3f] }
 0x21e   :  { %v711_v3 = vld.sshfl [vmem:[#allocation1 + $0x20] sm:$0xff pattern:$0x73625140]  ;;  %v712_v62 = vld.sshfl [vmem:[#allocation1 + $0x28] sm:$0xff pattern:$0x73625140] }
 0x21f   :  { %v713_v46 = vld.sshfl [vmem:[#allocation1 + $0x30] sm:$0xff pattern:$0x73625140] }
 0x220   :  { %718 = vst [vmem:[#allocation1 + $0x20] ss:$4 sm:$0xff] %v133_v45 }
 0x221   :  { %719 = vst [vmem:[#allocation1 + $0x21] ss:$4 sm:$0xff] %v135_v55  ;;  %v6214_v53 = vpop.f32.mrf.mxu2 }
 0x222   :  { %720 = vst [vmem:[#allocation1 + $0x22] ss:$4 sm:$0xff] %v137_v37 }
 0x223   :  { %721 = vst [vmem:[#allocation1 + $0x23] ss:$4 sm:$0xff] %v139_v27 }
 0x224   :  { %2694 = vmatmul.bf16.gmra.mxu3 %v5507_v61  ;;  %v2117_v61 = vpop.f32.mrf.mxu0  ;;  %7857 = vst [vmem:[#allocation108_spill] sm:$0xff] %v6214_v53 }
 0x22a   :  { %v726_v45 = vld.sshfl [vmem:[#allocation1 + $0x20] sm:$0xff pattern:$0x73625140]  ;;  %v727_v55 = vld.sshfl [vmem:[#allocation1 + $0x28] sm:$0xff pattern:$0x73625140] }
 0x22b   :  { %v6197_v37 = vpack.c.bf16 %v726_v45, %v711_v3  ;;  %v6199_v54 = vpack.c.bf16 %v727_v55, %v712_v62  ;;  %v728_v27 = vld.sshfl [vmem:[#allocation1 + $0x30] sm:$0xff pattern:$0x73625140]  ;;  %v2118_v3 = vadd.f32 %v2117_v61, %v5537_v20  ;;  %v2206_v62 = vpop.f32.mrf.mxu1  ;;  %v6222_v45 = vpop.f32.mrf.mxu3  ;;  %v155_v61 = vld [vmem:[%s7672_s0 + $0x29a] sm:$0x3f] }
 0x22c   :  { %v6204_v52 = vpack.c.bf16 %v728_v27, %v713_v46  ;;  %733 = vst [vmem:[#allocation1 + $0x20] ss:$4 sm:$0xff] %v141_v63  ;;  %v149_v63 = vld [vmem:[%s7672_s0 + $0x270] sm:$0x3f]  ;;  %v6231_v58 = vpop.f32.mrf.mxu0 }
 0x22d   :  { %7855 = vst [vmem:[#allocation106_spill] sm:$0xff] %v6199_v54  ;;  %2422 = vmatmul.bf16.gmra.mxu0 %v6197_v37  ;;  %2511 = vmatmul.bf16.gmra.mxu1 %v6199_v54  ;;  %v2207_v46 = vadd.f32 %v2206_v62, %v2118_v3  ;;  %v5032_v3 = vld [vmem:[#allocation2 + $0xc4] sm:$0xf]  ;;  %v4492_v62 = vld [vmem:[#allocation2 + $0xc8] sm:$0xf0]  ;;  %v2295_v54 = vpop.f32.mrf.mxu2 }
 0x22e   :  { %7856 = vst [vmem:[#allocation107_spill] sm:$0xff] %v6204_v52  ;;  %4788 = vmatmul.msk.bf16.gmra.mxu2 %vm1989_vm0, %v6204_v52  ;;  %v5048_v52 = vld [vmem:[#allocation2 + $0x144] sm:$0xf]  ;;  %v4495_v2 = vor.u32 %v5032_v3, %v4492_v62 }
 0x22f   :  { %734 = vst [vmem:[#allocation1 + $0x21] ss:$4 sm:$0xff] %v143_v17  ;;  %v151_v17 = vld [vmem:[%s7672_s0 + $0x27e] sm:$0x3f]  ;;  %v4559_v31 = vor.u32 %v5048_v52, %v4556_v39  ;;  %v161_v39 = vld [vmem:[%s7672_s0 + $0x2c4] sm:$0x3f] }
 0x230   :  { %735 = vst [vmem:[#allocation1 + $0x22] ss:$4 sm:$0xff] %v145_v35  ;;  %v153_v35 = vld [vmem:[%s7672_s0 + $0x28c] sm:$0x3f]  ;;  %2753 = vmatpush.bf16.msra.mxu0 %v4495_v2  ;;  %v163_v2 = vld [vmem:[%s7672_s0 + $0x2d2] sm:$0x3f] }
 0x231   :  { %736 = vst [vmem:[#allocation1 + $0x23] ss:$4 sm:$0xff] %v147_v44  ;;  %2842 = vmatpush.bf16.msra.mxu1 %v4559_v31  ;;  %v167_v62 = vld [vmem:[%s7672_s0 + $0x2ee] sm:$0x3f] }
 0x232   :  { %7858 = vst [vmem:[#allocation109_spill] sm:$0xff] %v6222_v45  ;;  %v2296_v45 = vadd.f32 %v2295_v54, %v2207_v46 }
 0x233   :  { %v6233_v32 = vpop.f32.mrf.mxu1  ;;  %v2384_v53 = vpop.f32.mrf.mxu3 }
 0x234   :  { %2699 = vmatmul.bf16.gmra.mxu3 %v5549_v34  ;;  %v159_v34 = vld [vmem:[%s7672_s0 + $0x2b6] sm:$0x3f] }
 0x238   :  { %v741_v55 = vld.sshfl [vmem:[#allocation1 + $0x20] sm:$0xff pattern:$0x73625140]  ;;  %v742_v27 = vld.sshfl [vmem:[#allocation1 + $0x28] sm:$0xff pattern:$0x73625140] }
 0x239   :  { %v743_v44 = vld.sshfl [vmem:[#allocation1 + $0x30] sm:$0xff pattern:$0x73625140] }
 0x23a   :  { %748 = vst [vmem:[#allocation1 + $0x20] ss:$4 sm:$0xff] %v149_v63  ;;  %v157_v63 = vld [vmem:[%s7672_s0 + $0x2a8] sm:$0x3f] }
 0x23b   :  { %749 = vst [vmem:[#allocation1 + $0x21] ss:$4 sm:$0xff] %v151_v17  ;;  %v6241_v17 = vadd.f32 %v2384_v53, %v2296_v45 }
 0x23c   :  { %750 = vst [vmem:[#allocation1 + $0x22] ss:$4 sm:$0xff] %v153_v35 }
 0x23d   :  { %751 = vst [vmem:[#allocation1 + $0x23] ss:$4 sm:$0xff] %v155_v61 }
 0x23e   :  { %7859 = vst [vmem:[#allocation110_spill] sm:$0xff] %v6241_v17 }
 0x23f   :  { %v2122_v31 = vpop.f32.mrf.mxu0  ;;  %v2211_v45 = vpop.f32.mrf.mxu1 }
 0x240   :  { %v2123_v53 = vadd.f32 %v2122_v31, %v5537_v20 }
 0x244   :  { %v756_v35 = vld.sshfl [vmem:[#allocation1 + $0x20] sm:$0xff pattern:$0x73625140]  ;;  %v757_v61 = vld.sshfl [vmem:[#allocation1 + $0x28] sm:$0xff pattern:$0x73625140]  ;;  %2704 = vmatmul.bf16.gmra.mxu3 %v5591_v36 }
 0x245   :  { %v6243_v3 = vpack.c.bf16 %v756_v35, %v741_v55  ;;  %v6245_v54 = vpack.c.bf16 %v757_v61, %v742_v27  ;;  %v758_v46 = vld.sshfl [vmem:[#allocation1 + $0x30] sm:$0xff pattern:$0x73625140]  ;;  %v2212_v55 = vadd.f32 %v2211_v45, %v2123_v53  ;;  %v6261_v27 = vpop.f32.mrf.mxu2  ;;  %v169_v61 = vld [vmem:[%s7672_s0 + $0x2fc] sm:$0x3f] }
 0x246   :  { %v6250_v52 = vpack.c.bf16 %v758_v46, %v743_v44  ;;  %763 = vst [vmem:[#allocation1 + $0x20] ss:$4 sm:$0xff] %v157_v63  ;;  %v165_v44 = vld [vmem:[%s7672_s0 + $0x2e0] sm:$0x3f]  ;;  %v6269_v63 = vpop.f32.mrf.mxu3  ;;  %v171_v36 = vld [vmem:[%s7672_s0 + $0x30a] sm:$0x3f] }
 0x247   :  { %7860 = vst [vmem:[#allocation111_spill] sm:$0xff] %v6245_v54  ;;  %2427 = vmatmul.bf16.gmra.mxu0 %v6243_v3  ;;  %2516 = vmatmul.bf16.gmra.mxu1 %v6245_v54  ;;  %v6279_v53 = vpop.f32.mrf.mxu1  ;;  %v175_v54 = vld [vmem:[%s7672_s0 + $0x326] sm:$0x3f] }
 0x248   :  { %7861 = vst [vmem:[#allocation112_spill] sm:$0xff] %v6250_v52  ;;  %4789 = vmatmul.msk.bf16.gmra.mxu2 %vm1989_vm0, %v6250_v52  ;;  %v173_v52 = vld [vmem:[%s7672_s0 + $0x318] sm:$0x3f] }
 0x249   :  { %764 = vst [vmem:[#allocation1 + $0x21] ss:$4 sm:$0xff] %v159_v34 }
 0x24a   :  { %765 = vst [vmem:[#allocation1 + $0x22] ss:$4 sm:$0xff] %v161_v39 }
 0x24b   :  { %766 = vst [vmem:[#allocation1 + $0x23] ss:$4 sm:$0xff] %v163_v2  ;;  %v6277_v2 = vpop.f32.mrf.mxu0 }
 0x24c   :  { %7862 = vst [vmem:[#allocation113_spill] sm:$0xff] %v6261_v27  ;;  %v5070_v27 = vld [vmem:[#allocation2 + $0x1f4] sm:$0xf] }
 0x24d   :  { %7863 = vst [vmem:[#allocation114_spill] sm:$0xff] %v6269_v63  ;;  %v2300_v39 = vpop.f32.mrf.mxu2 }
 0x24e   :  { %7864 = vst [vmem:[#allocation115_spill] sm:$0xff] %v6277_v2  ;;  %v2301_v31 = vadd.f32 %v2300_v39, %v2212_v55  ;;  %v2389_v45 = vpop.f32.mrf.mxu3  ;;  %v177_v39 = vld [vmem:[%s7672_s0 + $0x334] sm:$0x3f] }
 0x24f   :  { %7865 = vst [vmem:[#allocation116_spill] sm:$0xff] %v6279_v53 }
 0x250   :  { %v6287_v63 = vadd.f32 %v2389_v45, %v2301_v31  ;;  %v179_v31 = vld [vmem:[%s7672_s0 + $0x342] sm:$0x3f] }
 0x252   :  { %v771_v34 = vld.sshfl [vmem:[#allocation1 + $0x20] sm:$0xff pattern:$0x73625140]  ;;  %v772_v35 = vld.sshfl [vmem:[#allocation1 + $0x28] sm:$0xff pattern:$0x73625140] }
 0x253   :  { %v773_v46 = vld.sshfl [vmem:[#allocation1 + $0x30] sm:$0xff pattern:$0x73625140]  ;;  %7866 = vst [vmem:[#allocation117_spill] sm:$0xff] %v6287_v63 }
 0x254   :  { %778 = vst [vmem:[#allocation1 + $0x20] ss:$4 sm:$0xff] %v165_v44  ;;  %2709 = vmatmul.bf16.gmra.mxu3 %v5638_v40  ;;  %v2403_v40 = vpop.f32.mrf.mxu0 }
 0x255   :  { %779 = vst [vmem:[#allocation1 + $0x21] ss:$4 sm:$0xff] %v167_v62  ;;  %v6307_v45 = vpop.f32.mrf.mxu2 }
 0x256   :  { %780 = vst [vmem:[#allocation1 + $0x22] ss:$4 sm:$0xff] %v169_v61 }
 0x257   :  { %781 = vst [vmem:[#allocation1 + $0x23] ss:$4 sm:$0xff] %v171_v36 }
 0x258   :  { %7869 = vst [vmem:[#allocation120_spill] sm:$0xff] %v6307_v45  ;;  %v4548_v45 = vld [vmem:[#allocation2 + $0x138] sm:$0xf0] }
 0x25e   :  { %v786_v44 = vld.sshfl [vmem:[#allocation1 + $0x20] sm:$0xff pattern:$0x73625140]  ;;  %v787_v62 = vld.sshfl [vmem:[#allocation1 + $0x28] sm:$0xff pattern:$0x73625140] }
 0x25f   :  { %v6290_v61 = vpack.c.bf16 %v786_v44, %v771_v34  ;;  %v6292_v55 = vpack.c.bf16 %v787_v62, %v772_v35  ;;  %v788_v36 = vld.sshfl [vmem:[#allocation1 + $0x30] sm:$0xff pattern:$0x73625140]  ;;  %v2404_v34 = vadd.f32 %v2403_v40, %v5589_v26  ;;  %v2492_v35 = vpop.f32.mrf.mxu1  ;;  %v187_v26 = vld [vmem:[%s7672_s0 + $0x37a] sm:$0x3f] }
 0x260   :  { %v6297_v53 = vpack.c.bf16 %v788_v36, %v773_v46  ;;  %793 = vst [vmem:[#allocation1 + $0x20] ss:$4 sm:$0xff] %v173_v52  ;;  %v181_v52 = vld [vmem:[%s7672_s0 + $0x350] sm:$0x3f]  ;;  %v4484_v40 = vld [vmem:[#allocation2 + $0xb8] sm:$0xf0] }
 0x261   :  { %7867 = vst [vmem:[#allocation118_spill] sm:$0xff] %v6292_v55  ;;  %2432 = vmatmul.bf16.gmra.mxu0 %v6290_v61  ;;  %2521 = vmatmul.bf16.gmra.mxu1 %v6292_v55  ;;  %v2493_v46 = vadd.f32 %v2492_v35, %v2404_v34  ;;  %v185_v36 = vld [vmem:[%s7672_s0 + $0x36c] sm:$0x3f]  ;;  %v5046_v34 = vld [vmem:[#allocation2 + $0x134] sm:$0xf]  ;;  %v2581_v35 = vpop.f32.mrf.mxu2 }
 0x262   :  { %7868 = vst [vmem:[#allocation119_spill] sm:$0xff] %v6297_v53  ;;  %4790 = vmatmul.msk.bf16.gmra.mxu2 %vm1989_vm0, %v6297_v53  ;;  %v6322_v53 = vpop.f32.mrf.mxu0  ;;  %v4551_v17 = vor.u32 %v5046_v34, %v4548_v45 }
 0x263   :  { %794 = vst [vmem:[#allocation1 + $0x21] ss:$4 sm:$0xff] %v175_v54  ;;  %v183_v54 = vld [vmem:[%s7672_s0 + $0x35e] sm:$0x3f]  ;;  %v6324_v63 = vadd.f32 %v2581_v35, %v2493_v46 }
 0x264   :  { %795 = vst [vmem:[#allocation1 + $0x22] ss:$4 sm:$0xff] %v177_v39  ;;  %2714 = vmatmul.bf16.gmra.mxu3 %v5685_v14  ;;  %v189_v14 = vld [vmem:[%s7672_s0 + $0x388] sm:$0x3f]  ;;  %2843 = vmatpush.bf16.msra.mxu1 %v4551_v17 }
 0x265   :  { %796 = vst [vmem:[#allocation1 + $0x23] ss:$4 sm:$0xff] %v179_v31  ;;  %v5030_v31 = vld [vmem:[#allocation2 + $0xb4] sm:$0xf] }
 0x266   :  { %7870 = vst [vmem:[#allocation121_spill] sm:$0xff] %v6322_v53  ;;  %v4487_v55 = vor.u32 %v5030_v31, %v4484_v40 }
 0x267   :  { %7871 = vst [vmem:[#allocation122_spill] sm:$0xff] %v6324_v63  ;;  %v6326_v2 = vpop.f32.mrf.mxu1 }
 0x268   :  { %7872 = vst [vmem:[#allocation123_spill] sm:$0xff] %v6326_v2  ;;  %2754 = vmatpush.bf16.msra.mxu0 %v4487_v55  ;;  %v193_v2 = vld [vmem:[%s7672_s0 + $0x3a4] sm:$0x3f] }
 0x26a   :  { %v2408_v17 = vpop.f32.mrf.mxu0 }
 0x26b   :  { %v2409_v55 = vadd.f32 %v2408_v17, %v5636_v29  ;;  %v201_v29 = vld [vmem:[%s7672_s0 + $0x3dc] sm:$0x3f]  ;;  %v207_v17 = vld [vmem:[%s7672_s0 + $0x406] sm:$0x3f] }
 0x26c   :  { %v801_v44 = vld.sshfl [vmem:[#allocation1 + $0x20] sm:$0xff pattern:$0x73625140]  ;;  %v802_v62 = vld.sshfl [vmem:[#allocation1 + $0x28] sm:$0xff pattern:$0x73625140] }
 0x26d   :  { %v803_v39 = vld.sshfl [vmem:[#allocation1 + $0x30] sm:$0xff pattern:$0x73625140] }
 0x26e   :  { %808 = vst [vmem:[#allocation1 + $0x20] ss:$4 sm:$0xff] %v181_v52  ;;  %v4644_v52 = vld [vmem:[#allocation2 + $0x1f8] sm:$0xf0] }
 0x26f   :  { %809 = vst [vmem:[#allocation1 + $0x21] ss:$4 sm:$0xff] %v183_v54  ;;  %v5086_v54 = vld [vmem:[#allocation2 + $0x274] sm:$0xf]  ;;  %v4647_v31 = vor.u32 %v5070_v27, %v4644_v52  ;;  %v195_v27 = vld [vmem:[%s7672_s0 + $0x3b2] sm:$0x3f]  ;;  %v6354_v52 = vpop.f32.mrf.mxu2 }
 0x270   :  { %810 = vst [vmem:[#allocation1 + $0x22] ss:$4 sm:$0xff] %v185_v36  ;;  %v4708_v36 = vld [vmem:[#allocation2 + $0x278] sm:$0xf0] }
 0x271   :  { %811 = vst [vmem:[#allocation1 + $0x23] ss:$4 sm:$0xff] %v187_v26  ;;  %v191_v26 = vld [vmem:[%s7672_s0 + $0x396] sm:$0x3f]  ;;  %v4711_v35 = vor.u32 %v5086_v54, %v4708_v36  ;;  %2928 = vmatpush.bf16.msra.mxu2 %v4647_v31  ;;  %v197_v54 = vld [vmem:[%s7672_s0 + $0x3c0] sm:$0x3f] }
 0x272   :  { %7875 = vst [vmem:[#allocation126_spill] sm:$0xff] %v6354_v52  ;;  %v5068_v52 = vld [vmem:[#allocation2 + $0x1e4] sm:$0xf] }
 0x273   :  { %3017 = vmatpush.bf16.msra.mxu3 %v4711_v35 }
 0x274   :  { %2719 = vmatmul.bf16.gmra.mxu3 %v5732_v15  ;;  %v203_v15 = vld [vmem:[%s7672_s0 + $0x3ea] sm:$0x3f] }
 0x278   :  { %v816_v40 = vld.sshfl [vmem:[#allocation1 + $0x20] sm:$0xff pattern:$0x73625140]  ;;  %v817_v46 = vld.sshfl [vmem:[#allocation1 + $0x28] sm:$0xff pattern:$0x73625140] }
 0x279   :  { %v6334_v63 = vpack.c.bf16 %v816_v40, %v801_v44  ;;  %v6336_v45 = vpack.c.bf16 %v817_v46, %v802_v62  ;;  %v818_v34 = vld.sshfl [vmem:[#allocation1 + $0x30] sm:$0xff pattern:$0x73625140]  ;;  %v2497_v44 = vpop.f32.mrf.mxu1  ;;  %v6351_v62 = vpop.f32.mrf.mxu3 }
 0x27a   :  { %v6341_v53 = vpack.c.bf16 %v818_v34, %v803_v39  ;;  %823 = vst [vmem:[#allocation1 + $0x20] ss:$4 sm:$0xff] %v189_v14  ;;  %v2498_v39 = vadd.f32 %v2497_v44, %v2409_v55  ;;  %v2586_v40 = vpop.f32.mrf.mxu2  ;;  %v6370_v46 = vpop.f32.mrf.mxu0 }
 0x27b   :  { %7873 = vst [vmem:[#allocation124_spill] sm:$0xff] %v6336_v45  ;;  %2437 = vmatmul.bf16.gmra.mxu0 %v6334_v63  ;;  %2526 = vmatmul.bf16.gmra.mxu1 %v6336_v45 }
 0x27c   :  { %7874 = vst [vmem:[#allocation125_spill] sm:$0xff] %v6341_v53  ;;  %4791 = vmatmul.msk.bf16.gmra.mxu2 %vm1989_vm0, %v6341_v53  ;;  %v6372_v35 = vadd.f32 %v2586_v40, %v2498_v39  ;;  %v211_v40 = vld [vmem:[%s7672_s0 + $0x422] sm:$0x3f] }
 0x27d   :  { %824 = vst [vmem:[#allocation1 + $0x21] ss:$4 sm:$0xff] %v191_v26 }
 0x27e   :  { %825 = vst [vmem:[#allocation1 + $0x22] ss:$4 sm:$0xff] %v193_v2  ;;  %v199_v2 = vld [vmem:[%s7672_s0 + $0x3ce] sm:$0x3f] }
 0x27f   :  { %826 = vst [vmem:[#allocation1 + $0x23] ss:$4 sm:$0xff] %v195_v27  ;;  %v205_v27 = vld [vmem:[%s7672_s0 + $0x3f8] sm:$0x3f] }
 0x280   :  { %7876 = vst [vmem:[#allocation127_spill] sm:$0xff] %v6370_v46 }
 0x281   :  { %v6368_v31 = vpop.f32.mrf.mxu3  ;;  %7877 = vst [vmem:[#allocation128_spill] sm:$0xff] %v6372_v35  ;;  %v6374_v34 = vpop.f32.mrf.mxu1 }
 0x282   :  { %7878 = vst [vmem:[#allocation129_spill] sm:$0xff] %v6374_v34 }
 0x284   :  { %2724 = vmatmul.bf16.gmra.mxu3 %v5779_v16 }
 0x286   :  { %v831_v36 = vld.sshfl [vmem:[#allocation1 + $0x20] sm:$0xff pattern:$0x73625140]  ;;  %v832_v14 = vld.sshfl [vmem:[#allocation1 + $0x28] sm:$0xff pattern:$0x73625140] }
 0x287   :  { %v833_v26 = vld.sshfl [vmem:[#allocation1 + $0x30] sm:$0xff pattern:$0x73625140] }
 0x288   :  { %838 = vst [vmem:[#allocation1 + $0x20] ss:$4 sm:$0xff] %v197_v54 }
 0x289   :  { %839 = vst [vmem:[#allocation1 + $0x21] ss:$4 sm:$0xff] %v199_v2  ;;  %v6397_v16 = vpop.f32.mrf.mxu3 }
 0x28a   :  { %840 = vst [vmem:[#allocation1 + $0x22] ss:$4 sm:$0xff] %v201_v29  ;;  %v209_v29 = vld [vmem:[%s7672_s0 + $0x414] sm:$0x3f] }
 0x28b   :  { %841 = vst [vmem:[#allocation1 + $0x23] ss:$4 sm:$0xff] %v203_v15 }
 0x28c   :  { %7881 = vst [vmem:[#allocation132_spill] sm:$0xff] %v6397_v16  ;;  %v4700_v16 = vld [vmem:[#allocation2 + $0x268] sm:$0xf0] }
 0x292   :  { %v846_v55 = vld.sshfl [vmem:[#allocation1 + $0x20] sm:$0xff pattern:$0x73625140]  ;;  %v847_v44 = vld.sshfl [vmem:[#allocation1 + $0x28] sm:$0xff pattern:$0x73625140] }
 0x293   :  { %v6383_v54 = vpack.c.bf16 %v846_v55, %v831_v36  ;;  %v6385_v2 = vpack.c.bf16 %v847_v44, %v832_v14  ;;  %v848_v39 = vld.sshfl [vmem:[#allocation1 + $0x30] sm:$0xff pattern:$0x73625140]  ;;  %v2413_v36 = vpop.f32.mrf.mxu0  ;;  %v6402_v44 = vpop.f32.mrf.mxu2 }
 0x294   :  { %v6390_v15 = vpack.c.bf16 %v848_v39, %v833_v26  ;;  %853 = vst [vmem:[#allocation1 + $0x20] ss:$4 sm:$0xff] %v205_v27  ;;  %v2414_v14 = vadd.f32 %v2413_v36, %v5683_v5  ;;  %v2502_v26 = vpop.f32.mrf.mxu1  ;;  %v213_v27 = vld [vmem:[%s7672_s0 + $0x430] sm:$0x3f]  ;;  %v6413_v5 = vpop.f32.mrf.mxu3  ;;  %v219_v36 = vld [vmem:[%s7672_s0 + $0x45a] sm:$0x3f]  ;;  %2729 = vmatmul.bf16.gmra.mxu3 %v5826_v57 }
 0x295   :  { %7879 = vst [vmem:[#allocation130_spill] sm:$0xff] %v6385_v2  ;;  %2442 = vmatmul.bf16.gmra.mxu0 %v6383_v54  ;;  %2531 = vmatmul.bf16.gmra.mxu1 %v6385_v2 }
 0x296   :  { %7880 = vst [vmem:[#allocation131_spill] sm:$0xff] %v6390_v15  ;;  %4792 = vmatmul.msk.bf16.gmra.mxu2 %vm1989_vm0, %v6390_v15  ;;  %v2503_v55 = vadd.f32 %v2502_v26, %v2414_v14  ;;  %v5028_v14 = vld [vmem:[#allocation2 + $0xa4] sm:$0xf]  ;;  %v4476_v26 = vld [vmem:[#allocation2 + $0xa8] sm:$0xf0] }
 0x297   :  { %854 = vst [vmem:[#allocation1 + $0x21] ss:$4 sm:$0xff] %v207_v17  ;;  %v215_v17 = vld [vmem:[%s7672_s0 + $0x43e] sm:$0x3f]  ;;  %v5044_v15 = vld [vmem:[#allocation2 + $0x124] sm:$0xf]  ;;  %v4479_v35 = vor.u32 %v5028_v14, %v4476_v26 }
 0x298   :  { %855 = vst [vmem:[#allocation1 + $0x22] ss:$4 sm:$0xff] %v209_v29  ;;  %v217_v29 = vld [vmem:[%s7672_s0 + $0x44c] sm:$0x3f]  ;;  %v223_v14 = vld [vmem:[%s7672_s0 + $0x476] sm:$0x3f] }
 0x299   :  { %856 = vst [vmem:[#allocation1 + $0x23] ss:$4 sm:$0xff] %v211_v40  ;;  %2755 = vmatpush.bf16.msra.mxu0 %v4479_v35  ;;  %v227_v35 = vld [vmem:[%s7672_s0 + $0x492] sm:$0x3f] }
 0x29a   :  { %7882 = vst [vmem:[#allocation133_spill] sm:$0xff] %v6402_v44  ;;  %v4540_v44 = vld [vmem:[#allocation2 + $0x128] sm:$0xf0] }
 0x29b   :  { %7883 = vst [vmem:[#allocation134_spill] sm:$0xff] %v6413_v5  ;;  %v2591_v53 = vpop.f32.mrf.mxu2  ;;  %v6419_v45 = vpop.f32.mrf.mxu0  ;;  %v4636_v5 = vld [vmem:[#allocation2 + $0x1e8] sm:$0xf0] }
 0x29c   :  { %7884 = vst [vmem:[#allocation135_spill] sm:$0xff] %v6419_v45  ;;  %v6421_v34 = vadd.f32 %v2591_v53, %v2503_v55  ;;  %v6423_v46 = vpop.f32.mrf.mxu1  ;;  %v6425_v57 = vpop.f32.mrf.mxu3 }
 0x29d   :  { %7886 = vst [vmem:[#allocation137_spill] sm:$0xff] %v6423_v46 }
 0x29e   :  { %7885 = vst [vmem:[#allocation136_spill] sm:$0xff] %v6421_v34 }
 0x2a0   :  { %v861_v39 = vld.sshfl [vmem:[#allocation1 + $0x20] sm:$0xff pattern:$0x73625140]  ;;  %v862_v2 = vld.sshfl [vmem:[#allocation1 + $0x28] sm:$0xff pattern:$0x73625140] }
 0x2a1   :  { %v863_v40 = vld.sshfl [vmem:[#allocation1 + $0x30] sm:$0xff pattern:$0x73625140] }
 0x2a2   :  { %868 = vst [vmem:[#allocation1 + $0x20] ss:$4 sm:$0xff] %v213_v27  ;;  %v4543_v27 = vor.u32 %v5044_v15, %v4540_v44 }
 0x2a3   :  { %869 = vst [vmem:[#allocation1 + $0x21] ss:$4 sm:$0xff] %v215_v17  ;;  %v4639_v17 = vor.u32 %v5068_v52, %v4636_v5  ;;  %v225_v5 = vld [vmem:[%s7672_s0 + $0x484] sm:$0x3f] }
 0x2a4   :  { %870 = vst [vmem:[#allocation1 + $0x22] ss:$4 sm:$0xff] %v217_v29  ;;  %v5084_v29 = vld [vmem:[#allocation2 + $0x264] sm:$0xf]  ;;  %2844 = vmatpush.bf16.msra.mxu1 %v4543_v27  ;;  %2734 = vmatmul.bf16.gmra.mxu3 %v5873_v47  ;;  %v6451_v27 = vpop.f32.mrf.mxu3 }
 0x2a5   :  { %871 = vst [vmem:[#allocation1 + $0x23] ss:$4 sm:$0xff] %v219_v36  ;;  %v221_v36 = vld [vmem:[%s7672_s0 + $0x468] sm:$0x3f]  ;;  %v4703_v53 = vor.u32 %v5084_v29, %v4700_v16  ;;  %2929 = vmatpush.bf16.msra.mxu2 %v4639_v17  ;;  %v6453_v17 = vpop.f32.mrf.mxu2  ;;  %v229_v29 = vld [vmem:[%s7672_s0 + $0x4a0] sm:$0x3f] }
 0x2a6   :  { %7889 = vst [vmem:[#allocation140_spill] sm:$0xff] %v6453_v17  ;;  %v235_v47 = vld [vmem:[%s7672_s0 + $0x4ca] sm:$0x3f] }
 0x2a7   :  { %3018 = vmatpush.bf16.msra.mxu3 %v4703_v53 }
 0x2ac   :  { %v876_v55 = vld.sshfl [vmem:[#allocation1 + $0x20] sm:$0xff pattern:$0x73625140]  ;;  %v877_v26 = vld.sshfl [vmem:[#allocation1 + $0x28] sm:$0xff pattern:$0x73625140] }
 0x2ad   :  { %v6433_v15 = vpack.c.bf16 %v876_v55, %v861_v39  ;;  %v6435_v52 = vpack.c.bf16 %v877_v26, %v862_v2  ;;  %v878_v44 = vld.sshfl [vmem:[#allocation1 + $0x30] sm:$0xff pattern:$0x73625140]  ;;  %v2418_v2 = vpop.f32.mrf.mxu0  ;;  %v2507_v39 = vpop.f32.mrf.mxu1 }
 0x2ae   :  { %v6440_v34 = vpack.c.bf16 %v878_v44, %v863_v40  ;;  %883 = vst [vmem:[#allocation1 + $0x20] ss:$4 sm:$0xff] %v221_v36  ;;  %v2419_v16 = vadd.f32 %v2418_v2, %v5730_v24  ;;  %v231_v36 = vld [vmem:[%s7672_s0 + $0x4ae] sm:$0x3f]  ;;  %v233_v24 = vld [vmem:[%s7672_s0 + $0x4bc] sm:$0x3f]  ;;  %v6467_v26 = vpop.f32.mrf.mxu3  ;;  %v2596_v44 = vpop.f32.mrf.mxu2 }
 0x2af   :  { %7887 = vst [vmem:[#allocation138_spill] sm:$0xff] %v6435_v52  ;;  %2447 = vmatmul.bf16.gmra.mxu0 %v6433_v15  ;;  %2536 = vmatmul.bf16.gmra.mxu1 %v6435_v52  ;;  %v243_v52 = vld [vmem:[%s7672_s0 + $0x502] sm:$0x3f] }
 0x2b0   :  { %7888 = vst [vmem:[#allocation139_spill] sm:$0xff] %v6440_v34  ;;  %4793 = vmatmul.msk.bf16.gmra.mxu2 %vm1989_vm0, %v6440_v34  ;;  %v2508_v40 = vadd.f32 %v2507_v39, %v2419_v16  ;;  %v237_v16 = vld [vmem:[%s7672_s0 + $0x4d8] sm:$0x3f]  ;;  %v239_v39 = vld [vmem:[%s7672_s0 + $0x4e6] sm:$0x3f] }
 0x2b1   :  { %884 = vst [vmem:[#allocation1 + $0x21] ss:$4 sm:$0xff] %v223_v14 }
 0x2b2   :  { %885 = vst [vmem:[#allocation1 + $0x22] ss:$4 sm:$0xff] %v225_v5 }
 0x2b3   :  { %886 = vst [vmem:[#allocation1 + $0x23] ss:$4 sm:$0xff] %v227_v35  ;;  %v6471_v35 = vadd.f32 %v2596_v44, %v2508_v40  ;;  %v241_v44 = vld [vmem:[%s7672_s0 + $0x4f4] sm:$0x3f] }
 0x2b4   :  { %7890 = vst [vmem:[#allocation141_spill] sm:$0xff] %v6467_v26  ;;  %2739 = vmatmul.bf16.gmra.mxu3 %v5929_v6  ;;  %v4588_v26 = vld [vmem:[#allocation2 + $0x188] sm:$0xf0] }
 0x2b5   :  { %v6469_v5 = vpop.f32.mrf.mxu0  ;;  %7892 = vst [vmem:[#allocation143_spill] sm:$0xff] %v6471_v35  ;;  %v6473_v2 = vpop.f32.mrf.mxu1 }
 0x2b6   :  { %7891 = vst [vmem:[#allocation142_spill] sm:$0xff] %v6469_v5  ;;  %v4532_v5 = vld [vmem:[#allocation2 + $0x118] sm:$0xf0] }
 0x2b7   :  { %7893 = vst [vmem:[#allocation144_spill] sm:$0xff] %v6473_v2 }
 0x2ba   :  { %v891_v14 = vld.sshfl [vmem:[#allocation1 + $0x20] sm:$0xff pattern:$0x73625140]  ;;  %v892_v53 = vld.sshfl [vmem:[#allocation1 + $0x28] sm:$0xff pattern:$0x73625140] }
 0x2bb   :  { %v893_v55 = vld.sshfl [vmem:[#allocation1 + $0x30] sm:$0xff pattern:$0x73625140] }
 0x2bc   :  { %898 = vst [vmem:[#allocation1 + $0x20] ss:$4 sm:$0xff] %v229_v29 }
 0x2bd   :  { %899 = vst [vmem:[#allocation1 + $0x21] ss:$4 sm:$0xff] %v231_v36  ;;  %v2423_v6 = vpop.f32.mrf.mxu0 }
 0x2be   :  { %900 = vst [vmem:[#allocation1 + $0x22] ss:$4 sm:$0xff] %v233_v24 }
 0x2bf   :  { %901 = vst [vmem:[#allocation1 + $0x23] ss:$4 sm:$0xff] %v235_v47 }
 0x2c6   :  { %v906_v29 = vld.sshfl [vmem:[#allocation1 + $0x20] sm:$0xff pattern:$0x73625140]  ;;  %v907_v36 = vld.sshfl [vmem:[#allocation1 + $0x28] sm:$0xff pattern:$0x73625140] }
 0x2c7   :  { %v6482_v24 = vpack.c.bf16 %v906_v29, %v891_v14  ;;  %v6484_v47 = vpack.c.bf16 %v907_v36, %v892_v53  ;;  %v908_v40 = vld.sshfl [vmem:[#allocation1 + $0x30] sm:$0xff pattern:$0x73625140]  ;;  %v2424_v14 = vadd.f32 %v2423_v6, %v5777_v30  ;;  %v6499_v53 = vpop.f32.mrf.mxu3  ;;  %v6501_v36 = vpop.f32.mrf.mxu2  ;;  %v251_v6 = vld [vmem:[%s7672_s0 + $0x53a] sm:$0x3f] }
 0x2c8   :  { %v6489_v34 = vpack.c.bf16 %v908_v40, %v893_v55  ;;  %913 = vst [vmem:[#allocation1 + $0x20] ss:$4 sm:$0xff] %v237_v16  ;;  %v2512_v55 = vpop.f32.mrf.mxu1  ;;  %v245_v16 = vld [vmem:[%s7672_s0 + $0x510] sm:$0x3f] }
 0x2c9   :  { %7894 = vst [vmem:[#allocation145_spill] sm:$0xff] %v6484_v47  ;;  %2452 = vmatmul.bf16.gmra.mxu0 %v6482_v24  ;;  %2541 = vmatmul.bf16.gmra.mxu1 %v6484_v47  ;;  %v2513_v29 = vadd.f32 %v2512_v55, %v2424_v14  ;;  %v249_v30 = vld [vmem:[%s7672_s0 + $0x52c] sm:$0x3f]  ;;  %v5026_v55 = vld [vmem:[#allocation2 + $0x94] sm:$0xf] }
 0x2ca   :  { %7895 = vst [vmem:[#allocation146_spill] sm:$0xff] %v6489_v34  ;;  %4794 = vmatmul.msk.bf16.gmra.mxu2 %vm1989_vm0, %v6489_v34  ;;  %v4468_v34 = vld [vmem:[#allocation2 + $0x98] sm:$0xf0]  ;;  %v5042_v47 = vld [vmem:[#allocation2 + $0x114] sm:$0xf] }
 0x2cb   :  { %914 = vst [vmem:[#allocation1 + $0x21] ss:$4 sm:$0xff] %v239_v39  ;;  %v247_v39 = vld [vmem:[%s7672_s0 + $0x51e] sm:$0x3f]  ;;  %v4471_v2 = vor.u32 %v5026_v55, %v4468_v34 }
 0x2cc   :  { %915 = vst [vmem:[#allocation1 + $0x22] ss:$4 sm:$0xff] %v241_v44 }
 0x2cd   :  { %916 = vst [vmem:[#allocation1 + $0x23] ss:$4 sm:$0xff] %v243_v52  ;;  %2756 = vmatpush.bf16.msra.mxu0 %v4471_v2  ;;  %v259_v2 = vld [vmem:[%s7672_s0 + $0x572] sm:$0x3f] }
 0x2ce   :  { %7896 = vst [vmem:[#allocation147_spill] sm:$0xff] %v6499_v53  ;;  %v4692_v53 = vld [vmem:[#allocation2 + $0x258] sm:$0xf0] }
 0x2cf   :  { %7897 = vst [vmem:[#allocation148_spill] sm:$0xff] %v6501_v36  ;;  %v6515_v14 = vpop.f32.mrf.mxu3  ;;  %2744 = vmatmul.bf16.gmra.mxu3 %v5987_v43  ;;  %v2601_v35 = vpop.f32.mrf.mxu2  ;;  %v253_v43 = vld [vmem:[%s7672_s0 + $0x548] sm:$0x3f] }
 0x2d0   :  { %7898 = vst [vmem:[#allocation149_spill] sm:$0xff] %v6515_v14  ;;  %v6518_v36 = vpop.f32.mrf.mxu0  ;;  %v6520_v17 = vadd.f32 %v2601_v35, %v2513_v29  ;;  %v6522_v46 = vpop.f32.mrf.mxu1  ;;  %v5082_v14 = vld [vmem:[#allocation2 + $0x254] sm:$0xf] }
 0x2d1   :  { %7899 = vst [vmem:[#allocation150_spill] sm:$0xff] %v6518_v36  ;;  %v4695_v34 = vor.u32 %v5082_v14, %v4692_v53 }
 0x2d2   :  { %7900 = vst [vmem:[#allocation151_spill] sm:$0xff] %v6520_v17 }
 0x2d3   :  { %7901 = vst [vmem:[#allocation152_spill] sm:$0xff] %v6522_v46  ;;  %3019 = vmatpush.bf16.msra.mxu3 %v4695_v34 }
 0x2d4   :  { %v921_v40 = vld.sshfl [vmem:[#allocation1 + $0x20] sm:$0xff pattern:$0x73625140]  ;;  %v922_v44 = vld.sshfl [vmem:[#allocation1 + $0x28] sm:$0xff pattern:$0x73625140] }
 0x2d5   :  { %v923_v52 = vld.sshfl [vmem:[#allocation1 + $0x30] sm:$0xff pattern:$0x73625140] }
 0x2d6   :  { %928 = vst [vmem:[#allocation1 + $0x20] ss:$4 sm:$0xff] %v245_v16  ;;  %v5066_v16 = vld [vmem:[#allocation2 + $0x1d4] sm:$0xf] }
 0x2d7   :  { %929 = vst [vmem:[#allocation1 + $0x21] ss:$4 sm:$0xff] %v247_v39  ;;  %v4628_v39 = vld [vmem:[#allocation2 + $0x1d8] sm:$0xf0]  ;;  %v6549_v14 = vpop.f32.mrf.mxu2 }
 0x2d8   :  { %930 = vst [vmem:[#allocation1 + $0x22] ss:$4 sm:$0xff] %v249_v30  ;;  %v4535_v30 = vor.u32 %v5042_v47, %v4532_v5  ;;  %v4631_v45 = vor.u32 %v5066_v16, %v4628_v39  ;;  %v257_v16 = vld [vmem:[%s7672_s0 + $0x564] sm:$0x3f] }
 0x2d9   :  { %931 = vst [vmem:[#allocation1 + $0x23] ss:$4 sm:$0xff] %v251_v6  ;;  %v255_v6 = vld [vmem:[%s7672_s0 + $0x556] sm:$0x3f] }
 0x2da   :  { %2845 = vmatpush.bf16.msra.mxu1 %v4535_v30  ;;  %2930 = vmatpush.bf16.msra.mxu2 %v4631_v45  ;;  %v2428_v45 = vpop.f32.mrf.mxu0  ;;  %7905 = vst [vmem:[#allocation156_spill] sm:$0xff] %v6549_v14  ;;  %v261_v30 = vld [vmem:[%s7672_s0 + $0x580] sm:$0x3f]  ;;  %v4524_v14 = vld [vmem:[#allocation2 + $0x108] sm:$0xf0] }
 0x2db   :  { %v2429_v53 = vadd.f32 %v2428_v45, %v5824_v23  ;;  %v265_v23 = vld [vmem:[%s7672_s0 + $0x59c] sm:$0x3f] }
 0x2e0   :  { %v936_v35 = vld.sshfl [vmem:[#allocation1 + $0x20] sm:$0xff pattern:$0x73625140]  ;;  %v937_v29 = vld.sshfl [vmem:[#allocation1 + $0x28] sm:$0xff pattern:$0x73625140] }
 0x2e1   :  { %v6530_v55 = vpack.c.bf16 %v936_v35, %v921_v40  ;;  %v6532_v5 = vpack.c.bf16 %v937_v29, %v922_v44  ;;  %v938_v47 = vld.sshfl [vmem:[#allocation1 + $0x30] sm:$0xff pattern:$0x73625140]  ;;  %v2517_v40 = vpop.f32.mrf.mxu1  ;;  %v267_v29 = vld [vmem:[%s7672_s0 + $0x5aa] sm:$0x3f] }
 0x2e2   :  { %v6537_v39 = vpack.c.bf16 %v938_v47, %v923_v52  ;;  %943 = vst [vmem:[#allocation1 + $0x20] ss:$4 sm:$0xff] %v253_v43  ;;  %v2518_v44 = vadd.f32 %v2517_v40, %v2429_v53  ;;  %v6547_v52 = vpop.f32.mrf.mxu3  ;;  %v263_v43 = vld [vmem:[%s7672_s0 + $0x58e] sm:$0x3f]  ;;  %v269_v40 = vld [vmem:[%s7672_s0 + $0x5b8] sm:$0x3f] }
 0x2e3   :  { %7902 = vst [vmem:[#allocation153_spill] sm:$0xff] %v6532_v5  ;;  %2457 = vmatmul.bf16.gmra.mxu0 %v6530_v55  ;;  %2546 = vmatmul.bf16.gmra.mxu1 %v6532_v5 }
 0x2e4   :  { %7903 = vst [vmem:[#allocation154_spill] sm:$0xff] %v6537_v39  ;;  %4795 = vmatmul.msk.bf16.gmra.mxu2 %vm1989_vm0, %v6537_v39 }
 0x2e5   :  { %944 = vst [vmem:[#allocation1 + $0x21] ss:$4 sm:$0xff] %v255_v6 }
 0x2e6   :  { %945 = vst [vmem:[#allocation1 + $0x22] ss:$4 sm:$0xff] %v257_v16  ;;  %v2606_v16 = vpop.f32.mrf.mxu2 }
 0x2e7   :  { %946 = vst [vmem:[#allocation1 + $0x23] ss:$4 sm:$0xff] %v259_v2  ;;  %v6565_v2 = vpop.f32.mrf.mxu0  ;;  %v6567_v45 = vadd.f32 %v2606_v16, %v2518_v44  ;;  %v273_v44 = vld [vmem:[%s7672_s0 + $0x5d4] sm:$0x3f] }
 0x2e8   :  { %7904 = vst [vmem:[#allocation155_spill] sm:$0xff] %v6547_v52  ;;  %v5080_v52 = vld [vmem:[#allocation2 + $0x244] sm:$0xf] }
 0x2e9   :  { %7907 = vst [vmem:[#allocation158_spill] sm:$0xff] %v6565_v2  ;;  %v6569_v53 = vpop.f32.mrf.mxu1 }
 0x2ea   :  { %v6563_v47 = vpop.f32.mrf.mxu3  ;;  %7908 = vst [vmem:[#allocation159_spill] sm:$0xff] %v6567_v45  ;;  %v275_v45 = vld [vmem:[%s7672_s0 + $0x5e2] sm:$0x3f] }
 0x2eb   :  { %7906 = vst [vmem:[#allocation157_spill] sm:$0xff] %v6563_v47  ;;  %v4620_v47 = vld [vmem:[#allocation2 + $0x1c8] sm:$0xf0] }
 0x2ec   :  { %7909 = vst [vmem:[#allocation160_spill] sm:$0xff] %v6569_v53 }
 0x2ee   :  { %v951_v6 = vld.sshfl [vmem:[#allocation1 + $0x20] sm:$0xff pattern:$0x73625140]  ;;  %v952_v34 = vld.sshfl [vmem:[#allocation1 + $0x28] sm:$0xff pattern:$0x73625140] }
 0x2ef   :  { %v953_v35 = vld.sshfl [vmem:[#allocation1 + $0x30] sm:$0xff pattern:$0x73625140] }
 0x2f0   :  { %958 = vst [vmem:[#allocation1 + $0x20] ss:$4 sm:$0xff] %v261_v30  ;;  %v271_v30 = vld [vmem:[%s7672_s0 + $0x5c6] sm:$0x3f] }
 0x2f1   :  { %959 = vst [vmem:[#allocation1 + $0x21] ss:$4 sm:$0xff] %v263_v43 }
 0x2f2   :  { %960 = vst [vmem:[#allocation1 + $0x22] ss:$4 sm:$0xff] %v265_v23 }
 0x2f3   :  { %961 = vst [vmem:[#allocation1 + $0x23] ss:$4 sm:$0xff] %v267_v29 }
 0x2fa   :  { %v966_v43 = vld.sshfl [vmem:[#allocation1 + $0x20] sm:$0xff pattern:$0x73625140]  ;;  %v967_v23 = vld.sshfl [vmem:[#allocation1 + $0x28] sm:$0xff pattern:$0x73625140] }
 0x2fb   :  { %v6577_v29 = vpack.c.bf16 %v966_v43, %v951_v6  ;;  %v6579_v39 = vpack.c.bf16 %v967_v23, %v952_v34  ;;  %v968_v5 = vld.sshfl [vmem:[#allocation1 + $0x30] sm:$0xff pattern:$0x73625140]  ;;  %v2433_v6 = vpop.f32.mrf.mxu0  ;;  %v6593_v34 = vpop.f32.mrf.mxu3 }
 0x2fc   :  { %v6584_v16 = vpack.c.bf16 %v968_v5, %v953_v35  ;;  %973 = vst [vmem:[#allocation1 + $0x20] ss:$4 sm:$0xff] %v269_v40  ;;  %v2434_v5 = vadd.f32 %v2433_v6, %v5871_v33  ;;  %v2522_v35 = vpop.f32.mrf.mxu1  ;;  %v6596_v23 = vpop.f32.mrf.mxu2  ;;  %v277_v40 = vld [vmem:[%s7672_s0 + $0x5f0] sm:$0x3f]  ;;  %v283_v33 = vld [vmem:[%s7672_s0 + $0x61a] sm:$0x3f] }
 0x2fd   :  { %7910 = vst [vmem:[#allocation161_spill] sm:$0xff] %v6577_v29  ;;  %2462 = vmatmul.bf16.gmra.mxu0 %v6577_v29  ;;  %2551 = vmatmul.bf16.gmra.mxu1 %v6579_v39 }
 0x2fe   :  { %7911 = vst [vmem:[#allocation162_spill] sm:$0xff] %v6579_v39  ;;  %4796 = vmatmul.msk.bf16.gmra.mxu2 %vm1989_vm0, %v6584_v16  ;;  %v2523_v43 = vadd.f32 %v2522_v35, %v2434_v5  ;;  %v5024_v5 = vld [vmem:[#allocation2 + $0x84] sm:$0xf]  ;;  %v4460_v35 = vld [vmem:[#allocation2 + $0x88] sm:$0xf0] }
 0x2ff   :  { %7912 = vst [vmem:[#allocation163_spill] sm:$0xff] %v6584_v16  ;;  %v4463_v17 = vor.u32 %v5024_v5, %v4460_v35 }
 0x300   :  { %974 = vst [vmem:[#allocation1 + $0x21] ss:$4 sm:$0xff] %v271_v30  ;;  %v279_v30 = vld [vmem:[%s7672_s0 + $0x5fe] sm:$0x3f] }
 0x301   :  { %975 = vst [vmem:[#allocation1 + $0x22] ss:$4 sm:$0xff] %v273_v44  ;;  %2757 = vmatpush.bf16.msra.mxu0 %v4463_v17  ;;  %v291_v17 = vld [vmem:[%s7672_s0 + $0x652] sm:$0x3f] }
 0x302   :  { %976 = vst [vmem:[#allocation1 + $0x23] ss:$4 sm:$0xff] %v275_v45  ;;  %v281_v45 = vld [vmem:[%s7672_s0 + $0x60c] sm:$0x3f] }
 0x303   :  { %7913 = vst [vmem:[#allocation164_spill] sm:$0xff] %v6593_v34  ;;  %v6610_v6 = vpop.f32.mrf.mxu3  ;;  %v6612_v2 = vpop.f32.mrf.mxu0  ;;  %v5064_v34 = vld [vmem:[#allocation2 + $0x1c4] sm:$0xf] }
 0x304   :  { %7914 = vst [vmem:[#allocation165_spill] sm:$0xff] %v6596_v23  ;;  %v5040_v23 = vld [vmem:[#allocation2 + $0x104] sm:$0xf]  ;;  %v2611_v53 = vpop.f32.mrf.mxu2  ;;  %v6616_v36 = vpop.f32.mrf.mxu1 }
 0x305   :  { %7915 = vst [vmem:[#allocation166_spill] sm:$0xff] %v6610_v6  ;;  %v6614_v46 = vadd.f32 %v2611_v53, %v2523_v43  ;;  %v4684_v6 = vld [vmem:[#allocation2 + $0x248] sm:$0xf0] }
 0x306   :  { %7916 = vst [vmem:[#allocation167_spill] sm:$0xff] %v6612_v2  ;;  %v4687_v5 = vor.u32 %v5080_v52, %v4684_v6 }
 0x307   :  { %7917 = vst [vmem:[#allocation168_spill] sm:$0xff] %v6614_v46 }
 0x308   :  { %7918 = vst [vmem:[#allocation169_spill] sm:$0xff] %v6616_v36  ;;  %3020 = vmatpush.bf16.msra.mxu3 %v4687_v5 }
 0x309   :  { %v981_v16 = vld.sshfl [vmem:[#allocation1 + $0x20] sm:$0xff pattern:$0x73625140]  ;;  %v982_v44 = vld.sshfl [vmem:[#allocation1 + $0x28] sm:$0xff pattern:$0x73625140] }
 0x30a   :  { %v983_v39 = vld.sshfl [vmem:[#allocation1 + $0x30] sm:$0xff pattern:$0x73625140] }
 0x30b   :  { %988 = vst [vmem:[#allocation1 + $0x20] ss:$4 sm:$0xff] %v277_v40  ;;  %v4527_v40 = vor.u32 %v5040_v23, %v4524_v14  ;;  %v6631_v23 = vpop.f32.mrf.mxu3  ;;  %v2438_v52 = vpop.f32.mrf.mxu0 }
 0x30c   :  { %989 = vst [vmem:[#allocation1 + $0x21] ss:$4 sm:$0xff] %v279_v30  ;;  %v4623_v30 = vor.u32 %v5064_v34, %v4620_v47  ;;  %v289_v34 = vld [vmem:[%s7672_s0 + $0x644] sm:$0x3f]  ;;  %v6643_v6 = vpop.f32.mrf.mxu2 }
 0x30d   :  { %990 = vst [vmem:[#allocation1 + $0x22] ss:$4 sm:$0xff] %v281_v45  ;;  %v285_v45 = vld [vmem:[%s7672_s0 + $0x628] sm:$0x3f]  ;;  %2846 = vmatpush.bf16.msra.mxu1 %v4527_v40  ;;  %v293_v40 = vld [vmem:[%s7672_s0 + $0x660] sm:$0x3f] }
 0x30e   :  { %991 = vst [vmem:[#allocation1 + $0x23] ss:$4 sm:$0xff] %v283_v33  ;;  %v287_v33 = vld [vmem:[%s7672_s0 + $0x636] sm:$0x3f]  ;;  %2931 = vmatpush.bf16.msra.mxu2 %v4623_v30  ;;  %v295_v30 = vld [vmem:[%s7672_s0 + $0x66e] sm:$0x3f] }
 0x30f   :  { %7921 = vst [vmem:[#allocation172_spill] sm:$0xff] %v6631_v23  ;;  %v4596_v23 = vld [vmem:[#allocation2 + $0x198] sm:$0xf0] }
 0x310   :  { %7923 = vst [vmem:[#allocation174_spill] sm:$0xff] %v6643_v6 }
 0x315   :  { %v996_v53 = vld.sshfl [vmem:[#allocation1 + $0x20] sm:$0xff pattern:$0x73625140]  ;;  %v997_v43 = vld.sshfl [vmem:[#allocation1 + $0x28] sm:$0xff pattern:$0x73625140] }
 0x316   :  { %v6624_v35 = vpack.c.bf16 %v996_v53, %v981_v16  ;;  %v6626_v14 = vpack.c.bf16 %v997_v43, %v982_v44  ;;  %v998_v47 = vld.sshfl [vmem:[#allocation1 + $0x30] sm:$0xff pattern:$0x73625140]  ;;  %v2439_v16 = vadd.f32 %v2438_v52, %v5924_v11  ;;  %v297_v11 = vld [vmem:[%s7672_s0 + $0x67c] sm:$0x3f]  ;;  %v2616_v52 = vpop.f32.mrf.mxu2 }
 0x317   :  { %v6633_v46 = vpack.c.bf16 %v998_v47, %v983_v39  ;;  %1003 = vst [vmem:[#allocation1 + $0x20] ss:$4 sm:$0xff] %v285_v45  ;;  %v2527_v39 = vpop.f32.mrf.mxu1  ;;  %v6651_v45 = vpop.f32.mrf.mxu3  ;;  %v299_v43 = vld [vmem:[%s7672_s0 + $0x68a] sm:$0x3f]  ;;  %v5062_v47 = vld [vmem:[#allocation2 + $0x1b4] sm:$0xf] }
 0x318   :  { %7919 = vst [vmem:[#allocation170_spill] sm:$0xff] %v6624_v35  ;;  %2467 = vmatmul.bf16.gmra.mxu0 %v6624_v35  ;;  %2556 = vmatmul.bf16.gmra.mxu1 %v6626_v14  ;;  %v2528_v44 = vadd.f32 %v2527_v39, %v2439_v16  ;;  %v5078_v16 = vld [vmem:[#allocation2 + $0x234] sm:$0xf]  ;;  %v4676_v39 = vld [vmem:[#allocation2 + $0x238] sm:$0xf0] }
 0x319   :  { %7920 = vst [vmem:[#allocation171_spill] sm:$0xff] %v6626_v14  ;;  %4797 = vmatmul.msk.bf16.gmra.mxu2 %vm1989_vm0, %v6633_v46  ;;  %v5060_v14 = vld [vmem:[#allocation2 + $0x1a4] sm:$0xf]  ;;  %v4679_v36 = vor.u32 %v5078_v16, %v4676_v39  ;;  %v4660_v35 = vld [vmem:[#allocation2 + $0x218] sm:$0xf0] }
 0x31a   :  { %7922 = vst [vmem:[#allocation173_spill] sm:$0xff] %v6633_v46  ;;  %v6659_v46 = vpop.f32.mrf.mxu0  ;;  %v6661_v6 = vadd.f32 %v2616_v52, %v2528_v44  ;;  %v303_v44 = vld [vmem:[%s7672_s0 + $0x6a6] sm:$0x3f]  ;;  %v5074_v52 = vld [vmem:[#allocation2 + $0x214] sm:$0xf] }
 0x31b   :  { %1004 = vst [vmem:[#allocation1 + $0x21] ss:$4 sm:$0xff] %v287_v33  ;;  %3021 = vmatpush.bf16.msra.mxu3 %v4679_v36  ;;  %v5056_v36 = vld [vmem:[#allocation2 + $0x184] sm:$0xf] }
 0x31c   :  { %1005 = vst [vmem:[#allocation1 + $0x22] ss:$4 sm:$0xff] %v289_v34  ;;  %v4612_v34 = vld [vmem:[#allocation2 + $0x1b8] sm:$0xf0] }
 0x31d   :  { %1006 = vst [vmem:[#allocation1 + $0x23] ss:$4 sm:$0xff] %v291_v17  ;;  %v4615_v17 = vor.u32 %v5062_v47, %v4612_v34  ;;  %v5058_v34 = vld [vmem:[#allocation2 + $0x194] sm:$0xf] }
 0x31e   :  { %7924 = vst [vmem:[#allocation175_spill] sm:$0xff] %v6651_v45 }
 0x31f   :  { %7925 = vst [vmem:[#allocation176_spill] sm:$0xff] %v6659_v46  ;;  %2932 = vmatpush.bf16.msra.mxu2 %v4615_v17  ;;  %v6663_v2 = vpop.f32.mrf.mxu1  ;;  %v6665_v45 = vpop.f32.mrf.mxu3  ;;  %v305_v17 = vld [vmem:[%s7672_s0 + $0x6b4] sm:$0x3f] }
 0x320   :  { %7926 = vst [vmem:[#allocation177_spill] sm:$0xff] %v6661_v6  ;;  %v307_v6 = vld [vmem:[%s7672_s0 + $0x6c2] sm:$0x3f] }
 0x321   :  { %7927 = vst [vmem:[#allocation178_spill] sm:$0xff] %v6663_v2 }
 0x322   :  { %7928 = vst [vmem:[#allocation179_spill] sm:$0xff] %v6665_v45  ;;  %v4599_v45 = vor.u32 %v5058_v34, %v4596_v23  ;;  %v2443_v23 = vpop.f32.mrf.mxu0 }
 0x324   :  { %v1011_v33 = vld.sshfl [vmem:[#allocation1 + $0x20] sm:$0xff pattern:$0x73625140]  ;;  %v1012_v5 = vld.sshfl [vmem:[#allocation1 + $0x28] sm:$0xff pattern:$0x73625140] }
 0x325   :  { %v1013_v53 = vld.sshfl [vmem:[#allocation1 + $0x30] sm:$0xff pattern:$0x73625140] }
 0x326   :  { %1018 = vst [vmem:[#allocation1 + $0x20] ss:$4 sm:$0xff] %v293_v40  ;;  %v4604_v40 = vld [vmem:[#allocation2 + $0x1a8] sm:$0xf0] }
 0x327   :  { %1019 = vst [vmem:[#allocation1 + $0x21] ss:$4 sm:$0xff] %v295_v30  ;;  %v5076_v30 = vld [vmem:[#allocation2 + $0x224] sm:$0xf]  ;;  %v4607_v47 = vor.u32 %v5060_v14, %v4604_v40 }
 0x328   :  { %1020 = vst [vmem:[#allocation1 + $0x22] ss:$4 sm:$0xff] %v297_v11  ;;  %v4668_v11 = vld [vmem:[#allocation2 + $0x228] sm:$0xf0] }
 0x329   :  { %1021 = vst [vmem:[#allocation1 + $0x23] ss:$4 sm:$0xff] %v299_v43  ;;  %v301_v43 = vld [vmem:[%s7672_s0 + $0x698] sm:$0x3f]  ;;  %v4671_v2 = vor.u32 %v5076_v30, %v4668_v11  ;;  %2933 = vmatpush.bf16.msra.mxu2 %v4607_v47  ;;  %v6692_v30 = vpop.f32.mrf.mxu3  ;;  %v4591_v11 = vor.u32 %v5056_v36, %v4588_v26  ;;  %v4652_v47 = vld [vmem:[#allocation2 + $0x208] sm:$0xf0] }
 0x32a   :  { %v315_v26 = vld [vmem:[%s7672_s0 + $0x6fa] sm:$0x3f] }
 0x32b   :  { %3022 = vmatpush.bf16.msra.mxu3 %v4671_v2  ;;  %v309_v2 = vld [vmem:[%s7672_s0 + $0x6d0] sm:$0x3f] }
 0x32d   :  { %2934 = vmatpush.bf16.msra.mxu2 %v4599_v45 }
 0x330   :  { %v1026_v16 = vld.sshfl [vmem:[#allocation1 + $0x20] sm:$0xff pattern:$0x73625140]  ;;  %v1027_v39 = vld.sshfl [vmem:[#allocation1 + $0x28] sm:$0xff pattern:$0x73625140] }
 0x331   :  { %v6679_v14 = vpack.c.bf16 %v1026_v16, %v1011_v33  ;;  %v6681_v40 = vpack.c.bf16 %v1027_v39, %v1012_v5  ;;  %v1028_v46 = vld.sshfl [vmem:[#allocation1 + $0x30] sm:$0xff pattern:$0x73625140]  ;;  %v6689_v33 = vpop.f32.mrf.mxu2  ;;  %v4663_v5 = vor.u32 %v5074_v52, %v4660_v35  ;;  %2935 = vmatpush.bf16.msra.mxu2 %v4591_v11  ;;  %v311_v35 = vld [vmem:[%s7672_s0 + $0x6de] sm:$0x3f]  ;;  %v6706_v52 = vpop.f32.mrf.mxu0 }
 0x332   :  { %v6683_v29 = vpack.c.bf16 %v1028_v46, %v1013_v53  ;;  %1033 = vst [vmem:[#allocation1 + $0x20] ss:$4 sm:$0xff] %v301_v43  ;;  %v2444_v46 = vadd.f32 %v2443_v23, %v5977_v19  ;;  %v2532_v53 = vpop.f32.mrf.mxu1  ;;  %v5072_v43 = vld [vmem:[#allocation2 + $0x204] sm:$0xf]  ;;  %v5102_v39 = vld [vmem:[#allocation2 + $0x2f4] sm:$0xf]  ;;  %v6712_v23 = vpop.f32.mrf.mxu3 }
 0x333   :  { %7929 = vst [vmem:[#allocation180_spill] sm:$0xff] %v6681_v40  ;;  %2472 = vmatmul.bf16.gmra.mxu0 %v6679_v14  ;;  %2561 = vmatmul.bf16.gmra.mxu1 %v6681_v40  ;;  %v313_v19 = vld [vmem:[%s7672_s0 + $0x6ec] sm:$0x3f] }
 0x334   :  { %7930 = vst [vmem:[#allocation181_spill] sm:$0xff] %v6683_v29  ;;  %4798 = vmatmul.msk.bf16.gmra.mxu2 %vm1989_vm0, %v6683_v29  ;;  %v2533_v34 = vadd.f32 %v2532_v53, %v2444_v46  ;;  %3023 = vmatpush.bf16.msra.mxu3 %v4663_v5  ;;  %v4772_v46 = vld [vmem:[#allocation2 + $0x2f8] sm:$0xf0]  ;;  %v5104_v53 = vld [vmem:[#allocation2 + $0x304] sm:$0xf] }
 0x335   :  { %1034 = vst [vmem:[#allocation1 + $0x21] ss:$4 sm:$0xff] %v303_v44  ;;  %v4655_v44 = vor.u32 %v5072_v43, %v4652_v47  ;;  %v4775_v11 = vor.u32 %v5102_v39, %v4772_v46  ;;  %v4780_v43 = vld [vmem:[#allocation2 + $0x308] sm:$0xf0] }
 0x336   :  { %1035 = vst [vmem:[#allocation1 + $0x22] ss:$4 sm:$0xff] %v305_v17  ;;  %v4783_v47 = vor.u32 %v5104_v53, %v4780_v43 }
 0x337   :  { %1036 = vst [vmem:[#allocation1 + $0x23] ss:$4 sm:$0xff] %v307_v6  ;;  %3106 = vmatpush.bf16.msrb.mxu0 %v4775_v11 }
 0x338   :  { %3024 = vmatpush.bf16.msra.mxu3 %v4655_v44  ;;  %3202 = vmatpush.bf16.msrb.mxu1 %v4783_v47 }
 0x339   :  { %v2621_v17 = vpop.f32.mrf.mxu2 }
 0x33a   :  { %v6708_v36 = vadd.f32 %v2621_v17, %v2533_v34  ;;  %v6710_v5 = vpop.f32.mrf.mxu1  ;;  %v2448_v34 = vpop.f32.mrf.mxu0 }
 0x33b   :  { %3025 = vmatmul.bf16.vlgmr.msra.gmra.mxu3 %v6020_v51  ;;  %v2449_v17 = vadd.f32 %v2448_v34, %v6015_v9  ;;  %v6718_v40 = vpop.f32.mrf.mxu3  ;;  %v5100_v34 = vld [vmem:[#allocation2 + $0x2e4] sm:$0xf] }
 0x33c   :  { %7931 = vst [vmem:[#allocation182_spill] sm:$0xff] %v6708_v36 }
 0x33e   :  { %v1041_v6 = vld.sshfl [vmem:[#allocation1 + $0x20] sm:$0xff pattern:$0x73625140]  ;;  %v1042_v45 = vld.sshfl [vmem:[#allocation1 + $0x28] sm:$0xff pattern:$0x73625140] }
 0x33f   :  { %v1043_v16 = vld.sshfl [vmem:[#allocation1 + $0x30] sm:$0xff pattern:$0x73625140] }
 0x340   :  { %1048 = vst [vmem:[#allocation1 + $0x20] ss:$4 sm:$0xff] %v309_v2 }
 0x341   :  { %1049 = vst [vmem:[#allocation1 + $0x21] ss:$4 sm:$0xff] %v311_v35  ;;  %v6715_v44 = vpop.f32.mrf.mxu2 }
 0x342   :  { %1050 = vst [vmem:[#allocation1 + $0x22] ss:$4 sm:$0xff] %v313_v19  ;;  %v2537_v29 = vpop.f32.mrf.mxu1 }
 0x343   :  { %1051 = vst [vmem:[#allocation1 + $0x23] ss:$4 sm:$0xff] %v315_v26  ;;  %v2538_v2 = vadd.f32 %v2537_v29, %v2449_v17  ;;  %v6730_v26 = vpop.f32.mrf.mxu0  ;;  %v4764_v17 = vld [vmem:[#allocation2 + $0x2e8] sm:$0xf0] }
 0x349   :  { %v2626_v9 = vpop.f32.mrf.mxu2 }
 0x34a   :  { %v1056_v36 = vld.sshfl [vmem:[#allocation1 + $0x20] sm:$0xff pattern:$0x73625140]  ;;  %v1057_v35 = vld.sshfl [vmem:[#allocation1 + $0x28] sm:$0xff pattern:$0x73625140]  ;;  %v6732_v29 = vadd.f32 %v2626_v9, %v2538_v2  ;;  %v6734_v53 = vpop.f32.mrf.mxu1 }
 0x34b   :  { %v6720_v39 = vpack.c.bf16 %v1056_v36, %v1041_v6  ;;  %v6722_v51 = vpack.c.bf16 %v1057_v35, %v1042_v45  ;;  %v1058_v19 = vld.sshfl [vmem:[#allocation1 + $0x30] sm:$0xff pattern:$0x73625140]  ;;  %v6736_v6 = vpop.f32.mrf.mxu3  ;;  %3030 = vmatmul.bf16.gmra.mxu3 %v6063_v25  ;;  %v4767_v35 = vor.u32 %v5100_v34, %v4764_v17 }
 0x34c   :  { %v6724_v46 = vpack.c.bf16 %v1058_v19, %v1043_v16  ;;  %v2453_v16 = vpop.f32.mrf.mxu0 }
 0x34d   :  { %7932 = vst [vmem:[#allocation183_spill] sm:$0xff] %v6722_v51  ;;  %2477 = vmatmul.bf16.gmra.mxu0 %v6720_v39  ;;  %2566 = vmatmul.bf16.gmra.mxu1 %v6722_v51  ;;  %v2454_v36 = vadd.f32 %v2453_v16, %v6055_v12  ;;  %v4748_v51 = vld [vmem:[#allocation2 + $0x2c8] sm:$0xf0] }
 0x34e   :  { %7933 = vst [vmem:[#allocation184_spill] sm:$0xff] %v6724_v46  ;;  %4799 = vmatmul.msk.bf16.gmra.mxu2 %vm1989_vm0, %v6724_v46  ;;  %3107 = vmatpush.bf16.msrb.mxu0 %v4767_v35  ;;  %v5096_v46 = vld [vmem:[#allocation2 + $0x2c4] sm:$0xf] }
 0x351   :  { %v6739_v45 = vpop.f32.mrf.mxu2 }
 0x352   :  { %v2542_v43 = vpop.f32.mrf.mxu1 }
 0x353   :  { %v6742_v11 = vpop.f32.mrf.mxu3  ;;  %v2543_v47 = vadd.f32 %v2542_v43, %v2454_v36 }
 0x354   :  { %v6751_v9 = vpop.f32.mrf.mxu0 }
 0x359   :  { %v2631_v2 = vpop.f32.mrf.mxu2 }
 0x35a   :  { %v6747_v25 = vadd.f32 %v2631_v2, %v2543_v47  ;;  %v6754_v12 = vpop.f32.mrf.mxu1 }
 0x35b   :  { %v6749_v19 = vpop.f32.mrf.mxu3  ;;  %3035 = vmatmul.bf16.gmra.mxu3 %v6104_v49 }
 0x35d   :  { %2758 = vmatmul.bf16.vlgmr.msra.gmra.mxu0 %v5329_v56  ;;  %2847 = vmatmul.bf16.vlgmr.msra.gmra.mxu1 %v5331_v59 }
 0x35e   :  { %2936 = vmatmul.bf16.vlgmr.msra.gmra.mxu2 %v5333_v60 }
 0x360   :  { %v2458_v60 = vpop.f32.mrf.mxu0 }
 0x361   :  { %v6756_v56 = vpop.f32.mrf.mxu2  ;;  %v2459_v16 = vadd.f32 %v2458_v60, %v6101_v1 }
 0x362   :  { %v2547_v36 = vpop.f32.mrf.mxu1 }
 0x363   :  { %v6758_v59 = vpop.f32.mrf.mxu3  ;;  %v2548_v43 = vadd.f32 %v2547_v36, %v2459_v16 }
 0x368   :  { %v6771_v2 = vpop.f32.mrf.mxu0 }
 0x369   :  { %v2636_v49 = vpop.f32.mrf.mxu2 }
 0x36a   :  { %v6767_v34 = vadd.f32 %v2636_v49, %v2548_v43  ;;  %v6773_v1 = vpop.f32.mrf.mxu1 }
 0x36b   :  { %v6764_v47 = vpop.f32.mrf.mxu3  ;;  %3040 = vmatmul.bf16.gmra.mxu3 %v6150_v13 }
 0x36c   :  { %7934 = vst [vmem:[#allocation185_spill] sm:$0xff] %v6767_v34 }
 0x36d   :  { %2763 = vmatmul.bf16.gmra.mxu0 %v5365_v18  ;;  %2852 = vmatmul.bf16.gmra.mxu1 %v5367_v21  ;;  %v5098_v18 = vld [vmem:[#allocation2 + $0x2d4] sm:$0xf]  ;;  %v4756_v21 = vld [vmem:[#allocation2 + $0x2d8] sm:$0xf0] }
 0x36e   :  { %2941 = vmatmul.bf16.gmra.mxu2 %v5369_v22  ;;  %v4759_v13 = vor.u32 %v5098_v18, %v4756_v21 }
 0x370   :  { %3108 = vmatpush.bf16.msrb.mxu0 %v4759_v13  ;;  %v2115_v13 = vadd.f32 %v6184_v10, %v5537_v20  ;;  %v7943_v10 = vld [vmem:[#allocation109_spill] sm:$0xff] }
 0x371   :  { %v6778_v22 = vpop.f32.mrf.mxu2 }
 0x372   :  { %7935 = vst [vmem:[#allocation186_spill] sm:$0xff] %v6778_v22 }
 0x373   :  { %v6769_v17 = vpop.f32.mrf.mxu3 }
 0x37a   :  { %v2463_v60 = vpop.f32.mrf.mxu0  ;;  %v2552_v36 = vpop.f32.mrf.mxu1 }
 0x37b   :  { %v6780_v35 = vpop.f32.mrf.mxu3  ;;  %3045 = vmatmul.bf16.gmra.mxu3 %v6197_v37  ;;  %v2464_v16 = vadd.f32 %v2463_v60, %v6148_v50 }
 0x37d   :  { %2768 = vmatmul.bf16.gmra.mxu0 %v5401_v38  ;;  %2857 = vmatmul.bf16.gmra.mxu1 %v5403_v41  ;;  %v2553_v43 = vadd.f32 %v2552_v36, %v2464_v16  ;;  %v7940_v16 = vld [vmem:[#allocation11_spill] sm:$0xff]  ;;  %v7941_v36 = vld [vmem:[#allocation108_spill] sm:$0xff] }
 0x37e   :  { %2946 = vmatmul.bf16.gmra.mxu2 %v5405_v42 }
 0x381   :  { %v2641_v41 = vpop.f32.mrf.mxu2 }
 0x382   :  { %v6786_v49 = vadd.f32 %v2641_v41, %v2553_v43  ;;  %v6793_v18 = vpop.f32.mrf.mxu0  ;;  %v6796_v50 = vpop.f32.mrf.mxu1  ;;  %v7942_v41 = vld [vmem:[#allocation12_spill] sm:$0xff] }
 0x383   :  { %v6784_v38 = vpop.f32.mrf.mxu3  ;;  %7937 = vst [vmem:[#allocation188_spill] sm:$0xff] %v6793_v18 }
 0x384   :  { %7936 = vst [vmem:[#allocation187_spill] sm:$0xff] %v6786_v49  ;;  %v4751_v49 = vor.u32 %v5096_v46, %v4748_v51  ;;  %v7944_v51 = vld [vmem:[#allocation13_spill] sm:$0xff]  ;;  %v7945_v46 = vld [vmem:[#allocation14_spill] sm:$0xff] }
 0x385   :  { %7938 = vst [vmem:[#allocation189_spill] sm:$0xff] %v6796_v50 }
 0x386   :  { %3109 = vmatpush.bf16.msrb.mxu0 %v4751_v49 }
 0x389   :  { %v6798_v37 = vpop.f32.mrf.mxu2 }
 0x38a   :  { %7939 = vst [vmem:[#allocation190_spill] sm:$0xff] %v6798_v37 }
 0x38b   :  { %v6791_v42 = vpop.f32.mrf.mxu3  ;;  %3050 = vmatmul.bf16.gmra.mxu3 %v6243_v3 }
 0x38d   :  { %2773 = vmatmul.bf16.gmra.mxu0 %v5437_v4  ;;  %2862 = vmatmul.bf16.gmra.mxu1 %v5439_v7 }
 0x38e   :  { %2951 = vmatmul.bf16.gmra.mxu2 %v5441_v8  ;;  %v2204_v8 = vadd.f32 %v6186_v48, %v2115_v13 }
 0x390   :  { %v2293_v43 = vadd.f32 %v7941_v36, %v2204_v8 }
 0x392   :  { %v2382_v48 = vadd.f32 %v7943_v10, %v2293_v43 }
 0x393   :  { %v6800_v21 = vpop.f32.mrf.mxu3 }
 0x395   :  { %v2468_v4 = vpop.f32.mrf.mxu0  ;;  %v2557_v60 = vpop.f32.mrf.mxu1 }
 0x396   :  { %v2469_v7 = vadd.f32 %v2468_v4, %v6194_v0 }
 0x398   :  { %v2558_v3 = vadd.f32 %v2557_v60, %v2469_v7 }
 0x39b   :  { %3055 = vmatmul.bf16.gmra.mxu3 %v6290_v61  ;;  %v6811_v0 = vpop.f32.mrf.mxu3  ;;  %v7946_v61 = vld [vmem:[#allocation15_spill] sm:$0xff] }
 0x39c   :  { %v2646_v37 = vpop.f32.mrf.mxu2 }
 0x39d   :  { %2778 = vmatmul.bf16.gmra.mxu0 %v5473_v28  ;;  %2867 = vmatmul.bf16.gmra.mxu1 %v7940_v16  ;;  %v2647_v13 = vadd.f32 %v2646_v37, %v2558_v3  ;;  %v2470_v28 = vpop.f32.mrf.mxu0  ;;  %v2559_v16 = vpop.f32.mrf.mxu1  ;;  %v2120_v37 = vadd.f32 %v6231_v58, %v5537_v20 }
 0x39e   :  { %2956 = vmatmul.bf16.gmra.mxu2 %v7942_v41  ;;  %v2471_v4 = vadd.f32 %v2470_v28, %v2382_v48  ;;  %v7948_v48 = vld [vmem:[#allocation110_spill] sm:$0xff] }
 0x39f   :  { %v3336_v41 = vmax.f32 %v2647_v13, 0.0  ;;  %v2209_v10 = vadd.f32 %v6233_v32, %v2120_v37  ;;  %v7953_v37 = vld [vmem:[#allocation18_spill] sm:$0xff] }
 0x3a0   :  { %v2560_v7 = vadd.f32 %v2559_v16, %v2471_v4  ;;  %v7949_v4 = vld [vmem:[#allocation113_spill] sm:$0xff] }
 0x3a1   :  { %v2298_v16 = vadd.f32 %v7949_v4, %v2209_v10 }
 0x3a3   :  { %v6814_v36 = vpop.f32.mrf.mxu3 }
 0x3a4   :  { %v2648_v60 = vpop.f32.mrf.mxu2 }
 0x3a5   :  { %v2649_v8 = vadd.f32 %v2648_v60, %v2560_v7  ;;  %v7950_v60 = vld [vmem:[#allocation114_spill] sm:$0xff] }
 0x3a7   :  { %v3338_v50 = vmax.f32 %v2649_v8, 0.0  ;;  %v2387_v8 = vadd.f32 %v7950_v60, %v2298_v16 }
 0x3a9   :  { %v6819_v49 = vpack.c.bf16 %v3338_v50, %v3336_v41 }
 0x3ab   :  { %7947 = vst [vmem:[#allocation11_spill] sm:$0xff] %v6819_v49  ;;  %3060 = vmatmul.bf16.gmra.mxu3 %v6334_v63  ;;  %v6826_v28 = vpop.f32.mrf.mxu3  ;;  %v7952_v49 = vld [vmem:[#allocation17_spill] sm:$0xff] }
 0x3ad   :  { %2783 = vmatmul.bf16.gmra.mxu0 %v7944_v51  ;;  %2872 = vmatmul.bf16.gmra.mxu1 %v7945_v46 }
 0x3ae   :  { %2961 = vmatmul.bf16.gmra.mxu2 %v7946_v61  ;;  %v7951_v61 = vld [vmem:[#allocation16_spill] sm:$0xff] }
 0x3b0   :  { %v2473_v3 = vpop.f32.mrf.mxu0  ;;  %v2562_v43 = vpop.f32.mrf.mxu1 }
 0x3b1   :  { %v2474_v13 = vadd.f32 %v2473_v3, %v7948_v48  ;;  %v5094_v3 = vld [vmem:[#allocation2 + $0x2b4] sm:$0xf]  ;;  %v4740_v48 = vld [vmem:[#allocation2 + $0x2b8] sm:$0xf0] }
 0x3b2   :  { %v4743_v10 = vor.u32 %v5094_v3, %v4740_v48  ;;  %v7957_v3 = vld [vmem:[#allocation117_spill] sm:$0xff] }
 0x3b3   :  { %v2563_v7 = vadd.f32 %v2562_v43, %v2474_v13  ;;  %v6830_v58 = vpop.f32.mrf.mxu3 }
 0x3b4   :  { %3110 = vmatpush.bf16.msrb.mxu0 %v4743_v10 }
 0x3b7   :  { %v2651_v50 = vpop.f32.mrf.mxu2 }
 0x3b8   :  { %v2652_v41 = vadd.f32 %v2651_v50, %v2563_v7  ;;  %v2475_v51 = vpop.f32.mrf.mxu0  ;;  %v2564_v63 = vpop.f32.mrf.mxu1 }
 0x3b9   :  { %v2476_v46 = vadd.f32 %v2475_v51, %v2387_v8  ;;  %v7955_v8 = vld [vmem:[#allocation115_spill] sm:$0xff] }
 0x3ba   :  { %v3340_v4 = vmax.f32 %v2652_v41, 0.0  ;;  %v2125_v50 = vadd.f32 %v7955_v8, %v5537_v20  ;;  %v7961_v8 = vld [vmem:[#allocation23_spill] sm:$0xff] }
 0x3bb   :  { %v2565_v32 = vadd.f32 %v2564_v63, %v2476_v46  ;;  %3065 = vmatmul.bf16.gmra.mxu3 %v6383_v54  ;;  %v4874_v46 = vld [vmem:[#allocation5 + $0x70] sm:$0xf]  ;;  %v5121_v63 = vld [vmem:[#allocation5 + $0x74] sm:$0xf0]  ;;  %v7958_v54 = vld [vmem:[#allocation120_spill] sm:$0xff] }
 0x3bc   :  { %v4875_v10 = vor.u32 %v5121_v63, %v4874_v46 }
 0x3bd   :  { %2788 = vmatmul.bf16.gmra.mxu0 %v7951_v61  ;;  %2877 = vmatmul.bf16.gmra.mxu1 %v7952_v49  ;;  %v7956_v61 = vld [vmem:[#allocation116_spill] sm:$0xff] }
 0x3be   :  { %2966 = vmatmul.bf16.gmra.mxu2 %v7953_v37  ;;  %v3026_v7 = vpop.f32.mrf.mxu3  ;;  %v2214_v37 = vadd.f32 %v7956_v61, %v2125_v50 }
 0x3bf   :  { %v2653_v43 = vpop.f32.mrf.mxu2  ;;  %3578 = vmatpush.bf16.msrb.mxu2 %v4875_v10 }
 0x3c0   :  { %v2654_v13 = vadd.f32 %v2653_v43, %v2565_v32  ;;  %v2303_v32 = vadd.f32 %v7958_v54, %v2214_v37  ;;  %v7959_v43 = vld [vmem:[#allocation21_spill] sm:$0xff] }
 0x3c2   :  { %v3342_v16 = vmax.f32 %v2654_v13, 0.0  ;;  %v7960_v13 = vld [vmem:[#allocation22_spill] sm:$0xff]  ;;  %v2392_v50 = vadd.f32 %v6351_v62, %v2303_v32 }
 0x3c4   :  { %v6836_v60 = vpack.c.bf16 %v3342_v16, %v3340_v4  ;;  %v4938_v4 = vld [vmem:[#allocation5 + $0xf0] sm:$0xf]  ;;  %v5137_v16 = vld [vmem:[#allocation5 + $0xf4] sm:$0xf0] }
 0x3c6   :  { %7954 = vst [vmem:[#allocation108_spill] sm:$0xff] %v6836_v60  ;;  %v3028_v18 = vpop.f32.mrf.mxu3  ;;  %v4939_v60 = vor.u32 %v5137_v16, %v4938_v4 }
 0x3c8   :  { %3667 = vmatpush.bf16.msrb.mxu3 %v4939_v60 }
 0x3ca   :  { %v2478_v49 = vpop.f32.mrf.mxu0  ;;  %v2567_v51 = vpop.f32.mrf.mxu1 }
 0x3cb   :  { %v2479_v48 = vadd.f32 %v2478_v49, %v7957_v3  ;;  %3070 = vmatmul.bf16.gmra.mxu3 %v6433_v15  ;;  %v5162_v3 = vld [vmem:[%s7674_s2] sm:$0x3] }
 0x3cd   :  { %v2568_v41 = vadd.f32 %v2567_v51, %v2479_v48  ;;  %2793 = vmatmul.bf16.gmra.mxu0 %v7959_v43  ;;  %2882 = vmatmul.bf16.gmra.mxu1 %v7960_v13  ;;  %v6851_v48 = vperm.slane %v5162_v3, 1  ;;  %v7966_v3 = vld [vmem:[#allocation132_spill] sm:$0xff] }
 0x3ce   :  { %2971 = vmatmul.bf16.gmra.mxu2 %v7961_v8  ;;  %v3031_v37 = vpop.f32.mrf.mxu3  ;;  %v7962_v8 = vld [vmem:[#allocation28_spill] sm:$0xff] }
 0x3cf   :  { %v2671_v60 = vadd.f32 %v6368_v31, %v6851_v48 }
 0x3d1   :  { %v2656_v61 = vpop.f32.mrf.mxu2 }
 0x3d2   :  { %v2657_v49 = vadd.f32 %v2656_v61, %v2568_v41  ;;  %v2480_v46 = vpop.f32.mrf.mxu0  ;;  %v2569_v63 = vpop.f32.mrf.mxu1  ;;  %v7964_v61 = vld [vmem:[#allocation30_spill] sm:$0xff] }
 0x3d3   :  { %v2481_v51 = vadd.f32 %v2480_v46, %v2392_v50  ;;  %v7963_v50 = vld [vmem:[#allocation29_spill] sm:$0xff] }
 0x3d4   :  { %v3344_v41 = vmax.f32 %v2657_v49, 0.0  ;;  %v5092_v46 = vld [vmem:[#allocation2 + $0x2a4] sm:$0xf] }
 0x3d5   :  { %v2570_v54 = vadd.f32 %v2569_v63, %v2481_v51  ;;  %v4732_v63 = vld [vmem:[#allocation2 + $0x2a8] sm:$0xf0] }
 0x3d6   :  { %v3033_v4 = vpop.f32.mrf.mxu3  ;;  %v4735_v31 = vor.u32 %v5092_v46, %v4732_v63 }
 0x3d8   :  { %3111 = vmatpush.bf16.msrb.mxu0 %v4735_v31 }
 0x3d9   :  { %v2658_v10 = vpop.f32.mrf.mxu2 }
 0x3da   :  { %v2659_v62 = vadd.f32 %v2658_v10, %v2570_v54  ;;  %v2759_v32 = vpop.f32.mrf.mxu0  ;;  %v2848_v43 = vpop.f32.mrf.mxu1  ;;  %v2673_v54 = vadd.f32 %v7966_v3, %v6851_v48  ;;  %v4866_v3 = vld [vmem:[#allocation5 + $0x60] sm:$0xf] }
 0x3db   :  { %v2760_v15 = vadd.f32 %v2759_v32, %v2671_v60  ;;  %3075 = vmatmul.bf16.gmra.mxu3 %v6482_v24 }
 0x3dc   :  { %v3346_v13 = vmax.f32 %v2659_v62, 0.0 }
 0x3dd   :  { %v2849_v16 = vadd.f32 %v2848_v43, %v2760_v15  ;;  %2798 = vmatmul.bf16.gmra.mxu0 %v7962_v8  ;;  %2887 = vmatmul.bf16.gmra.mxu1 %v7963_v50  ;;  %v7967_v50 = vld [vmem:[#allocation134_spill] sm:$0xff] }
 0x3de   :  { %2976 = vmatmul.bf16.gmra.mxu2 %v7964_v61  ;;  %v6858_v51 = vpack.c.bf16 %v3346_v13, %v3344_v41  ;;  %v3036_v15 = vpop.f32.mrf.mxu3  ;;  %v2676_v41 = vadd.f32 %v7967_v50, %v6851_v48 }
 0x3e0   :  { %7965 = vst [vmem:[#allocation12_spill] sm:$0xff] %v6858_v51  ;;  %v5119_v51 = vld [vmem:[#allocation5 + $0x64] sm:$0xf0] }
 0x3e1   :  { %v2937_v10 = vpop.f32.mrf.mxu2  ;;  %v4867_v34 = vor.u32 %v5119_v51, %v4866_v3  ;;  %v2681_v3 = vadd.f32 %v6451_v27, %v6851_v48  ;;  %v7974_v27 = vld [vmem:[#allocation141_spill] sm:$0xff] }
 0x3e2   :  { %v2938_v49 = vadd.f32 %v2937_v10, %v2849_v16  ;;  %v2761_v60 = vpop.f32.mrf.mxu0  ;;  %v2850_v62 = vpop.f32.mrf.mxu1 }
 0x3e3   :  { %v2762_v32 = vadd.f32 %v2761_v60, %v2673_v54  ;;  %v7968_v54 = vld [vmem:[#allocation35_spill] sm:$0xff]  ;;  %v5135_v60 = vld [vmem:[#allocation5 + $0xe4] sm:$0xf0]  ;;  %3579 = vmatpush.bf16.msrb.mxu2 %v4867_v34 }
 0x3e4   :  { %v6863_v43 = vadd.f32 %v3026_v7, %v2938_v49  ;;  %v7969_v7 = vld [vmem:[#allocation36_spill] sm:$0xff]  ;;  %v4930_v49 = vld [vmem:[#allocation5 + $0xe0] sm:$0xf] }
 0x3e5   :  { %v2851_v8 = vadd.f32 %v2850_v62, %v2762_v32  ;;  %v7970_v62 = vld [vmem:[#allocation37_spill] sm:$0xff]  ;;  %v4931_v32 = vor.u32 %v5135_v60, %v4930_v49 }
 0x3e6   :  { %v3038_v16 = vpop.f32.mrf.mxu3 }
 0x3e7   :  { %3668 = vmatpush.bf16.msrb.mxu3 %v4931_v32  ;;  %v5090_v32 = vld [vmem:[#allocation2 + $0x294] sm:$0xf] }
 0x3e9   :  { %v2939_v13 = vpop.f32.mrf.mxu2 }
 0x3ea   :  { %v2940_v61 = vadd.f32 %v2939_v13, %v2851_v8  ;;  %v2764_v46 = vpop.f32.mrf.mxu0  ;;  %v2853_v63 = vpop.f32.mrf.mxu1  ;;  %v2678_v8 = vadd.f32 %v6425_v57, %v6851_v48 }
 0x3eb   :  { %v2765_v31 = vadd.f32 %v2764_v46, %v2676_v41  ;;  %3080 = vmatmul.bf16.gmra.mxu3 %v6530_v55 }
 0x3ec   :  { %v6867_v24 = vadd.f32 %v3028_v18, %v2940_v61 }
 0x3ed   :  { %v2854_v10 = vadd.f32 %v2853_v63, %v2765_v31  ;;  %2803 = vmatmul.bf16.gmra.mxu0 %v7968_v54  ;;  %2892 = vmatmul.bf16.gmra.mxu1 %v7969_v7 }
 0x3ee   :  { %2981 = vmatmul.bf16.gmra.mxu2 %v7970_v62  ;;  %v3041_v46 = vpop.f32.mrf.mxu3  ;;  %v7972_v62 = vld [vmem:[#allocation43_spill] sm:$0xff] }
 0x3f1   :  { %v2942_v50 = vpop.f32.mrf.mxu2 }
 0x3f2   :  { %v2943_v18 = vadd.f32 %v2942_v50, %v2854_v10  ;;  %v2766_v51 = vpop.f32.mrf.mxu0  ;;  %v2855_v41 = vpop.f32.mrf.mxu1  ;;  %v7971_v10 = vld [vmem:[#allocation42_spill] sm:$0xff] }
 0x3f3   :  { %v2767_v13 = vadd.f32 %v2766_v51, %v2678_v8  ;;  %v4724_v8 = vld [vmem:[#allocation2 + $0x298] sm:$0xf0] }
 0x3f4   :  { %v6875_v61 = vadd.f32 %v3031_v37, %v2943_v18  ;;  %v7973_v37 = vld [vmem:[#allocation44_spill] sm:$0xff]  ;;  %v4727_v50 = vor.u32 %v5090_v32, %v4724_v8  ;;  %v2683_v18 = vadd.f32 %v7974_v27, %v6851_v48  ;;  %v4858_v8 = vld [vmem:[#allocation5 + $0x50] sm:$0xf]  ;;  %v5117_v27 = vld [vmem:[#allocation5 + $0x54] sm:$0xf0] }
 0x3f5   :  { %v2856_v63 = vadd.f32 %v2855_v41, %v2767_v13  ;;  %v7975_v41 = vld [vmem:[#allocation161_spill] sm:$0xff]  ;;  %v4859_v22 = vor.u32 %v5117_v27, %v4858_v8 }
 0x3f6   :  { %v3043_v60 = vpop.f32.mrf.mxu3  ;;  %3112 = vmatpush.bf16.msrb.mxu0 %v4727_v50 }
 0x3f7   :  { %3580 = vmatpush.bf16.msrb.mxu2 %v4859_v22 }
 0x3f9   :  { %v2944_v31 = vpop.f32.mrf.mxu2 }
 0x3fa   :  { %v2945_v34 = vadd.f32 %v2944_v31, %v2856_v63  ;;  %v2769_v54 = vpop.f32.mrf.mxu0  ;;  %v2858_v7 = vpop.f32.mrf.mxu1 }
 0x3fb   :  { %v2770_v49 = vadd.f32 %v2769_v54, %v2681_v3  ;;  %3085 = vmatmul.bf16.gmra.mxu3 %v7975_v41 }
 0x3fc   :  { %v6879_v57 = vadd.f32 %v3033_v4, %v2945_v34 }
 0x3fd   :  { %v2859_v55 = vadd.f32 %v2858_v7, %v2770_v49  ;;  %2808 = vmatmul.bf16.gmra.mxu0 %v7971_v10  ;;  %2897 = vmatmul.bf16.gmra.mxu1 %v7972_v62  ;;  %v7976_v7 = vld [vmem:[#allocation147_spill] sm:$0xff] }
 0x3fe   :  { %2986 = vmatmul.bf16.gmra.mxu2 %v7973_v37  ;;  %v3046_v34 = vpop.f32.mrf.mxu3  ;;  %v2686_v49 = vadd.f32 %v7976_v7, %v6851_v48 }
 0x401   :  { %v2947_v51 = vpop.f32.mrf.mxu2 }
 0x402   :  { %v2948_v4 = vadd.f32 %v2947_v51, %v2859_v55  ;;  %v2771_v13 = vpop.f32.mrf.mxu0  ;;  %v2860_v63 = vpop.f32.mrf.mxu1  ;;  %v7979_v51 = vld [vmem:[#allocation50_spill] sm:$0xff] }
 0x403   :  { %v2772_v3 = vadd.f32 %v2771_v13, %v2683_v18  ;;  %v5133_v13 = vld [vmem:[#allocation5 + $0xd4] sm:$0xf0] }
 0x404   :  { %v6887_v31 = vadd.f32 %v3036_v15, %v2948_v4  ;;  %v7978_v15 = vld [vmem:[#allocation49_spill] sm:$0xff] }
 0x405   :  { %v2861_v54 = vadd.f32 %v2860_v63, %v2772_v3  ;;  %v4922_v4 = vld [vmem:[#allocation5 + $0xd0] sm:$0xf]  ;;  %v7980_v63 = vld [vmem:[#allocation51_spill] sm:$0xff] }
 0x406   :  { %v6893_v55 = vpop.f32.mrf.mxu3  ;;  %v4923_v3 = vor.u32 %v5133_v13, %v4922_v4 }
 0x407   :  { %7977 = vst [vmem:[#allocation109_spill] sm:$0xff] %v6893_v55 }
 0x408   :  { %3669 = vmatpush.bf16.msrb.mxu3 %v4923_v3 }
 0x409   :  { %v2949_v10 = vpop.f32.mrf.mxu2 }
 0x40a   :  { %v2950_v62 = vadd.f32 %v2949_v10, %v2861_v54  ;;  %v2774_v37 = vpop.f32.mrf.mxu0  ;;  %v2863_v32 = vpop.f32.mrf.mxu1  ;;  %v7981_v54 = vld [vmem:[#allocation149_spill] sm:$0xff] }
 0x40b   :  { %v2775_v50 = vadd.f32 %v2774_v37, %v2686_v49  ;;  %v2688_v7 = vadd.f32 %v7981_v54, %v6851_v48 }
 0x40c   :  { %v6891_v41 = vadd.f32 %v3038_v16, %v2950_v62  ;;  %v7982_v16 = vld [vmem:[#allocation170_spill] sm:$0xff] }
 0x40d   :  { %v2864_v18 = vadd.f32 %v2863_v32, %v2775_v50  ;;  %2813 = vmatmul.bf16.gmra.mxu0 %v7978_v15  ;;  %2902 = vmatmul.bf16.gmra.mxu1 %v7979_v51  ;;  %v7983_v15 = vld [vmem:[#allocation155_spill] sm:$0xff] }
 0x40e   :  { %2991 = vmatmul.bf16.gmra.mxu2 %v7980_v63  ;;  %3090 = vmatmul.bf16.gmra.mxu3 %v7982_v16  ;;  %v3051_v27 = vpop.f32.mrf.mxu3  ;;  %v2691_v51 = vadd.f32 %v7983_v15, %v6851_v48  ;;  %v5088_v16 = vld [vmem:[#allocation2 + $0x284] sm:$0xf] }
 0x411   :  { %v2952_v49 = vpop.f32.mrf.mxu2 }
 0x412   :  { %v2953_v10 = vadd.f32 %v2952_v49, %v2864_v18  ;;  %v2776_v62 = vpop.f32.mrf.mxu0  ;;  %v2865_v37 = vpop.f32.mrf.mxu1  ;;  %v7985_v49 = vld [vmem:[#allocation56_spill] sm:$0xff] }
 0x413   :  { %v2777_v32 = vadd.f32 %v2776_v62, %v2688_v7  ;;  %v7986_v7 = vld [vmem:[#allocation57_spill] sm:$0xff] }
 0x414   :  { %v6901_v8 = vadd.f32 %v3041_v46, %v2953_v10  ;;  %v7987_v46 = vld [vmem:[#allocation58_spill] sm:$0xff] }
 0x415   :  { %v2866_v50 = vadd.f32 %v2865_v37, %v2777_v32  ;;  %v4716_v10 = vld [vmem:[#allocation2 + $0x288] sm:$0xf0]  ;;  %v7988_v37 = vld [vmem:[#allocation157_spill] sm:$0xff] }
 0x416   :  { %v6907_v55 = vpop.f32.mrf.mxu3  ;;  %v4719_v62 = vor.u32 %v5088_v16, %v4716_v10  ;;  %v2693_v32 = vadd.f32 %v7988_v37, %v6851_v48 }
 0x417   :  { %7984 = vst [vmem:[#allocation13_spill] sm:$0xff] %v6907_v55  ;;  %v5131_v55 = vld [vmem:[#allocation5 + $0xc4] sm:$0xf0] }
 0x418   :  { %3113 = vmatpush.bf16.msrb.mxu0 %v4719_v62 }
 0x419   :  { %v2954_v4 = vpop.f32.mrf.mxu2 }
 0x41a   :  { %v2955_v22 = vadd.f32 %v2954_v4, %v2866_v50  ;;  %v2779_v13 = vpop.f32.mrf.mxu0  ;;  %v2868_v63 = vpop.f32.mrf.mxu1 }
 0x41b   :  { %v2780_v3 = vadd.f32 %v2779_v13, %v2691_v51 }
 0x41c   :  { %v6905_v54 = vadd.f32 %v3043_v60, %v2955_v22 }
 0x41d   :  { %v2869_v18 = vadd.f32 %v2868_v63, %v2780_v3  ;;  %2818 = vmatmul.bf16.gmra.mxu0 %v7985_v49  ;;  %2907 = vmatmul.bf16.gmra.mxu1 %v7986_v7  ;;  %v4850_v3 = vld [vmem:[#allocation5 + $0x40] sm:$0xf]  ;;  %v5115_v49 = vld [vmem:[#allocation5 + $0x44] sm:$0xf0] }
 0x41e   :  { %2996 = vmatmul.bf16.gmra.mxu2 %v7987_v46  ;;  %3095 = vmatmul.bf16.gmra.mxu3 %v6679_v14  ;;  %v6917_v13 = vpop.f32.mrf.mxu3  ;;  %v7990_v7 = vld [vmem:[#allocation164_spill] sm:$0xff]  ;;  %v4851_v10 = vor.u32 %v5115_v49, %v4850_v3  ;;  %v4834_v3 = vld [vmem:[#allocation5 + $0x20] sm:$0xf] }
 0x41f   :  { %v2696_v46 = vadd.f32 %v7990_v7, %v6851_v48  ;;  %v5111_v49 = vld [vmem:[#allocation5 + $0x24] sm:$0xf0] }
 0x420   :  { %3581 = vmatpush.bf16.msrb.mxu2 %v4851_v10 }
 0x421   :  { %v2957_v50 = vpop.f32.mrf.mxu2 }
 0x422   :  { %v2958_v60 = vadd.f32 %v2957_v50, %v2869_v18  ;;  %v2781_v15 = vpop.f32.mrf.mxu0  ;;  %v2870_v51 = vpop.f32.mrf.mxu1 }
 0x423   :  { %v2782_v4 = vadd.f32 %v2781_v15, %v2693_v32  ;;  %v5113_v32 = vld [vmem:[#allocation5 + $0x34] sm:$0xf0]  ;;  %v7993_v15 = vld [vmem:[#allocation63_spill] sm:$0xff] }
 0x424   :  { %v6915_v22 = vadd.f32 %v3046_v34, %v2958_v60  ;;  %v4842_v34 = vld [vmem:[#allocation5 + $0x30] sm:$0xf] }
 0x425   :  { %v2871_v63 = vadd.f32 %v2870_v51, %v2782_v4  ;;  %v7994_v51 = vld [vmem:[#allocation64_spill] sm:$0xff]  ;;  %v4914_v4 = vld [vmem:[#allocation5 + $0xc0] sm:$0xf]  ;;  %v4843_v7 = vor.u32 %v5113_v32, %v4842_v34  ;;  %v5109_v32 = vld [vmem:[#allocation5 + $0x14] sm:$0xf0] }
 0x426   :  { %7989 = vst [vmem:[#allocation14_spill] sm:$0xff] %v6915_v22  ;;  %v6923_v50 = vpop.f32.mrf.mxu3  ;;  %v7995_v22 = vld [vmem:[#allocation65_spill] sm:$0xff] }
 0x427   :  { %7992 = vst [vmem:[#allocation110_spill] sm:$0xff] %v6923_v50  ;;  %3582 = vmatpush.bf16.msrb.mxu2 %v4843_v7  ;;  %v7998_v50 = vld [vmem:[#allocation172_spill] sm:$0xff] }
 0x429   :  { %v2959_v16 = vpop.f32.mrf.mxu2 }
 0x42a   :  { %v6921_v37 = vadd.f32 %v2959_v16, %v2871_v63  ;;  %v2784_v62 = vpop.f32.mrf.mxu0  ;;  %v2873_v14 = vpop.f32.mrf.mxu1  ;;  %v4915_v63 = vor.u32 %v5131_v55, %v4914_v4  ;;  %v4826_v55 = vld [vmem:[#allocation5 + $0x10] sm:$0xf] }
 0x42b   :  { %v2785_v18 = vadd.f32 %v2784_v62, %v2696_v46  ;;  %v7996_v46 = vld [vmem:[#allocation166_spill] sm:$0xff]  ;;  %v4835_v62 = vor.u32 %v5111_v49, %v4834_v3  ;;  %v4827_v7 = vor.u32 %v5109_v32, %v4826_v55  ;;  %v5120_v55 = vld [vmem:[#allocation5 + $0x74] sm:$0xf] }
 0x42c   :  { %7991 = vst [vmem:[#allocation15_spill] sm:$0xff] %v6921_v37  ;;  %3670 = vmatpush.bf16.msrb.mxu3 %v4915_v63  ;;  %v2698_v16 = vadd.f32 %v7996_v46, %v6851_v48  ;;  %v4818_v63 = vld [vmem:[#allocation5] sm:$0xf]  ;;  %v5107_v46 = vld [vmem:[#allocation5 + $0x4] sm:$0xf0] }
 0x42d   :  { %v2874_v60 = vadd.f32 %v2873_v14, %v2785_v18  ;;  %2823 = vmatmul.bf16.gmra.mxu0 %v7993_v15  ;;  %2912 = vmatmul.bf16.gmra.mxu1 %v7994_v51  ;;  %v4876_v32 = vld [vmem:[#allocation5 + $0x78] sm:$0xf0] }
 0x42e   :  { %3001 = vmatmul.bf16.gmra.mxu2 %v7995_v22  ;;  %3100 = vmatmul.bf16.gmra.mxu3 %v6720_v39  ;;  %v6933_v22 = vpop.f32.mrf.mxu3  ;;  %v2701_v39 = vadd.f32 %v7998_v50, %v6851_v48  ;;  %v5136_v50 = vld [vmem:[#allocation5 + $0xf4] sm:$0xf] }
 0x42f   :  { %3583 = vmatpush.bf16.msrb.mxu2 %v4835_v62 }
 0x431   :  { %v2962_v10 = vpop.f32.mrf.mxu2 }
 0x432   :  { %v2963_v14 = vadd.f32 %v2962_v10, %v2874_v60  ;;  %v2786_v18 = vpop.f32.mrf.mxu0  ;;  %v2875_v15 = vpop.f32.mrf.mxu1  ;;  %v4819_v60 = vor.u32 %v5107_v46, %v4818_v63  ;;  %v4940_v63 = vld [vmem:[#allocation5 + $0xf8] sm:$0xf0]  ;;  %v8004_v46 = vld [vmem:[#allocation175_spill] sm:$0xff] }
 0x433   :  { %v2787_v51 = vadd.f32 %v2786_v18, %v2698_v16  ;;  %3584 = vmatpush.bf16.msrb.mxu2 %v4827_v7  ;;  %v8001_v18 = vld [vmem:[#allocation70_spill] sm:$0xff]  ;;  %v4879_v7 = vor.u32 %v5120_v55, %v4876_v32  ;;  %v8007_v32 = vld [vmem:[#allocation20_spill] sm:$0xff] }
 0x434   :  { %v6931_v34 = vadd.f32 %v3051_v27, %v2963_v14 }
 0x435   :  { %v2876_v4 = vadd.f32 %v2875_v15, %v2787_v51  ;;  %v8002_v15 = vld [vmem:[#allocation71_spill] sm:$0xff]  ;;  %v8003_v51 = vld [vmem:[#allocation72_spill] sm:$0xff]  ;;  %3756 = vmatpush.bf16.msra.mxu0 %v4879_v7 }
 0x436   :  { %7997 = vst [vmem:[#allocation113_spill] sm:$0xff] %v6931_v34  ;;  %v6939_v62 = vpop.f32.mrf.mxu3  ;;  %v8009_v7 = vld [vmem:[#allocation179_spill] sm:$0xff] }
 0x437   :  { %3585 = vmatpush.bf16.msrb.mxu2 %v4819_v60  ;;  %8000 = vst [vmem:[#allocation16_spill] sm:$0xff] %v6939_v62  ;;  %v8005_v60 = vld [vmem:[#allocation19_spill] sm:$0xff] }
 0x439   :  { %v2964_v3 = vpop.f32.mrf.mxu2 }
 0x43a   :  { %v6937_v49 = vadd.f32 %v2964_v3, %v2876_v4  ;;  %v2789_v16 = vpop.f32.mrf.mxu0  ;;  %v2878_v10 = vpop.f32.mrf.mxu1  ;;  %v4943_v4 = vor.u32 %v5136_v50, %v4940_v63  ;;  %v2703_v3 = vadd.f32 %v8004_v46, %v6851_v48  ;;  %v8008_v63 = vld [vmem:[#allocation24_spill] sm:$0xff] }
 0x43b   :  { %v2790_v27 = vadd.f32 %v2789_v16, %v2701_v39  ;;  %v2050_v16 = vadd.f32 %v8005_v60, %v5537_v20 }
 0x43c   :  { %7999 = vst [vmem:[#allocation114_spill] sm:$0xff] %v6937_v49  ;;  %3845 = vmatpush.bf16.msra.mxu1 %v4943_v4  ;;  %v2706_v49 = vadd.f32 %v8009_v7, %v6851_v48 }
 0x43d   :  { %v2879_v14 = vadd.f32 %v2878_v10, %v2790_v27  ;;  %2828 = vmatmul.bf16.gmra.mxu0 %v8001_v18  ;;  %2917 = vmatmul.bf16.gmra.mxu1 %v8002_v15  ;;  %v2139_v50 = vadd.f32 %v8007_v32, %v2050_v16  ;;  %v5129_v16 = vld [vmem:[#allocation5 + $0xb4] sm:$0xf0]  ;;  %v8014_v32 = vld [vmem:[#allocation121_spill] sm:$0xff] }
 0x43e   :  { %3006 = vmatmul.bf16.gmra.mxu2 %v8003_v51  ;;  %v6951_v55 = vpop.f32.mrf.mxu3 }
 0x43f   :  { %v2228_v46 = vadd.f32 %v8008_v63, %v2139_v50  ;;  %v8015_v63 = vld [vmem:[#allocation81_spill] sm:$0xff] }
 0x441   :  { %v2967_v39 = vpop.f32.mrf.mxu2 }
 0x442   :  { %v2968_v10 = vadd.f32 %v2967_v39, %v2879_v14  ;;  %v2791_v27 = vpop.f32.mrf.mxu0  ;;  %v2880_v18 = vpop.f32.mrf.mxu1 }
 0x443   :  { %v2792_v15 = vadd.f32 %v2791_v27, %v2703_v3  ;;  %v8011_v3 = vld [vmem:[#allocation25_spill] sm:$0xff] }
 0x444   :  { %v6949_v51 = vadd.f32 %v6917_v13, %v2968_v10  ;;  %v2317_v27 = vadd.f32 %v8011_v3, %v2228_v46  ;;  %v8012_v10 = vld [vmem:[#allocation79_spill] sm:$0xff] }
 0x445   :  { %v2881_v62 = vadd.f32 %v2880_v18, %v2792_v15  ;;  %v8013_v18 = vld [vmem:[#allocation80_spill] sm:$0xff]  ;;  %v4906_v15 = vld [vmem:[#allocation5 + $0xb0] sm:$0xf] }
 0x446   :  { %8006 = vst [vmem:[#allocation17_spill] sm:$0xff] %v6949_v51  ;;  %v2406_v50 = vadd.f32 %v8014_v32, %v2317_v27  ;;  %v4907_v7 = vor.u32 %v5129_v16, %v4906_v15  ;;  %v6964_v51 = vpop.f32.mrf.mxu3  ;;  %v8019_v27 = vld [vmem:[#allocation126_spill] sm:$0xff] }
 0x447   :  { %8016 = vst [vmem:[#allocation115_spill] sm:$0xff] %v6964_v51  ;;  %v8021_v51 = vld [vmem:[#allocation31_spill] sm:$0xff] }
 0x448   :  { %3671 = vmatpush.bf16.msrb.mxu3 %v4907_v7 }
 0x449   :  { %v2969_v34 = vpop.f32.mrf.mxu2 }
 0x44a   :  { %v6957_v60 = vadd.f32 %v2969_v34, %v2881_v62  ;;  %v2794_v14 = vpop.f32.mrf.mxu0  ;;  %v2883_v39 = vpop.f32.mrf.mxu1  ;;  %v2708_v34 = vadd.f32 %v6692_v30, %v6851_v48  ;;  %v8017_v62 = vld [vmem:[#allocation26_spill] sm:$0xff] }
 0x44b   :  { %v2795_v4 = vadd.f32 %v2794_v14, %v2706_v49  ;;  %v2055_v46 = vadd.f32 %v8017_v62, %v5537_v20  ;;  %v8018_v14 = vld [vmem:[#allocation123_spill] sm:$0xff]  ;;  %v2711_v62 = vadd.f32 %v6712_v23, %v6851_v48 }
 0x44c   :  { %8010 = vst [vmem:[#allocation18_spill] sm:$0xff] %v6957_v60  ;;  %v8027_v23 = vld [vmem:[#allocation127_spill] sm:$0xff] }
 0x44d   :  { %v2884_v13 = vadd.f32 %v2883_v39, %v2795_v4  ;;  %2833 = vmatmul.bf16.gmra.mxu0 %v8012_v10  ;;  %2922 = vmatmul.bf16.gmra.mxu1 %v8013_v18  ;;  %v2495_v39 = vadd.f32 %v8018_v14, %v2406_v50 }
 0x44e   :  { %3011 = vmatmul.bf16.gmra.mxu2 %v8015_v63  ;;  %v8020_v63 = vld [vmem:[#allocation27_spill] sm:$0xff]  ;;  %v6979_v50 = vpop.f32.mrf.mxu3 }
 0x44f   :  { %v2584_v32 = vadd.f32 %v8019_v27, %v2495_v39  ;;  %v2144_v7 = vadd.f32 %v8020_v63, %v2055_v46 }
 0x451   :  { %v2972_v49 = vpop.f32.mrf.mxu2  ;;  %v2233_v30 = vadd.f32 %v8021_v51, %v2144_v7  ;;  %v3286_v60 = vmax.f32 %v2584_v32, 0.0  ;;  %v8025_v51 = vld [vmem:[#allocation85_spill] sm:$0xff]  ;;  %v5118_v32 = vld [vmem:[#allocation5 + $0x64] sm:$0xf]  ;;  %v4932_v7 = vld [vmem:[#allocation5 + $0xe8] sm:$0xf0] }
 0x452   :  { %v2973_v4 = vadd.f32 %v2972_v49, %v2884_v13  ;;  %v2796_v3 = vpop.f32.mrf.mxu0  ;;  %v2885_v10 = vpop.f32.mrf.mxu1  ;;  %v8022_v13 = vld [vmem:[#allocation122_spill] sm:$0xff] }
 0x453   :  { %v2797_v18 = vadd.f32 %v2796_v3, %v2708_v34  ;;  %v3284_v49 = vmax.f32 %v8022_v13, 0.0  ;;  %v8028_v13 = vld [vmem:[#allocation33_spill] sm:$0xff] }
 0x454   :  { %v6973_v15 = vadd.f32 %v6933_v22, %v2973_v4  ;;  %v8023_v4 = vld [vmem:[#allocation32_spill] sm:$0xff] }
 0x455   :  { %v2886_v16 = vadd.f32 %v2885_v10, %v2797_v18  ;;  %v2322_v3 = vadd.f32 %v8023_v4, %v2233_v30  ;;  %v6985_v10 = vpack.c.bf16 %v3286_v60, %v3284_v49  ;;  %v8026_v18 = vld [vmem:[#allocation87_spill] sm:$0xff]  ;;  %v2713_v60 = vadd.f32 %v6718_v40, %v6851_v48 }
 0x456   :  { %v2060_v49 = vadd.f32 %v8028_v13, %v5537_v20 }
 0x457   :  { %8024 = vst [vmem:[#allocation116_spill] sm:$0xff] %v6985_v10  ;;  %v2411_v27 = vadd.f32 %v8027_v23, %v2322_v3  ;;  %v8031_v23 = vld [vmem:[#allocation133_spill] sm:$0xff] }
 0x459   :  { %v2974_v37 = vpop.f32.mrf.mxu2 }
 0x45a   :  { %v6982_v34 = vadd.f32 %v2974_v37, %v2886_v16  ;;  %v2799_v14 = vpop.f32.mrf.mxu0  ;;  %v2888_v39 = vpop.f32.mrf.mxu1  ;;  %v4868_v37 = vld [vmem:[#allocation5 + $0x68] sm:$0xf0]  ;;  %v5134_v16 = vld [vmem:[#allocation5 + $0xe4] sm:$0xf] }
 0x45b   :  { %v2800_v22 = vadd.f32 %v2799_v14, %v2711_v62  ;;  %v4871_v63 = vor.u32 %v5118_v32, %v4868_v37  ;;  %v4935_v62 = vor.u32 %v5134_v16, %v4932_v7  ;;  %v8029_v14 = vld [vmem:[#allocation129_spill] sm:$0xff]  ;;  %v8032_v16 = vld [vmem:[#allocation34_spill] sm:$0xff] }
 0x45c   :  { %v8033_v7 = vld [vmem:[#allocation38_spill] sm:$0xff] }
 0x45d   :  { %v2889_v46 = vadd.f32 %v2888_v39, %v2800_v22  ;;  %3114 = vmatmul.bf16.vlgmr.msrb.gmra.mxu0 %v8025_v51  ;;  %4800 = vmatmul.msk.bf16.vlgmr.msrb.gmra.mxu1 %vm1989_vm0, %v8026_v18  ;;  %v2500_v39 = vadd.f32 %v8029_v14, %v2411_v27  ;;  %v6997_v18 = vpop.f32.mrf.mxu3 }
 0x45e   :  { %3586 = vmatmul.bf16.vlgmr.msrb.gmra.mxu2 %v6985_v10  ;;  %3757 = vmatpush.bf16.msra.mxu0 %v4871_v63  ;;  %8030 = vst [vmem:[#allocation117_spill] sm:$0xff] %v6997_v18  ;;  %v2149_v63 = vadd.f32 %v8032_v16, %v2060_v49  ;;  %v8037_v49 = vld [vmem:[#allocation90_spill] sm:$0xff]  ;;  %v5127_v16 = vld [vmem:[#allocation5 + $0xa4] sm:$0xf0] }
 0x45f   :  { %3846 = vmatpush.bf16.msra.mxu1 %v4935_v62  ;;  %v2589_v32 = vadd.f32 %v8031_v23, %v2500_v39  ;;  %v8035_v23 = vld [vmem:[#allocation39_spill] sm:$0xff] }
 0x460   :  { %v2238_v10 = vadd.f32 %v8033_v7, %v2149_v63  ;;  %v8039_v63 = vld [vmem:[#allocation135_spill] sm:$0xff] }
 0x461   :  { %v2977_v30 = vpop.f32.mrf.mxu2  ;;  %v3290_v13 = vmax.f32 %v2589_v32, 0.0 }
 0x462   :  { %v2978_v22 = vadd.f32 %v2977_v30, %v2889_v46  ;;  %v2801_v4 = vpop.f32.mrf.mxu0  ;;  %v2890_v3 = vpop.f32.mrf.mxu1  ;;  %v2716_v46 = vadd.f32 %v6736_v6, %v6851_v48  ;;  %v8034_v30 = vld [vmem:[#allocation128_spill] sm:$0xff]  ;;  %v4898_v6 = vld [vmem:[#allocation5 + $0xa0] sm:$0xf] }
 0x463   :  { %v2802_v51 = vadd.f32 %v2801_v4, %v2713_v60  ;;  %v3288_v62 = vmax.f32 %v8034_v30, 0.0  ;;  %v8041_v30 = vld [vmem:[#allocation137_spill] sm:$0xff] }
 0x464   :  { %v7001_v37 = vadd.f32 %v6951_v55, %v2978_v22  ;;  %v2327_v55 = vadd.f32 %v8035_v23, %v2238_v10  ;;  %v2718_v10 = vadd.f32 %v6742_v11, %v6851_v48  ;;  %v8045_v11 = vld [vmem:[#allocation45_spill] sm:$0xff] }
 0x465   :  { %v2891_v40 = vadd.f32 %v2890_v3, %v2802_v51  ;;  %v7011_v22 = vpack.c.bf16 %v3290_v13, %v3288_v62  ;;  %v8038_v51 = vld [vmem:[#allocation91_spill] sm:$0xff]  ;;  %v3076_v32 = vpop.f32.mrf.mxu3 }
 0x466   :  { %v2416_v7 = vadd.f32 %v8039_v63, %v2327_v55 }
 0x467   :  { %8036 = vst [vmem:[#allocation120_spill] sm:$0xff] %v7011_v22 }
 0x468   :  { %v2505_v62 = vadd.f32 %v8041_v30, %v2416_v7  ;;  %v2721_v7 = vadd.f32 %v6749_v19, %v6851_v48 }
 0x469   :  { %v2979_v27 = vpop.f32.mrf.mxu2 }
 0x46a   :  { %v7008_v60 = vadd.f32 %v2979_v27, %v2891_v40  ;;  %v2804_v14 = vpop.f32.mrf.mxu0  ;;  %v2893_v4 = vpop.f32.mrf.mxu1  ;;  %v4899_v40 = vor.u32 %v5127_v16, %v4898_v6  ;;  %v8043_v16 = vld [vmem:[#allocation41_spill] sm:$0xff] }
 0x46b   :  { %v2805_v39 = vadd.f32 %v2804_v14, %v2716_v46  ;;  %v8040_v46 = vld [vmem:[#allocation40_spill] sm:$0xff] }
 0x46c   :  { %3672 = vmatpush.bf16.msrb.mxu3 %v4899_v40  ;;  %v2065_v27 = vadd.f32 %v8040_v46, %v5537_v20 }
 0x46d   :  { %v2894_v3 = vadd.f32 %v2893_v4, %v2805_v39  ;;  %3119 = vmatmul.bf16.gmra.mxu0 %v8037_v49  ;;  %4801 = vmatmul.msk.bf16.gmra.mxu1 %vm1989_vm0, %v8038_v51  ;;  %v8042_v49 = vld [vmem:[#allocation140_spill] sm:$0xff]  ;;  %v7028_v40 = vpop.f32.mrf.mxu3 }
 0x46e   :  { %3591 = vmatmul.bf16.gmra.mxu2 %v7011_v22  ;;  %v2594_v51 = vadd.f32 %v8042_v49, %v2505_v62  ;;  %v2154_v63 = vadd.f32 %v8043_v16, %v2065_v27  ;;  %8044 = vst [vmem:[#allocation21_spill] sm:$0xff] %v7028_v40  ;;  %v8051_v49 = vld [vmem:[#allocation97_spill] sm:$0xff]  ;;  %v8057_v40 = vld [vmem:[#allocation52_spill] sm:$0xff] }
 0x46f   :  { %v5116_v16 = vld [vmem:[#allocation5 + $0x54] sm:$0xf] }
 0x470   :  { %v2243_v18 = vadd.f32 %v8045_v11, %v2154_v63  ;;  %v3294_v22 = vmax.f32 %v2594_v51, 0.0  ;;  %v8052_v51 = vld [vmem:[#allocation142_spill] sm:$0xff]  ;;  %v5132_v63 = vld [vmem:[#allocation5 + $0xd4] sm:$0xf] }
 0x471   :  { %v2982_v13 = vpop.f32.mrf.mxu2 }
 0x472   :  { %v2983_v14 = vadd.f32 %v2982_v13, %v2894_v3  ;;  %v2806_v4 = vpop.f32.mrf.mxu0  ;;  %v2895_v39 = vpop.f32.mrf.mxu1  ;;  %v8046_v13 = vld [vmem:[#allocation136_spill] sm:$0xff] }
 0x473   :  { %v2807_v23 = vadd.f32 %v2806_v4, %v2718_v10  ;;  %v3292_v46 = vmax.f32 %v8046_v13, 0.0 }
 0x474   :  { %v7025_v55 = vadd.f32 %v6979_v50, %v2983_v14  ;;  %v8048_v14 = vld [vmem:[#allocation46_spill] sm:$0xff] }
 0x475   :  { %v2896_v6 = vadd.f32 %v2895_v39, %v2807_v23  ;;  %v2332_v4 = vadd.f32 %v8048_v14, %v2243_v18  ;;  %v7037_v39 = vpack.c.bf16 %v3294_v22, %v3292_v46  ;;  %v8050_v23 = vld [vmem:[#allocation96_spill] sm:$0xff]  ;;  %v2723_v18 = vadd.f32 %v6758_v59, %v6851_v48  ;;  %v3081_v13 = vpop.f32.mrf.mxu3  ;;  %v8053_v46 = vld [vmem:[#allocation47_spill] sm:$0xff] }
 0x477   :  { %8049 = vst [vmem:[#allocation23_spill] sm:$0xff] %v7037_v39  ;;  %v2421_v19 = vadd.f32 %v8052_v51, %v2332_v4  ;;  %v8055_v51 = vld [vmem:[#allocation148_spill] sm:$0xff] }
 0x479   :  { %v2984_v3 = vpop.f32.mrf.mxu2 }
 0x47a   :  { %v7034_v10 = vadd.f32 %v2984_v3, %v2896_v6  ;;  %v2809_v30 = vpop.f32.mrf.mxu0  ;;  %v2898_v62 = vpop.f32.mrf.mxu1  ;;  %v4860_v6 = vld [vmem:[#allocation5 + $0x58] sm:$0xf0] }
 0x47b   :  { %v2810_v50 = vadd.f32 %v2809_v30, %v2721_v7  ;;  %v4863_v11 = vor.u32 %v5116_v16, %v4860_v6  ;;  %v4924_v3 = vld [vmem:[#allocation5 + $0xd8] sm:$0xf0]  ;;  %v2070_v30 = vadd.f32 %v8053_v46, %v5537_v20  ;;  %v2726_v46 = vadd.f32 %v6764_v47, %v6851_v48  ;;  %v4890_v47 = vld [vmem:[#allocation5 + $0x90] sm:$0xf] }
 0x47c   :  { %8047 = vst [vmem:[#allocation22_spill] sm:$0xff] %v7034_v10  ;;  %v4927_v7 = vor.u32 %v5132_v63, %v4924_v3  ;;  %v8056_v3 = vld [vmem:[#allocation48_spill] sm:$0xff] }
 0x47d   :  { %v2899_v27 = vadd.f32 %v2898_v62, %v2810_v50  ;;  %3124 = vmatmul.bf16.gmra.mxu0 %v8050_v23  ;;  %4802 = vmatmul.msk.bf16.gmra.mxu1 %vm1989_vm0, %v8051_v49  ;;  %v8054_v62 = vld [vmem:[#allocation144_spill] sm:$0xff]  ;;  %v2159_v59 = vadd.f32 %v8056_v3, %v2070_v30  ;;  %v8064_v3 = vld [vmem:[#allocation54_spill] sm:$0xff] }
 0x47e   :  { %3596 = vmatmul.bf16.gmra.mxu2 %v7037_v39  ;;  %3758 = vmatpush.bf16.msra.mxu0 %v4863_v11  ;;  %v2510_v50 = vadd.f32 %v8054_v62, %v2421_v19  ;;  %v8058_v19 = vld [vmem:[#allocation143_spill] sm:$0xff] }
 0x47f   :  { %3847 = vmatpush.bf16.msra.mxu1 %v4927_v7  ;;  %v2248_v39 = vadd.f32 %v8057_v40, %v2159_v59  ;;  %v8061_v40 = vld [vmem:[#allocation102_spill] sm:$0xff]  ;;  %v2075_v59 = vadd.f32 %v8064_v3, %v5537_v20  ;;  %v2731_v3 = vadd.f32 %v6780_v35, %v6851_v48 }
 0x480   :  { %v2599_v16 = vadd.f32 %v8055_v51, %v2510_v50  ;;  %v7059_v50 = vpop.f32.mrf.mxu3  ;;  %v8063_v51 = vld [vmem:[#allocation150_spill] sm:$0xff] }
 0x481   :  { %v2987_v22 = vpop.f32.mrf.mxu2  ;;  %8059 = vst [vmem:[#allocation28_spill] sm:$0xff] %v7059_v50 }
 0x482   :  { %v2988_v14 = vadd.f32 %v2987_v22, %v2899_v27  ;;  %v2811_v4 = vpop.f32.mrf.mxu0  ;;  %v2900_v23 = vpop.f32.mrf.mxu1  ;;  %v3298_v11 = vmax.f32 %v2599_v16, 0.0  ;;  %v3296_v27 = vmax.f32 %v8058_v19, 0.0 }
 0x483   :  { %v2812_v49 = vadd.f32 %v2811_v4, %v2723_v18 }
 0x484   :  { %v7050_v6 = vadd.f32 %v3076_v32, %v2988_v14  ;;  %v8060_v32 = vld [vmem:[#allocation53_spill] sm:$0xff]  ;;  %v7062_v4 = vpack.c.bf16 %v3298_v11, %v3296_v27  ;;  %v8065_v11 = vld [vmem:[#allocation152_spill] sm:$0xff] }
 0x485   :  { %v2901_v63 = vadd.f32 %v2900_v23, %v2812_v49  ;;  %v2337_v14 = vadd.f32 %v8060_v32, %v2248_v39  ;;  %v8062_v23 = vld [vmem:[#allocation103_spill] sm:$0xff]  ;;  %v5125_v49 = vld [vmem:[#allocation5 + $0x94] sm:$0xf0] }
 0x486   :  { %v4891_v16 = vor.u32 %v5125_v49, %v4890_v47  ;;  %v8067_v47 = vld [vmem:[#allocation55_spill] sm:$0xff] }
 0x487   :  { %v2164_v49 = vadd.f32 %v8067_v47, %v2075_v59  ;;  %v8072_v59 = vld [vmem:[#allocation106_spill] sm:$0xff] }
 0x488   :  { %3673 = vmatpush.bf16.msrb.mxu3 %v4891_v16 }
 0x489   :  { %v2989_v10 = vpop.f32.mrf.mxu2 }
 0x48a   :  { %v7057_v22 = vadd.f32 %v2989_v10, %v2901_v63  ;;  %v2814_v7 = vpop.f32.mrf.mxu0  ;;  %v2903_v18 = vpop.f32.mrf.mxu1  ;;  %v2426_v10 = vadd.f32 %v8063_v51, %v2337_v14  ;;  %v2728_v63 = vadd.f32 %v6769_v17, %v6851_v48  ;;  %v8068_v51 = vld [vmem:[#allocation59_spill] sm:$0xff] }
 0x48b   :  { %v2815_v62 = vadd.f32 %v2814_v7, %v2726_v46  ;;  %v2253_v17 = vadd.f32 %v8068_v51, %v2164_v49  ;;  %v4916_v51 = vld [vmem:[#allocation5 + $0xc8] sm:$0xf0] }
 0x48c   :  { %v2515_v46 = vadd.f32 %v8065_v11, %v2426_v10  ;;  %v8069_v10 = vld [vmem:[#allocation151_spill] sm:$0xff] }
 0x48d   :  { %v2904_v30 = vadd.f32 %v2903_v18, %v2815_v62  ;;  %3129 = vmatmul.bf16.gmra.mxu0 %v8061_v40  ;;  %4803 = vmatmul.msk.bf16.gmra.mxu1 %vm1989_vm0, %v8062_v23  ;;  %v8066_v62 = vld [vmem:[#allocation156_spill] sm:$0xff]  ;;  %v3086_v23 = vpop.f32.mrf.mxu3 }
 0x48e   :  { %3601 = vmatmul.bf16.gmra.mxu2 %v7062_v4  ;;  %v2604_v32 = vadd.f32 %v8066_v62, %v2515_v46  ;;  %v8074_v62 = vld [vmem:[#allocation158_spill] sm:$0xff] }
 0x490   :  { %v3302_v16 = vmax.f32 %v2604_v32, 0.0  ;;  %v5114_v32 = vld [vmem:[#allocation5 + $0x44] sm:$0xf] }
 0x491   :  { %v2992_v39 = vpop.f32.mrf.mxu2 }
 0x492   :  { %v2993_v19 = vadd.f32 %v2992_v39, %v2904_v30  ;;  %v2816_v27 = vpop.f32.mrf.mxu0  ;;  %v2905_v7 = vpop.f32.mrf.mxu1  ;;  %v3300_v30 = vmax.f32 %v8069_v10, 0.0  ;;  %v8076_v10 = vld [vmem:[#allocation61_spill] sm:$0xff] }
 0x493   :  { %v2817_v18 = vadd.f32 %v2816_v27, %v2728_v63 }
 0x494   :  { %v7075_v14 = vadd.f32 %v3081_v13, %v2993_v19  ;;  %v8070_v13 = vld [vmem:[#allocation60_spill] sm:$0xff]  ;;  %v7085_v27 = vpack.c.bf16 %v3302_v16, %v3300_v30  ;;  %v2733_v16 = vadd.f32 %v6784_v38, %v6851_v48  ;;  %v2080_v30 = vadd.f32 %v8076_v10, %v5537_v20  ;;  %v8080_v38 = vld [vmem:[#allocation66_spill] sm:$0xff] }
 0x495   :  { %v2906_v40 = vadd.f32 %v2905_v7, %v2817_v18  ;;  %v2342_v19 = vadd.f32 %v8070_v13, %v2253_v17  ;;  %v8073_v18 = vld [vmem:[#allocation107_spill] sm:$0xff]  ;;  %v7092_v47 = vpop.f32.mrf.mxu3  ;;  %v2736_v10 = vadd.f32 %v6791_v42, %v6851_v48 }
 0x496   :  { %8071 = vst [vmem:[#allocation29_spill] sm:$0xff] %v7085_v27  ;;  %v4882_v42 = vld [vmem:[#allocation5 + $0x80] sm:$0xf] }
 0x497   :  { %v2431_v35 = vadd.f32 %v8074_v62, %v2342_v19  ;;  %8075 = vst [vmem:[#allocation30_spill] sm:$0xff] %v7092_v47 }
 0x499   :  { %v2994_v50 = vpop.f32.mrf.mxu2 }
 0x49a   :  { %v7082_v39 = vadd.f32 %v2994_v50, %v2906_v40  ;;  %v2819_v63 = vpop.f32.mrf.mxu0  ;;  %v2908_v11 = vpop.f32.mrf.mxu1  ;;  %v4852_v50 = vld [vmem:[#allocation5 + $0x48] sm:$0xf0]  ;;  %v5130_v40 = vld [vmem:[#allocation5 + $0xc4] sm:$0xf] }
 0x49b   :  { %v2820_v46 = vadd.f32 %v2819_v63, %v2731_v3  ;;  %v4855_v49 = vor.u32 %v5114_v32, %v4852_v50  ;;  %v4919_v17 = vor.u32 %v5130_v40, %v4916_v51  ;;  %v8077_v63 = vld [vmem:[#allocation160_spill] sm:$0xff]  ;;  %v8079_v40 = vld [vmem:[#allocation62_spill] sm:$0xff] }
 0x49c   :  { %v2169_v51 = vadd.f32 %v8079_v40, %v2080_v30 }
 0x49d   :  { %v2909_v7 = vadd.f32 %v2908_v11, %v2820_v46  ;;  %3134 = vmatmul.bf16.gmra.mxu0 %v8072_v59  ;;  %4804 = vmatmul.msk.bf16.gmra.mxu1 %vm1989_vm0, %v8073_v18  ;;  %v2520_v11 = vadd.f32 %v8077_v63, %v2431_v35  ;;  %v8078_v18 = vld [vmem:[#allocation165_spill] sm:$0xff]  ;;  %v3091_v35 = vpop.f32.mrf.mxu3 }
 0x49e   :  { %3606 = vmatmul.bf16.gmra.mxu2 %v7085_v27  ;;  %3759 = vmatpush.bf16.msra.mxu0 %v4855_v49  ;;  %v2258_v47 = vadd.f32 %v8080_v38, %v2169_v51  ;;  %v8086_v51 = vld [vmem:[#allocation68_spill] sm:$0xff] }
 0x49f   :  { %3848 = vmatpush.bf16.msra.mxu1 %v4919_v17  ;;  %v2609_v62 = vadd.f32 %v8078_v18, %v2520_v11  ;;  %v5123_v18 = vld [vmem:[#allocation5 + $0x84] sm:$0xf0]  ;;  %v2085_v38 = vadd.f32 %v8086_v51, %v5537_v20  ;;  %v2741_v51 = vadd.f32 %v6811_v0, %v6851_v48 }
 0x4a0   :  { %v8097_v0 = vld [vmem:[#allocation176_spill] sm:$0xff] }
 0x4a1   :  { %v2997_v3 = vpop.f32.mrf.mxu2  ;;  %v3306_v49 = vmax.f32 %v2609_v62, 0.0  ;;  %v8085_v62 = vld [vmem:[#allocation167_spill] sm:$0xff] }
 0x4a2   :  { %v2998_v46 = vadd.f32 %v2997_v3, %v2909_v7  ;;  %v2821_v13 = vpop.f32.mrf.mxu0  ;;  %v2910_v19 = vpop.f32.mrf.mxu1  ;;  %v8081_v7 = vld [vmem:[#allocation159_spill] sm:$0xff] }
 0x4a3   :  { %v2822_v59 = vadd.f32 %v2821_v13, %v2733_v16  ;;  %v3304_v3 = vmax.f32 %v8081_v7, 0.0 }
 0x4a4   :  { %v7100_v32 = vadd.f32 %v3086_v23, %v2998_v46  ;;  %v8082_v23 = vld [vmem:[#allocation67_spill] sm:$0xff] }
 0x4a5   :  { %v2911_v50 = vadd.f32 %v2910_v19, %v2822_v59  ;;  %v2347_v46 = vadd.f32 %v8082_v23, %v2258_v47  ;;  %v7110_v13 = vpack.c.bf16 %v3306_v49, %v3304_v3  ;;  %v8083_v19 = vld [vmem:[#allocation111_spill] sm:$0xff]  ;;  %v8084_v59 = vld [vmem:[#allocation112_spill] sm:$0xff]  ;;  %v8087_v49 = vld [vmem:[#allocation169_spill] sm:$0xff] }
 0x4a6   :  { %v8089_v23 = vld [vmem:[#allocation174_spill] sm:$0xff] }
 0x4a7   :  { %v2436_v40 = vadd.f32 %v8085_v62, %v2347_v46 }
 0x4a9   :  { %v2999_v27 = vpop.f32.mrf.mxu2 }
 0x4aa   :  { %v7107_v63 = vadd.f32 %v2999_v27, %v2911_v50  ;;  %v2824_v17 = vpop.f32.mrf.mxu0  ;;  %v2913_v16 = vpop.f32.mrf.mxu1  ;;  %v4883_v27 = vor.u32 %v5123_v18, %v4882_v42  ;;  %v2738_v50 = vadd.f32 %v6800_v21, %v6851_v48  ;;  %v8090_v42 = vld [vmem:[#allocation69_spill] sm:$0xff] }
 0x4ab   :  { %v2825_v11 = vadd.f32 %v2824_v17, %v2736_v10  ;;  %v2525_v10 = vadd.f32 %v8087_v49, %v2436_v40  ;;  %v2174_v18 = vadd.f32 %v8090_v42, %v2085_v38  ;;  %v8091_v21 = vld [vmem:[#allocation73_spill] sm:$0xff]  ;;  %v8095_v38 = vld [vmem:[#allocation118_spill] sm:$0xff] }
 0x4ac   :  { %3674 = vmatpush.bf16.msrb.mxu3 %v4883_v27  ;;  %v4844_v42 = vld [vmem:[#allocation5 + $0x38] sm:$0xf0] }
 0x4ad   :  { %v2914_v30 = vadd.f32 %v2913_v16, %v2825_v11  ;;  %3139 = vmatmul.bf16.gmra.mxu0 %v8083_v19  ;;  %4805 = vmatmul.msk.bf16.gmra.mxu1 %vm1989_vm0, %v8084_v59  ;;  %v7122_v11 = vpop.f32.mrf.mxu3  ;;  %v2614_v46 = vadd.f32 %v8089_v23, %v2525_v10  ;;  %v2263_v62 = vadd.f32 %v8091_v21, %v2174_v18  ;;  %v8093_v10 = vld [vmem:[#allocation74_spill] sm:$0xff]  ;;  %v5128_v18 = vld [vmem:[#allocation5 + $0xb4] sm:$0xf] }
 0x4ae   :  { %3611 = vmatmul.bf16.gmra.mxu2 %v7110_v13  ;;  %8088 = vst [vmem:[#allocation132_spill] sm:$0xff] %v7122_v11 }
 0x4af   :  { %v3310_v27 = vmax.f32 %v2614_v46, 0.0 }
 0x4b1   :  { %v3002_v47 = vpop.f32.mrf.mxu2 }
 0x4b2   :  { %v3003_v7 = vadd.f32 %v3002_v47, %v2914_v30  ;;  %v2826_v3 = vpop.f32.mrf.mxu0  ;;  %v2915_v17 = vpop.f32.mrf.mxu1  ;;  %v8092_v30 = vld [vmem:[#allocation168_spill] sm:$0xff] }
 0x4b3   :  { %v2827_v16 = vadd.f32 %v2826_v3, %v2738_v50  ;;  %v3308_v47 = vmax.f32 %v8092_v30, 0.0 }
 0x4b4   :  { %v7125_v19 = vadd.f32 %v3091_v35, %v3003_v7  ;;  %v2352_v35 = vadd.f32 %v8093_v10, %v2263_v62  ;;  %v2743_v62 = vadd.f32 %v6814_v36, %v6851_v48 }
 0x4b5   :  { %v2916_v59 = vadd.f32 %v2915_v17, %v2827_v16  ;;  %v7135_v7 = vpack.c.bf16 %v3310_v27, %v3308_v47  ;;  %v8096_v16 = vld [vmem:[#allocation119_spill] sm:$0xff]  ;;  %v3096_v23 = vpop.f32.mrf.mxu3  ;;  %v8099_v47 = vld [vmem:[#allocation178_spill] sm:$0xff] }
 0x4b6   :  { %v2441_v46 = vadd.f32 %v8097_v0, %v2352_v35 }
 0x4b7   :  { %8094 = vst [vmem:[#allocation134_spill] sm:$0xff] %v7135_v7 }
 0x4b9   :  { %v3004_v40 = vpop.f32.mrf.mxu2 }
 0x4ba   :  { %v7132_v49 = vadd.f32 %v3004_v40, %v2916_v59  ;;  %v2829_v50 = vpop.f32.mrf.mxu0  ;;  %v2918_v3 = vpop.f32.mrf.mxu1  ;;  %v5112_v59 = vld [vmem:[#allocation5 + $0x34] sm:$0xf]  ;;  %v8098_v40 = vld [vmem:[#allocation75_spill] sm:$0xff] }
 0x4bb   :  { %v2830_v11 = vadd.f32 %v2829_v50, %v2741_v51  ;;  %v4847_v21 = vor.u32 %v5112_v59, %v4844_v42  ;;  %v4908_v51 = vld [vmem:[#allocation5 + $0xb8] sm:$0xf0]  ;;  %v2090_v30 = vadd.f32 %v8098_v40, %v5537_v20  ;;  %v2530_v50 = vadd.f32 %v8099_v47, %v2441_v46  ;;  %v8100_v42 = vld [vmem:[#allocation76_spill] sm:$0xff] }
 0x4bc   :  { %v8103_v47 = vld [vmem:[#allocation78_spill] sm:$0xff] }
 0x4bd   :  { %v2919_v17 = vadd.f32 %v2918_v3, %v2830_v11  ;;  %3144 = vmatmul.bf16.gmra.mxu0 %v8095_v38  ;;  %4806 = vmatmul.msk.bf16.gmra.mxu1 %vm1989_vm0, %v8096_v16  ;;  %v4911_v11 = vor.u32 %v5128_v18, %v4908_v51  ;;  %v2619_v16 = vadd.f32 %v6689_v33, %v2530_v50  ;;  %v8101_v18 = vld [vmem:[#allocation77_spill] sm:$0xff] }
 0x4be   :  { %3616 = vmatmul.bf16.gmra.mxu2 %v7135_v7  ;;  %3760 = vmatpush.bf16.msra.mxu0 %v4847_v21  ;;  %v2179_v36 = vadd.f32 %v8100_v42, %v2090_v30  ;;  %v7151_v7 = vpop.f32.mrf.mxu3 }
 0x4bf   :  { %3849 = vmatpush.bf16.msra.mxu1 %v4911_v11  ;;  %v3314_v40 = vmax.f32 %v2619_v16, 0.0  ;;  %v5153_v16 = vld [vmem:[%s7677_s5 + $0x78] sm:$0xff] }
 0x4c0   :  { %v2268_v51 = vadd.f32 %v8101_v18, %v2179_v36  ;;  %4251 = vmatpush.bf16.msra.mxu3 %v5153_v16  ;;  %v8106_v18 = vld [vmem:[#allocation82_spill] sm:$0xff] }
 0x4c1   :  { %v3007_v27 = vpop.f32.mrf.mxu2 }
 0x4c2   :  { %v3008_v3 = vadd.f32 %v3007_v27, %v2919_v17  ;;  %v2831_v10 = vpop.f32.mrf.mxu0  ;;  %v2920_v35 = vpop.f32.mrf.mxu1  ;;  %v2746_v17 = vadd.f32 %v6826_v28, %v6851_v48  ;;  %v8102_v27 = vld [vmem:[#allocation177_spill] sm:$0xff]  ;;  %v2357_v50 = vadd.f32 %v8103_v47, %v2268_v51  ;;  %v2095_v51 = vadd.f32 %v8106_v18, %v5537_v20 }
 0x4c3   :  { %v2832_v38 = vadd.f32 %v2831_v10, %v2743_v62  ;;  %v3312_v21 = vmax.f32 %v8102_v27, 0.0  ;;  %v8105_v28 = vld [vmem:[#allocation125_spill] sm:$0xff] }
 0x4c4   :  { %v7148_v0 = vadd.f32 %v3096_v23, %v3008_v3  ;;  %v5145_v23 = vld [vmem:[%s7677_s5 + $0x38] sm:$0xff] }
 0x4c5   :  { %v2921_v59 = vadd.f32 %v2920_v35, %v2832_v38  ;;  %v7163_v3 = vpack.c.bf16 %v3314_v40, %v3312_v21  ;;  %4162 = vmatpush.bf16.msra.mxu2 %v5145_v23  ;;  %v8104_v35 = vld [vmem:[#allocation124_spill] sm:$0xff]  ;;  %v2446_v38 = vadd.f32 %v6706_v52, %v2357_v50  ;;  %v8107_v23 = vld [vmem:[#allocation83_spill] sm:$0xff] }
 0x4c6   :  { %v3101_v36 = vpop.f32.mrf.mxu3 }
 0x4c7   :  { %v2535_v40 = vadd.f32 %v6710_v5, %v2446_v38  ;;  %v8110_v38 = vld [vmem:[#allocation86_spill] sm:$0xff] }
 0x4c9   :  { %v3009_v46 = vpop.f32.mrf.mxu2  ;;  %v2624_v21 = vadd.f32 %v6715_v44, %v2535_v40  ;;  %v8111_v44 = vld [vmem:[#allocation130_spill] sm:$0xff]  ;;  %v5110_v40 = vld [vmem:[#allocation5 + $0x24] sm:$0xf] }
 0x4ca   :  { %v7157_v62 = vadd.f32 %v3009_v46, %v2921_v59  ;;  %v2834_v11 = vpop.f32.mrf.mxu0  ;;  %v2923_v33 = vpop.f32.mrf.mxu1  ;;  %v2748_v59 = vadd.f32 %v6830_v58, %v6851_v48  ;;  %v8108_v58 = vld [vmem:[#allocation84_spill] sm:$0xff] }
 0x4cb   :  { %v2835_v30 = vadd.f32 %v2834_v11, %v2746_v17  ;;  %v3318_v47 = vmax.f32 %v2624_v21, 0.0 }
 0x4cd   :  { %v2924_v10 = vadd.f32 %v2923_v33, %v2835_v30  ;;  %3149 = vmatmul.bf16.gmra.mxu0 %v8104_v35  ;;  %4807 = vmatmul.msk.bf16.gmra.mxu1 %vm1989_vm0, %v8105_v28  ;;  %v2184_v30 = vadd.f32 %v8107_v23, %v2095_v51  ;;  %v8109_v35 = vld [vmem:[#allocation182_spill] sm:$0xff] }
 0x4ce   :  { %3621 = vmatmul.bf16.gmra.mxu2 %v7163_v3  ;;  %v3316_v28 = vmax.f32 %v8109_v35, 0.0  ;;  %v8114_v35 = vld [vmem:[#allocation89_spill] sm:$0xff] }
 0x4cf   :  { %v2273_v48 = vadd.f32 %v8108_v58, %v2184_v30 }
 0x4d1   :  { %v3012_v42 = vpop.f32.mrf.mxu2 }
 0x4d2   :  { %v3013_v17 = vadd.f32 %v3012_v42, %v2924_v10  ;;  %v2836_v46 = vpop.f32.mrf.mxu0  ;;  %v2925_v52 = vpop.f32.mrf.mxu1  ;;  %v2362_v42 = vadd.f32 %v8110_v38, %v2273_v48 }
 0x4d3   :  { %v2837_v27 = vadd.f32 %v2836_v46, %v2748_v59  ;;  %v7187_v59 = vpack.c.bf16 %v3318_v47, %v3316_v28 }
 0x4d4   :  { %v7179_v11 = vadd.f32 %v3101_v36, %v3013_v17  ;;  %v8112_v36 = vld [vmem:[#allocation131_spill] sm:$0xff]  ;;  %v2451_v18 = vadd.f32 %v6730_v26, %v2362_v42  ;;  %v4836_v17 = vld [vmem:[#allocation5 + $0x28] sm:$0xf0] }
 0x4d5   :  { %v2926_v33 = vadd.f32 %v2925_v52, %v2837_v27  ;;  %v4839_v46 = vor.u32 %v5110_v40, %v4836_v17  ;;  %v5126_v52 = vld [vmem:[#allocation5 + $0xa4] sm:$0xf]  ;;  %v4900_v27 = vld [vmem:[#allocation5 + $0xa8] sm:$0xf0] }
 0x4d6   :  { %v4903_v21 = vor.u32 %v5126_v52, %v4900_v27  ;;  %v2540_v30 = vadd.f32 %v6734_v53, %v2451_v18  ;;  %v8115_v42 = vld [vmem:[#allocation92_spill] sm:$0xff]  ;;  %v3320_v18 = vmax.f32 %v6732_v29, 0.0  ;;  %v8117_v52 = vld [vmem:[#allocation138_spill] sm:$0xff]  ;;  %v8118_v27 = vld [vmem:[#allocation139_spill] sm:$0xff] }
 0x4d7   :  { %3761 = vmatpush.bf16.msra.mxu0 %v4839_v46 }
 0x4d8   :  { %3850 = vmatpush.bf16.msra.mxu1 %v4903_v21 }
 0x4d9   :  { %v3014_v50 = vpop.f32.mrf.mxu2 }
 0x4da   :  { %v7184_v16 = vadd.f32 %v3014_v50, %v2926_v33  ;;  %v3115_v5 = vpop.f32.mrf.mxu0  ;;  %v3204_v10 = vpop.f32.mrf.mxu1  ;;  %v8113_v33 = vld [vmem:[#allocation88_spill] sm:$0xff] }
 0x4db   :  { %v3116_v51 = vadd.f32 %v3115_v5, %v6863_v43  ;;  %v2100_v23 = vadd.f32 %v8113_v33, %v5537_v20  ;;  %v2629_v43 = vadd.f32 %v6739_v45, %v2540_v30  ;;  %v5144_v45 = vld [vmem:[%s7677_s5 + $0x30] sm:$0xff] }
 0x4dc   :  { %4163 = vmatpush.bf16.msra.mxu2 %v5144_v45  ;;  %v5152_v33 = vld [vmem:[%s7677_s5 + $0x70] sm:$0xff] }
 0x4dd   :  { %3154 = vmatmul.bf16.gmra.mxu0 %v8111_v44  ;;  %4808 = vmatmul.msk.bf16.gmra.mxu1 %vm1989_vm0, %v8112_v36  ;;  %v3205_v47 = vadd.f32 %v3204_v10, %v3116_v51  ;;  %v2189_v28 = vadd.f32 %v8114_v35, %v2100_v23  ;;  %v3322_v36 = vmax.f32 %v2629_v43, 0.0  ;;  %v8119_v23 = vld [vmem:[#allocation94_spill] sm:$0xff]  ;;  %v8120_v35 = vld [vmem:[#allocation95_spill] sm:$0xff] }
 0x4de   :  { %3626 = vmatmul.bf16.gmra.mxu2 %v7187_v59  ;;  %4252 = vmatpush.bf16.msra.mxu3 %v5152_v33  ;;  %v2105_v30 = vadd.f32 %v8119_v23, %v5537_v20  ;;  %v5124_v23 = vld [vmem:[#allocation5 + $0x94] sm:$0xf] }
 0x4df   :  { %v3285_v5 = vmax.f32 %v3205_v47, 0.0  ;;  %v2278_v44 = vadd.f32 %v8115_v42, %v2189_v28  ;;  %v7212_v46 = vpack.c.bf16 %v3322_v36, %v3320_v18  ;;  %v8121_v42 = vld [vmem:[#allocation98_spill] sm:$0xff] }
 0x4e0   :  { %v2194_v28 = vadd.f32 %v8120_v35, %v2105_v30  ;;  %v4892_v30 = vld [vmem:[#allocation5 + $0x98] sm:$0xf0] }
 0x4e1   :  { %v7202_v40 = vpop.f32.mrf.mxu2  ;;  %v8127_v35 = vld [vmem:[#allocation186_spill] sm:$0xff] }
 0x4e2   :  { %v3117_v58 = vpop.f32.mrf.mxu0  ;;  %v3206_v48 = vpop.f32.mrf.mxu1 }
 0x4e3   :  { %v3118_v26 = vadd.f32 %v3117_v58, %v6867_v24  ;;  %v8116_v24 = vld [vmem:[#allocation93_spill] sm:$0xff] }
 0x4e4   :  { %v2367_v17 = vadd.f32 %v8116_v24, %v2278_v44  ;;  %v2283_v44 = vadd.f32 %v8121_v42, %v2194_v28 }
 0x4e5   :  { %v3207_v50 = vadd.f32 %v3206_v48, %v3118_v26 }
 0x4e6   :  { %v2456_v29 = vadd.f32 %v6751_v9, %v2367_v17  ;;  %v8124_v17 = vld [vmem:[#allocation145_spill] sm:$0xff] }
 0x4e7   :  { %v3287_v38 = vmax.f32 %v3207_v50, 0.0 }
 0x4e8   :  { %v2545_v58 = vadd.f32 %v6754_v12, %v2456_v29  ;;  %v3324_v12 = vmax.f32 %v6747_v25, 0.0  ;;  %v5108_v29 = vld [vmem:[#allocation5 + $0x14] sm:$0xf] }
 0x4e9   :  { %v7204_v53 = vpack.c.bf16 %v3287_v38, %v3285_v5  ;;  %v7226_v26 = vpop.f32.mrf.mxu2 }
 0x4ea   :  { %v3120_v10 = vpop.f32.mrf.mxu0  ;;  %v3209_v51 = vpop.f32.mrf.mxu1  ;;  %v2634_v50 = vadd.f32 %v6756_v56, %v2545_v58  ;;  %v4895_v58 = vor.u32 %v5124_v23, %v4892_v30 }
 0x4eb   :  { %3675 = vmatmul.bf16.vlgmr.msrb.gmra.mxu3 %v7204_v53  ;;  %v3121_v21 = vadd.f32 %v3120_v10, %v6875_v61 }
 0x4ec   :  { %v3326_v36 = vmax.f32 %v2634_v50, 0.0  ;;  %3851 = vmatpush.bf16.msra.mxu1 %v4895_v58  ;;  %v5151_v58 = vld [vmem:[%s7677_s5 + $0x68] sm:$0xff] }
 0x4ed   :  { %3159 = vmatmul.bf16.gmra.mxu0 %v8117_v52  ;;  %4809 = vmatmul.msk.bf16.gmra.mxu1 %vm1989_vm0, %v8118_v27  ;;  %v3210_v43 = vadd.f32 %v3209_v51, %v3121_v21  ;;  %v8122_v51 = vld [vmem:[#allocation99_spill] sm:$0xff]  ;;  %v8125_v52 = vld [vmem:[#allocation146_spill] sm:$0xff] }
 0x4ee   :  { %3631 = vmatmul.bf16.gmra.mxu2 %v7212_v46  ;;  %v7237_v24 = vpack.c.bf16 %v3326_v36, %v3324_v12  ;;  %v4828_v21 = vld [vmem:[#allocation5 + $0x18] sm:$0xf0]  ;;  %v8129_v12 = vld [vmem:[#allocation104_spill] sm:$0xff]  ;;  %4253 = vmatpush.bf16.msra.mxu3 %v5151_v58 }
 0x4ef   :  { %v3289_v5 = vmax.f32 %v3210_v43, 0.0  ;;  %v4831_v33 = vor.u32 %v5108_v29, %v4828_v21  ;;  %v8133_v29 = vld [vmem:[#allocation153_spill] sm:$0xff]  ;;  %v8134_v21 = vld [vmem:[#allocation154_spill] sm:$0xff] }
 0x4f0   :  { %8123 = vst [vmem:[#allocation35_spill] sm:$0xff] %v7237_v24 }
 0x4f1   :  { %v7239_v56 = vpop.f32.mrf.mxu2  ;;  %3762 = vmatpush.bf16.msra.mxu0 %v4831_v33  ;;  %v8135_v33 = vld [vmem:[#allocation188_spill] sm:$0xff] }
 0x4f2   :  { %v3122_v48 = vpop.f32.mrf.mxu0  ;;  %v3211_v47 = vpop.f32.mrf.mxu1 }
 0x4f3   :  { %v3123_v9 = vadd.f32 %v3122_v48, %v6879_v57  ;;  %v2372_v57 = vadd.f32 %v8122_v51, %v2283_v44  ;;  %v8126_v48 = vld [vmem:[#allocation100_spill] sm:$0xff]  ;;  %v8130_v51 = vld [vmem:[#allocation185_spill] sm:$0xff] }
 0x4f5   :  { %v3212_v61 = vadd.f32 %v3211_v47, %v3123_v9  ;;  %v2461_v27 = vadd.f32 %v6771_v2, %v2372_v57  ;;  %v2110_v47 = vadd.f32 %v8126_v48, %v5537_v20  ;;  %v3328_v57 = vmax.f32 %v8130_v51, 0.0 }
 0x4f7   :  { %v3291_v38 = vmax.f32 %v3212_v61, 0.0  ;;  %v2550_v43 = vadd.f32 %v6773_v1, %v2461_v27 }
 0x4f9   :  { %v7232_v18 = vpack.c.bf16 %v3291_v38, %v3289_v5  ;;  %v8128_v5 = vld [vmem:[#allocation101_spill] sm:$0xff]  ;;  %v7253_v42 = vpop.f32.mrf.mxu2 }
 0x4fa   :  { %v3125_v10 = vpop.f32.mrf.mxu0  ;;  %v3214_v45 = vpop.f32.mrf.mxu1  ;;  %v2199_v38 = vadd.f32 %v8128_v5, %v2110_v47  ;;  %v8136_v47 = vld [vmem:[#allocation189_spill] sm:$0xff] }
 0x4fb   :  { %3680 = vmatmul.bf16.gmra.mxu3 %v7232_v18  ;;  %v3126_v25 = vadd.f32 %v3125_v10, %v6887_v31  ;;  %v2639_v31 = vadd.f32 %v8127_v35, %v2550_v43  ;;  %v8137_v35 = vld [vmem:[#allocation190_spill] sm:$0xff] }
 0x4fc   :  { %v2288_v20 = vadd.f32 %v8129_v12, %v2199_v38 }
 0x4fd   :  { %3164 = vmatmul.bf16.gmra.mxu0 %v8124_v17  ;;  %4810 = vmatmul.msk.bf16.gmra.mxu1 %vm1989_vm0, %v8125_v52  ;;  %v3215_v61 = vadd.f32 %v3214_v45, %v3126_v25  ;;  %v3330_v10 = vmax.f32 %v2639_v31, 0.0  ;;  %v8131_v52 = vld [vmem:[#allocation105_spill] sm:$0xff] }
 0x4fe   :  { %3636 = vmatmul.bf16.gmra.mxu2 %v7237_v24  ;;  %v2377_v27 = vadd.f32 %v8131_v52, %v2288_v20  ;;  %v5106_v52 = vld [vmem:[#allocation5 + $0x4] sm:$0xf] }
 0x4ff   :  { %v3293_v44 = vmax.f32 %v3215_v61, 0.0  ;;  %v7264_v25 = vpack.c.bf16 %v3330_v10, %v3328_v57 }
 0x500   :  { %v2466_v23 = vadd.f32 %v8135_v33, %v2377_v27  ;;  %v4820_v27 = vld [vmem:[#allocation5 + $0x8] sm:$0xf0] }
 0x501   :  { %8132 = vst [vmem:[#allocation36_spill] sm:$0xff] %v7264_v25  ;;  %v7275_v48 = vpop.f32.mrf.mxu2  ;;  %v4884_v33 = vld [vmem:[#allocation5 + $0x88] sm:$0xf0] }
 0x502   :  { %v3127_v9 = vpop.f32.mrf.mxu0  ;;  %v3216_v50 = vpop.f32.mrf.mxu1  ;;  %v2555_v43 = vadd.f32 %v8136_v47, %v2466_v23  ;;  %v8143_v23 = vld [vmem:[#allocation15_spill] sm:$0xff] }
 0x503   :  { %v3128_v2 = vadd.f32 %v3127_v9, %v6891_v41  ;;  %v5143_v41 = vld [vmem:[%s7677_s5 + $0x28] sm:$0xff] }
 0x504   :  { %4164 = vmatpush.bf16.msra.mxu2 %v5143_v41  ;;  %v2644_v31 = vadd.f32 %v8137_v35, %v2555_v43 }
 0x505   :  { %v3217_v28 = vadd.f32 %v3216_v50, %v3128_v2 }
 0x507   :  { %v3295_v36 = vmax.f32 %v3217_v28, 0.0 }
 0x509   :  { %v7256_v1 = vpack.c.bf16 %v3295_v36, %v3293_v44  ;;  %v8138_v36 = vld [vmem:[#allocation187_spill] sm:$0xff]  ;;  %v7283_v51 = vpop.f32.mrf.mxu2 }
 0x50a   :  { %v3130_v45 = vpop.f32.mrf.mxu0  ;;  %v3219_v17 = vpop.f32.mrf.mxu1  ;;  %v3332_v12 = vmax.f32 %v8138_v36, 0.0  ;;  %v5142_v36 = vld [vmem:[%s7677_s5 + $0x20] sm:$0xff] }
 0x50b   :  { %3685 = vmatmul.bf16.gmra.mxu3 %v7256_v1  ;;  %v3131_v30 = vadd.f32 %v3130_v45, %v6901_v8  ;;  %v3334_v8 = vmax.f32 %v2644_v31, 0.0  ;;  %v8140_v45 = vld [vmem:[#allocation162_spill] sm:$0xff]  ;;  %4165 = vmatpush.bf16.msra.mxu2 %v5142_v36 }
 0x50d   :  { %3169 = vmatmul.bf16.gmra.mxu0 %v8133_v29  ;;  %4811 = vmatmul.msk.bf16.gmra.mxu1 %vm1989_vm0, %v8134_v21  ;;  %v3220_v61 = vadd.f32 %v3219_v17, %v3131_v30  ;;  %v7286_v57 = vpack.c.bf16 %v3334_v8, %v3332_v12  ;;  %v8142_v17 = vld [vmem:[#allocation14_spill] sm:$0xff]  ;;  %v4823_v29 = vor.u32 %v5106_v52, %v4820_v27  ;;  %v5122_v21 = vld [vmem:[#allocation5 + $0x84] sm:$0xf]  ;;  %v8144_v30 = vld [vmem:[#allocation109_spill] sm:$0xff] }
 0x50e   :  { %3641 = vmatmul.bf16.gmra.mxu2 %v7264_v25  ;;  %v3049_v58 = vadd.f32 %v8144_v30, %v8143_v23  ;;  %v4887_v47 = vor.u32 %v5122_v21, %v4884_v33  ;;  %v8145_v12 = vld [vmem:[#allocation171_spill] sm:$0xff]  ;;  %v8149_v52 = vld [vmem:[#allocation114_spill] sm:$0xff]  ;;  %v8150_v27 = vld [vmem:[#allocation13_spill] sm:$0xff] }
 0x50f   :  { %v3297_v5 = vmax.f32 %v3220_v61, 0.0  ;;  %8139 = vst [vmem:[#allocation37_spill] sm:$0xff] %v7286_v57  ;;  %3763 = vmatpush.bf16.msra.mxu0 %v4823_v29  ;;  %v3054_v29 = vadd.f32 %v8150_v27, %v8149_v52 }
 0x510   :  { %3852 = vmatpush.bf16.msra.mxu1 %v4887_v47 }
 0x512   :  { %v3132_v9 = vpop.f32.mrf.mxu0  ;;  %v3221_v50 = vpop.f32.mrf.mxu1 }
 0x513   :  { %v3133_v2 = vadd.f32 %v3132_v9, %v6905_v54  ;;  %v8141_v54 = vld [vmem:[#allocation163_spill] sm:$0xff] }
 0x515   :  { %v3222_v28 = vadd.f32 %v3221_v50, %v3133_v2  ;;  %v7295_v2 = vpop.f32.mrf.mxu2 }
 0x517   :  { %v3299_v38 = vmax.f32 %v3222_v28, 0.0 }
 0x519   :  { %v7280_v44 = vpack.c.bf16 %v3299_v38, %v3297_v5 }
 0x51a   :  { %v3135_v20 = vpop.f32.mrf.mxu0  ;;  %v3224_v10 = vpop.f32.mrf.mxu1 }
 0x51b   :  { %3690 = vmatmul.bf16.gmra.mxu3 %v7280_v44  ;;  %v3136_v41 = vadd.f32 %v3135_v20, %v8142_v17  ;;  %v8146_v20 = vld [vmem:[#allocation173_spill] sm:$0xff] }
 0x51d   :  { %3174 = vmatmul.bf16.gmra.mxu0 %v8140_v45  ;;  %4812 = vmatmul.msk.bf16.gmra.mxu1 %vm1989_vm0, %v8141_v54  ;;  %v3225_v50 = vadd.f32 %v3224_v10, %v3136_v41  ;;  %v8147_v10 = vld [vmem:[#allocation11_spill] sm:$0xff]  ;;  %v7307_v45 = vpop.f32.mrf.mxu2  ;;  %v8148_v54 = vld [vmem:[#allocation113_spill] sm:$0xff]  ;;  %v5150_v41 = vld [vmem:[%s7677_s5 + $0x60] sm:$0xff] }
 0x51e   :  { %3646 = vmatmul.bf16.gmra.mxu2 %v7286_v57  ;;  %4254 = vmatpush.bf16.msra.mxu3 %v5150_v41 }
 0x51f   :  { %v3301_v31 = vmax.f32 %v3225_v50, 0.0 }
 0x522   :  { %v3137_v43 = vpop.f32.mrf.mxu0  ;;  %v3226_v9 = vpop.f32.mrf.mxu1 }
 0x523   :  { %v3138_v61 = vadd.f32 %v3137_v43, %v3049_v58 }
 0x525   :  { %v3227_v35 = vadd.f32 %v3226_v9, %v3138_v61  ;;  %v7315_v9 = vpop.f32.mrf.mxu2 }
 0x527   :  { %v3303_v28 = vmax.f32 %v3227_v35, 0.0 }
 0x529   :  { %v7297_v5 = vpack.c.bf16 %v3303_v28, %v3301_v31  ;;  %v8151_v31 = vld [vmem:[#allocation180_spill] sm:$0xff]  ;;  %v8152_v28 = vld [vmem:[#allocation181_spill] sm:$0xff] }
 0x52a   :  { %v3140_v38 = vpop.f32.mrf.mxu0  ;;  %v3229_v8 = vpop.f32.mrf.mxu1 }
 0x52b   :  { %3695 = vmatmul.bf16.gmra.mxu3 %v7297_v5  ;;  %v3141_v17 = vadd.f32 %v3140_v38, %v8148_v54  ;;  %v8153_v38 = vld [vmem:[#allocation108_spill] sm:$0xff] }
 0x52d   :  { %3179 = vmatmul.bf16.gmra.mxu0 %v8145_v12  ;;  %4813 = vmatmul.msk.bf16.gmra.mxu1 %vm1989_vm0, %v8146_v20  ;;  %v3230_v23 = vadd.f32 %v3229_v8, %v3141_v17  ;;  %v8154_v8 = vld [vmem:[#allocation17_spill] sm:$0xff]  ;;  %v8155_v12 = vld [vmem:[#allocation18_spill] sm:$0xff]  ;;  %v7327_v52 = vpop.f32.mrf.mxu2 }
 0x52e   :  { %3651 = vmatmul.bf16.gmra.mxu2 %v8147_v10  ;;  %v8156_v20 = vld [vmem:[#allocation110_spill] sm:$0xff] }
 0x52f   :  { %v3305_v47 = vmax.f32 %v3230_v23, 0.0  ;;  %v3059_v54 = vadd.f32 %v8156_v20, %v8155_v12  ;;  %v8160_v12 = vld [vmem:[#allocation16_spill] sm:$0xff] }
 0x530   :  { %v3064_v20 = vadd.f32 %v8160_v12, %v6982_v34 }
 0x532   :  { %v3142_v21 = vpop.f32.mrf.mxu0  ;;  %v3231_v33 = vpop.f32.mrf.mxu1 }
 0x533   :  { %v3143_v30 = vadd.f32 %v3142_v21, %v3054_v29 }
 0x535   :  { %v3232_v58 = vadd.f32 %v3231_v33, %v3143_v30 }
 0x537   :  { %v3307_v43 = vmax.f32 %v3232_v58, 0.0 }
 0x539   :  { %v7317_v50 = vpack.c.bf16 %v3307_v43, %v3305_v47  ;;  %v5141_v43 = vld [vmem:[%s7677_s5 + $0x18] sm:$0xff] }
 0x53a   :  { %v3145_v61 = vpop.f32.mrf.mxu0  ;;  %v3234_v35 = vpop.f32.mrf.mxu1  ;;  %4166 = vmatpush.bf16.msra.mxu2 %v5141_v43  ;;  %v5138_v43 = vld [vmem:[%s7677_s5] sm:$0xff] }
 0x53b   :  { %3700 = vmatmul.bf16.gmra.mxu3 %v7317_v50  ;;  %v3146_v36 = vadd.f32 %v3145_v61, %v8154_v8  ;;  %v7335_v61 = vpop.f32.mrf.mxu2 }
 0x53d   :  { %3184 = vmatmul.bf16.gmra.mxu0 %v8151_v31  ;;  %4814 = vmatmul.msk.bf16.gmra.mxu1 %vm1989_vm0, %v8152_v28  ;;  %v3235_v27 = vadd.f32 %v3234_v35, %v3146_v36  ;;  %v8157_v31 = vld [vmem:[#allocation183_spill] sm:$0xff]  ;;  %v8158_v35 = vld [vmem:[#allocation184_spill] sm:$0xff] }
 0x53e   :  { %3656 = vmatmul.bf16.gmra.mxu2 %v8153_v38  ;;  %v8159_v28 = vld [vmem:[#allocation12_spill] sm:$0xff]  ;;  %v5149_v36 = vld [vmem:[%s7677_s5 + $0x58] sm:$0xff] }
 0x53f   :  { %v3309_v33 = vmax.f32 %v3235_v27, 0.0  ;;  %4255 = vmatpush.bf16.msra.mxu3 %v5149_v36  ;;  %v8162_v36 = vld [vmem:[#allocation115_spill] sm:$0xff] }
 0x540   :  { %v3069_v12 = vadd.f32 %v8162_v36, %v7008_v60  ;;  %v8163_v60 = vld [vmem:[#allocation120_spill] sm:$0xff]  ;;  %v5148_v36 = vld [vmem:[%s7677_s5 + $0x50] sm:$0xff] }
 0x542   :  { %v3147_v17 = vpop.f32.mrf.mxu0  ;;  %v3236_v41 = vpop.f32.mrf.mxu1 }
 0x543   :  { %v3148_v29 = vadd.f32 %v3147_v17, %v3059_v54  ;;  %v5140_v54 = vld [vmem:[%s7677_s5 + $0x10] sm:$0xff]  ;;  %4256 = vmatpush.bf16.msra.mxu3 %v5148_v36 }
 0x544   :  { %4167 = vmatpush.bf16.msra.mxu2 %v5140_v54 }
 0x545   :  { %v3237_v21 = vadd.f32 %v3236_v41, %v3148_v29 }
 0x547   :  { %v3311_v23 = vmax.f32 %v3237_v21, 0.0 }
 0x549   :  { %v7329_v30 = vpack.c.bf16 %v3311_v23, %v3309_v33  ;;  %v7353_v33 = vpop.f32.mrf.mxu2 }
 0x54a   :  { %v3150_v58 = vpop.f32.mrf.mxu0  ;;  %v3239_v47 = vpop.f32.mrf.mxu1 }
 0x54b   :  { %3705 = vmatmul.bf16.gmra.mxu3 %v7329_v30  ;;  %v3151_v8 = vadd.f32 %v3150_v58, %v6973_v15  ;;  %v5139_v15 = vld [vmem:[%s7677_s5 + $0x8] sm:$0xff] }
 0x54c   :  { %4168 = vmatpush.bf16.msra.mxu2 %v5139_v15 }
 0x54d   :  { %3189 = vmatmul.bf16.gmra.mxu0 %v8157_v31  ;;  %4815 = vmatmul.msk.bf16.gmra.mxu1 %vm1989_vm0, %v8158_v35  ;;  %v3240_v27 = vadd.f32 %v3239_v47, %v3151_v8  ;;  %v8161_v35 = vld [vmem:[#allocation116_spill] sm:$0xff] }
 0x54e   :  { %3661 = vmatmul.bf16.gmra.mxu2 %v8159_v28 }
 0x54f   :  { %v3313_v23 = vmax.f32 %v3240_v27, 0.0 }
 0x550   :  { %4169 = vmatpush.bf16.msra.mxu2 %v5138_v43 }
 0x552   :  { %v3152_v17 = vpop.f32.mrf.mxu0  ;;  %v3241_v41 = vpop.f32.mrf.mxu1 }
 0x553   :  { %v3153_v29 = vadd.f32 %v3152_v17, %v3064_v20  ;;  %v7366_v20 = vpop.f32.mrf.mxu2 }
 0x555   :  { %v3242_v21 = vadd.f32 %v3241_v41, %v3153_v29 }
 0x557   :  { %v3315_v58 = vmax.f32 %v3242_v21, 0.0  ;;  %v7368_v21 = vpop.f32.mrf.mxu3 }
 0x559   :  { %v7355_v34 = vpack.c.bf16 %v3315_v58, %v3313_v23 }
 0x55a   :  { %v3155_v31 = vpop.f32.mrf.mxu0  ;;  %v3244_v47 = vpop.f32.mrf.mxu1 }
 0x55b   :  { %3710 = vmatmul.bf16.gmra.mxu3 %v7355_v34  ;;  %v3156_v8 = vadd.f32 %v3155_v31, %v7001_v37  ;;  %v7378_v37 = vld [vmem:[%s7676_s4] sm:$0x3] }
 0x55d   :  { %3764 = vmatmul.bf16.vlgmr.msra.gmra.mxu0 %v8161_v35  ;;  %3853 = vmatmul.bf16.vlgmr.msra.gmra.mxu1 %v7204_v53  ;;  %v3245_v41 = vadd.f32 %v3244_v47, %v3156_v8  ;;  %v7372_v35 = vpop.f32.mrf.mxu2  ;;  %v7383_v47 = vperm.slane %v7378_v37, 0 }
 0x55f   :  { %v3317_v15 = vmax.f32 %v3245_v41, 0.0 }
 0x562   :  { %v3157_v54 = vpop.f32.mrf.mxu0  ;;  %v3246_v17 = vpop.f32.mrf.mxu1 }
 0x563   :  { %v3158_v27 = vadd.f32 %v3157_v54, %v3069_v12  ;;  %v8164_v12 = vld [vmem:[#allocation22_spill] sm:$0xff]  ;;  %v8165_v54 = vld [vmem:[#allocation117_spill] sm:$0xff] }
 0x565   :  { %v3247_v29 = vadd.f32 %v3246_v17, %v3158_v27  ;;  %v3074_v17 = vadd.f32 %v8165_v54, %v8164_v12 }
 0x567   :  { %v3319_v23 = vmax.f32 %v3247_v29, 0.0  ;;  %v3588_v29 = vadd.f32 %v7202_v40, %v7383_v47 }
 0x569   :  { %v7370_v58 = vpack.c.bf16 %v3319_v23, %v3317_v15  ;;  %v3590_v23 = vadd.f32 %v7226_v26, %v7383_v47 }
 0x56a   :  { %v3160_v43 = vpop.f32.mrf.mxu0  ;;  %v3249_v53 = vpop.f32.mrf.mxu1 }
 0x56b   :  { %3715 = vmatmul.bf16.gmra.mxu3 %v7370_v58  ;;  %v3161_v8 = vadd.f32 %v3160_v43, %v7025_v55 }
 0x56d   :  { %3769 = vmatmul.bf16.gmra.mxu0 %v8163_v60  ;;  %3858 = vmatmul.bf16.gmra.mxu1 %v7232_v18  ;;  %v3250_v18 = vadd.f32 %v3249_v53, %v3161_v8  ;;  %v7395_v60 = vpop.f32.mrf.mxu2  ;;  %v8166_v53 = vld [vmem:[#allocation23_spill] sm:$0xff] }
 0x56e   :  { %v3676_v31 = vpop.f32.mrf.mxu3 }
 0x56f   :  { %v3677_v55 = vadd.f32 %v3676_v31, %v3588_v29  ;;  %v3321_v38 = vmax.f32 %v3250_v18, 0.0  ;;  %v3595_v29 = vadd.f32 %v7253_v42, %v7383_v47 }
 0x571   :  { %v3934_v12 = vmax.f32 %v3677_v55, 0.0 }
 0x572   :  { %v3162_v41 = vpop.f32.mrf.mxu0  ;;  %v3251_v27 = vpop.f32.mrf.mxu1 }
 0x573   :  { %v3163_v15 = vadd.f32 %v3162_v41, %v3074_v17  ;;  %v3593_v17 = vadd.f32 %v7239_v56, %v7383_v47 }
 0x575   :  { %v3252_v43 = vadd.f32 %v3251_v27, %v3163_v15  ;;  %v7402_v31 = vpop.f32.mrf.mxu2 }
 0x576   :  { %v3678_v28 = vpop.f32.mrf.mxu3 }
 0x577   :  { %v3323_v10 = vmax.f32 %v3252_v43, 0.0  ;;  %v3679_v57 = vadd.f32 %v3678_v28, %v3590_v23  ;;  %v8167_v28 = vld [vmem:[#allocation21_spill] sm:$0xff] }
 0x579   :  { %v3936_v36 = vmax.f32 %v3679_v57, 0.0  ;;  %v7397_v54 = vpack.c.bf16 %v3323_v10, %v3321_v38  ;;  %v3079_v57 = vadd.f32 %v8167_v28, %v7057_v22 }
 0x57a   :  { %v3165_v25 = vpop.f32.mrf.mxu0  ;;  %v3254_v24 = vpop.f32.mrf.mxu1 }
 0x57b   :  { %v3998_v40 = vpack.c.bf16 %v3936_v36, %v3934_v12  ;;  %3720 = vmatmul.bf16.gmra.mxu3 %v7397_v54  ;;  %v3166_v8 = vadd.f32 %v3165_v25, %v7050_v6 }
 0x57d   :  { %3774 = vmatmul.bf16.gmra.mxu0 %v8166_v53  ;;  %3863 = vmatmul.bf16.gmra.mxu1 %v7256_v1  ;;  %v3255_v41 = vadd.f32 %v3254_v24, %v3166_v8  ;;  %v7411_v6 = vpop.f32.mrf.mxu2  ;;  %v5147_v53 = vld [vmem:[%s7677_s5 + $0x48] sm:$0xff] }
 0x57e   :  { %4170 = vmatmul.bf16.vlgmr.msra.gmra.mxu2 %v3998_v40  ;;  %v3681_v26 = vpop.f32.mrf.mxu3  ;;  %4257 = vmatpush.bf16.msra.mxu3 %v5147_v53  ;;  %v3603_v53 = vadd.f32 %v7295_v2, %v7383_v47 }
 0x57f   :  { %v3682_v1 = vadd.f32 %v3681_v26, %v3593_v17  ;;  %v3325_v23 = vmax.f32 %v3255_v41, 0.0  ;;  %v8168_v26 = vld [vmem:[#allocation28_spill] sm:$0xff] }
 0x580   :  { %v3084_v8 = vadd.f32 %v8168_v26, %v7082_v39 }
 0x581   :  { %v3938_v25 = vmax.f32 %v3682_v1, 0.0 }
 0x582   :  { %v3167_v10 = vpop.f32.mrf.mxu0  ;;  %v3256_v38 = vpop.f32.mrf.mxu1 }
 0x583   :  { %v3168_v27 = vadd.f32 %v3167_v10, %v3079_v57  ;;  %v3598_v10 = vadd.f32 %v7275_v48, %v7383_v47 }
 0x585   :  { %v3257_v18 = vadd.f32 %v3256_v38, %v3168_v27 }
 0x586   :  { %v3683_v15 = vpop.f32.mrf.mxu3 }
 0x587   :  { %v3327_v55 = vmax.f32 %v3257_v18, 0.0  ;;  %v3684_v43 = vadd.f32 %v3683_v15, %v3595_v29 }
 0x589   :  { %v3940_v22 = vmax.f32 %v3684_v43, 0.0  ;;  %v7413_v12 = vpack.c.bf16 %v3327_v55, %v3325_v23 }
 0x58a   :  { %v3170_v36 = vpop.f32.mrf.mxu0  ;;  %v3259_v40 = vpop.f32.mrf.mxu1 }
 0x58b   :  { %3725 = vmatmul.bf16.gmra.mxu3 %v7413_v12  ;;  %v4000_v24 = vpack.c.bf16 %v3940_v22, %v3938_v25  ;;  %v3171_v42 = vadd.f32 %v3170_v36, %v7075_v14  ;;  %v3600_v14 = vadd.f32 %v7283_v51, %v7383_v47  ;;  %v8169_v22 = vld [vmem:[#allocation29_spill] sm:$0xff] }
 0x58d   :  { %3779 = vmatmul.bf16.gmra.mxu0 %v7062_v4  ;;  %3868 = vmatmul.bf16.gmra.mxu1 %v7280_v44  ;;  %v7426_v4 = vpop.f32.mrf.mxu2  ;;  %v3260_v44 = vadd.f32 %v3259_v40, %v3171_v42  ;;  %v8170_v40 = vld [vmem:[#allocation30_spill] sm:$0xff] }
 0x58e   :  { %4175 = vmatmul.bf16.gmra.mxu2 %v4000_v24  ;;  %v3686_v56 = vpop.f32.mrf.mxu3  ;;  %v3089_v24 = vadd.f32 %v8170_v40, %v7107_v63 }
 0x58f   :  { %v3687_v17 = vadd.f32 %v3686_v56, %v3598_v10  ;;  %v3329_v29 = vmax.f32 %v3260_v44, 0.0 }
 0x591   :  { %v3942_v39 = vmax.f32 %v3687_v17, 0.0 }
 0x592   :  { %v3172_v28 = vpop.f32.mrf.mxu0  ;;  %v3261_v57 = vpop.f32.mrf.mxu1 }
 0x593   :  { %v3173_v38 = vadd.f32 %v3172_v28, %v3084_v8  ;;  %v3605_v28 = vadd.f32 %v7307_v45, %v7383_v47 }
 0x595   :  { %v3262_v41 = vadd.f32 %v3261_v57, %v3173_v38  ;;  %v7433_v25 = vpop.f32.mrf.mxu2 }
 0x596   :  { %v3688_v27 = vpop.f32.mrf.mxu3 }
 0x597   :  { %v3331_v1 = vmax.f32 %v3262_v41, 0.0  ;;  %v3689_v18 = vadd.f32 %v3688_v27, %v3600_v14 }
 0x599   :  { %v3944_v15 = vmax.f32 %v3689_v18, 0.0  ;;  %v7430_v23 = vpack.c.bf16 %v3331_v1, %v3329_v29  ;;  %v5146_v18 = vld [vmem:[%s7677_s5 + $0x40] sm:$0xff] }
 0x59a   :  { %v3175_v55 = vpop.f32.mrf.mxu0  ;;  %v3264_v43 = vpop.f32.mrf.mxu1  ;;  %4258 = vmatpush.bf16.msra.mxu3 %v5146_v18 }
 0x59b   :  { %3730 = vmatmul.bf16.gmra.mxu3 %v7430_v23  ;;  %v4002_v48 = vpack.c.bf16 %v3944_v15, %v3942_v39  ;;  %v3176_v36 = vadd.f32 %v3175_v55, %v7100_v32  ;;  %v8171_v39 = vld [vmem:[#allocation132_spill] sm:$0xff] }
 0x59c   :  { %v3094_v15 = vadd.f32 %v8171_v39, %v7132_v49 }
 0x59d   :  { %3784 = vmatmul.bf16.gmra.mxu0 %v8169_v22  ;;  %3873 = vmatmul.bf16.gmra.mxu1 %v7297_v5  ;;  %v3265_v26 = vadd.f32 %v3264_v43, %v3176_v36  ;;  %v7444_v44 = vpop.f32.mrf.mxu2 }
 0x59e   :  { %4180 = vmatmul.bf16.gmra.mxu2 %v4002_v48  ;;  %v3691_v51 = vpop.f32.mrf.mxu3 }
 0x59f   :  { %v3692_v57 = vadd.f32 %v3691_v51, %v3603_v53  ;;  %v3333_v38 = vmax.f32 %v3265_v26, 0.0 }
 0x5a1   :  { %v3946_v17 = vmax.f32 %v3692_v57, 0.0 }
 0x5a2   :  { %v3177_v56 = vpop.f32.mrf.mxu0  ;;  %v3266_v42 = vpop.f32.mrf.mxu1 }
 0x5a3   :  { %v3178_v8 = vadd.f32 %v3177_v56, %v3089_v24 }
 0x5a5   :  { %v3267_v10 = vadd.f32 %v3266_v42, %v3178_v8  ;;  %v7457_v55 = vpop.f32.mrf.mxu2 }
 0x5a6   :  { %v3693_v5 = vpop.f32.mrf.mxu3 }
 0x5a7   :  { %v3335_v32 = vmax.f32 %v3267_v10, 0.0  ;;  %v3694_v14 = vadd.f32 %v3693_v5, %v3605_v28  ;;  %v8172_v10 = vld [vmem:[#allocation134_spill] sm:$0xff] }
 0x5a9   :  { %v3948_v63 = vmax.f32 %v3694_v14, 0.0  ;;  %v7446_v41 = vpack.c.bf16 %v3335_v32, %v3333_v38  ;;  %v3099_v38 = vadd.f32 %v7151_v7, %v7157_v62 }
 0x5aa   :  { %v3180_v27 = vpop.f32.mrf.mxu0  ;;  %v3269_v29 = vpop.f32.mrf.mxu1 }
 0x5ab   :  { %3735 = vmatmul.bf16.gmra.mxu3 %v7446_v41  ;;  %v4004_v2 = vpack.c.bf16 %v3948_v63, %v3946_v17  ;;  %v3181_v1 = vadd.f32 %v3180_v27, %v7125_v19  ;;  %v3610_v19 = vadd.f32 %v7327_v52, %v7383_v47  ;;  %v3613_v17 = vadd.f32 %v7335_v61, %v7383_v47 }
 0x5ad   :  { %3789 = vmatmul.bf16.gmra.mxu0 %v7110_v13  ;;  %3878 = vmatmul.bf16.gmra.mxu1 %v7317_v50  ;;  %v3608_v13 = vadd.f32 %v7315_v9, %v7383_v47  ;;  %v3270_v50 = vadd.f32 %v3269_v29, %v3181_v1  ;;  %v7465_v57 = vpop.f32.mrf.mxu2  ;;  %v3615_v29 = vadd.f32 %v7353_v33, %v7383_v47 }
 0x5ae   :  { %4185 = vmatmul.bf16.gmra.mxu2 %v4004_v2  ;;  %v3696_v45 = vpop.f32.mrf.mxu3 }
 0x5af   :  { %v3697_v51 = vadd.f32 %v3696_v45, %v3608_v13  ;;  %v3337_v24 = vmax.f32 %v3270_v50, 0.0 }
 0x5b1   :  { %v3950_v49 = vmax.f32 %v3697_v51, 0.0 }
 0x5b2   :  { %v3182_v43 = vpop.f32.mrf.mxu0  ;;  %v3271_v48 = vpop.f32.mrf.mxu1 }
 0x5b3   :  { %v3183_v22 = vadd.f32 %v3182_v43, %v3094_v15 }
 0x5b5   :  { %v3272_v36 = vadd.f32 %v3271_v48, %v3183_v22  ;;  %v7477_v2 = vpop.f32.mrf.mxu2  ;;  %v3104_v22 = vadd.f32 %v7368_v21, %v7184_v16 }
 0x5b6   :  { %v3698_v40 = vpop.f32.mrf.mxu3 }
 0x5b7   :  { %v3339_v56 = vmax.f32 %v3272_v36, 0.0  ;;  %v3699_v42 = vadd.f32 %v3698_v40, %v3610_v19  ;;  %v3618_v36 = vadd.f32 %v7366_v20, %v7383_v47  ;;  %v7498_v20 = vperm.slane %v7378_v37, 1 }
 0x5b9   :  { %v3952_v53 = vmax.f32 %v3699_v42, 0.0  ;;  %v7463_v26 = vpack.c.bf16 %v3339_v56, %v3337_v24 }
 0x5ba   :  { %v3185_v8 = vpop.f32.mrf.mxu0  ;;  %v3274_v28 = vpop.f32.mrf.mxu1 }
 0x5bb   :  { %3740 = vmatmul.bf16.gmra.mxu3 %v7463_v26  ;;  %v4006_v9 = vpack.c.bf16 %v3952_v53, %v3950_v49  ;;  %v3186_v5 = vadd.f32 %v3185_v8, %v7148_v0 }
 0x5bd   :  { %3794 = vmatmul.bf16.gmra.mxu0 %v8172_v10  ;;  %3883 = vmatmul.bf16.gmra.mxu1 %v7329_v30  ;;  %v3275_v63 = vadd.f32 %v3274_v28, %v3186_v5  ;;  %v7484_v13 = vpop.f32.mrf.mxu2 }
 0x5be   :  { %4190 = vmatmul.bf16.gmra.mxu2 %v4006_v9  ;;  %v3701_v52 = vpop.f32.mrf.mxu3 }
 0x5bf   :  { %v3702_v30 = vadd.f32 %v3701_v52, %v3613_v17  ;;  %v3341_v18 = vmax.f32 %v3275_v63, 0.0 }
 0x5c1   :  { %v3954_v15 = vmax.f32 %v3702_v30, 0.0 }
 0x5c2   :  { %v3187_v32 = vpop.f32.mrf.mxu0  ;;  %v3276_v14 = vpop.f32.mrf.mxu1 }
 0x5c3   :  { %v3188_v27 = vadd.f32 %v3187_v32, %v3099_v38 }
 0x5c5   :  { %v3277_v45 = vadd.f32 %v3276_v14, %v3188_v27  ;;  %v3623_v14 = vadd.f32 %v7395_v60, %v7383_v47  ;;  %v3625_v27 = vadd.f32 %v7402_v31, %v7383_v47 }
 0x5c6   :  { %v3703_v1 = vpop.f32.mrf.mxu3 }
 0x5c7   :  { %v3343_v0 = vmax.f32 %v3277_v45, 0.0  ;;  %v3704_v39 = vadd.f32 %v3703_v1, %v3615_v29 }
 0x5c9   :  { %v3956_v7 = vmax.f32 %v3704_v39, 0.0  ;;  %v7479_v62 = vpack.c.bf16 %v3343_v0, %v3341_v18 }
 0x5ca   :  { %v3190_v43 = vpop.f32.mrf.mxu0  ;;  %v3279_v48 = vpop.f32.mrf.mxu1 }
 0x5cb   :  { %3745 = vmatmul.bf16.gmra.mxu3 %v7479_v62  ;;  %v4008_v61 = vpack.c.bf16 %v3956_v7, %v3954_v15  ;;  %v3191_v50 = vadd.f32 %v3190_v43, %v7179_v11  ;;  %v7493_v11 = vpop.f32.mrf.mxu2 }
 0x5cd   :  { %3799 = vmatmul.bf16.gmra.mxu0 %v7163_v3  ;;  %3888 = vmatmul.bf16.gmra.mxu1 %v7355_v34  ;;  %v3280_v40 = vadd.f32 %v3279_v48, %v3191_v50  ;;  %v3620_v3 = vadd.f32 %v7372_v35, %v7383_v47  ;;  %v3628_v50 = vadd.f32 %v7411_v6, %v7383_v47 }
 0x5ce   :  { %4195 = vmatmul.bf16.gmra.mxu2 %v4008_v61  ;;  %v3706_v33 = vpop.f32.mrf.mxu3 }
 0x5cf   :  { %v3707_v34 = vadd.f32 %v3706_v33, %v3618_v36  ;;  %v3345_v49 = vmax.f32 %v3280_v40, 0.0 }
 0x5d1   :  { %v3958_v28 = vmax.f32 %v3707_v34, 0.0 }
 0x5d2   :  { %v3192_v19 = vpop.f32.mrf.mxu0  ;;  %v3281_v51 = vpop.f32.mrf.mxu1 }
 0x5d3   :  { %v3193_v24 = vadd.f32 %v3192_v19, %v3104_v22  ;;  %v7506_v17 = vpop.f32.mrf.mxu2 }
 0x5d5   :  { %v3282_v56 = vadd.f32 %v3281_v51, %v3193_v24  ;;  %v3630_v51 = vadd.f32 %v7426_v4, %v7383_v47 }
 0x5d6   :  { %v3708_v42 = vpop.f32.mrf.mxu3 }
 0x5d7   :  { %v3347_v53 = vmax.f32 %v3282_v56, 0.0  ;;  %v3709_v8 = vadd.f32 %v3708_v42, %v3620_v3 }
 0x5d9   :  { %v3960_v16 = vmax.f32 %v3709_v8, 0.0  ;;  %v7495_v21 = vpack.c.bf16 %v3347_v53, %v3345_v49 }
 0x5da   :  { %v3765_v9 = vpop.f32.mrf.mxu0  ;;  %v3854_v10 = vpop.f32.mrf.mxu1 }
 0x5db   :  { %3750 = vmatmul.bf16.gmra.mxu3 %v7495_v21  ;;  %v4010_v35 = vpack.c.bf16 %v3960_v16, %v3958_v28  ;;  %v3766_v5 = vadd.f32 %v3765_v9, %v7498_v20  ;;  %v7511_v43 = vpop.f32.mrf.mxu2  ;;  %v8173_v28 = vld [vmem:[#allocation35_spill] sm:$0xff] }
 0x5dd   :  { %3804 = vmatmul.bf16.gmra.mxu0 %v7187_v59  ;;  %3893 = vmatmul.bf16.gmra.mxu1 %v7370_v58  ;;  %v3855_v37 = vadd.f32 %v3854_v10, %v3766_v5 }
 0x5de   :  { %4200 = vmatmul.bf16.gmra.mxu2 %v4010_v35  ;;  %v3711_v52 = vpop.f32.mrf.mxu3 }
 0x5df   :  { %v3712_v59 = vadd.f32 %v3711_v52, %v3623_v14  ;;  %v3935_v30 = vmax.f32 %v3855_v37, 0.0  ;;  %v3633_v52 = vadd.f32 %v7433_v25, %v7383_v47 }
 0x5e1   :  { %v3962_v18 = vmax.f32 %v3712_v59, 0.0 }
 0x5e2   :  { %v3767_v38 = vpop.f32.mrf.mxu0  ;;  %v3856_v32 = vpop.f32.mrf.mxu1 }
 0x5e3   :  { %v3768_v63 = vadd.f32 %v3767_v38, %v7498_v20  ;;  %v7521_v24 = vpop.f32.mrf.mxu2 }
 0x5e5   :  { %v3857_v29 = vadd.f32 %v3856_v32, %v3768_v63  ;;  %v3635_v32 = vadd.f32 %v7444_v44, %v7383_v47 }
 0x5e6   :  { %v3713_v58 = vpop.f32.mrf.mxu3 }
 0x5e7   :  { %v3937_v45 = vmax.f32 %v3857_v29, 0.0  ;;  %v3714_v1 = vadd.f32 %v3713_v58, %v3625_v27 }
 0x5e9   :  { %v3999_v0 = vpack.c.bf16 %v3937_v45, %v3935_v30  ;;  %v3964_v39 = vmax.f32 %v3714_v1, 0.0 }
 0x5ea   :  { %v3770_v15 = vpop.f32.mrf.mxu0  ;;  %v3859_v7 = vpop.f32.mrf.mxu1 }
 0x5eb   :  { %4259 = vmatmul.bf16.vlgmr.msra.gmra.mxu3 %v3999_v0  ;;  %v4012_v60 = vpack.c.bf16 %v3964_v39, %v3962_v18  ;;  %v3771_v48 = vadd.f32 %v3770_v15, %v7498_v20  ;;  %v7526_v9 = vpop.f32.mrf.mxu2  ;;  %v8174_v0 = vld [vmem:[#allocation36_spill] sm:$0xff] }
 0x5ed   :  { %3809 = vmatmul.bf16.gmra.mxu0 %v7212_v46  ;;  %3898 = vmatmul.bf16.gmra.mxu1 %v7397_v54  ;;  %v3860_v22 = vadd.f32 %v3859_v7, %v3771_v48 }
 0x5ee   :  { %4205 = vmatmul.bf16.gmra.mxu2 %v4012_v60  ;;  %v3716_v31 = vpop.f32.mrf.mxu3  ;;  %v3638_v60 = vadd.f32 %v7457_v55, %v7383_v47 }
 0x5ef   :  { %v3717_v36 = vadd.f32 %v3716_v31, %v3628_v50  ;;  %v3939_v54 = vmax.f32 %v3860_v22, 0.0 }
 0x5f1   :  { %v3966_v56 = vmax.f32 %v3717_v36, 0.0 }
 0x5f2   :  { %v3772_v61 = vpop.f32.mrf.mxu0  ;;  %v3861_v33 = vpop.f32.mrf.mxu1 }
 0x5f3   :  { %v3773_v19 = vadd.f32 %v3772_v61, %v7498_v20  ;;  %v7533_v18 = vpop.f32.mrf.mxu2  ;;  %v3640_v61 = vadd.f32 %v7465_v57, %v7383_v47 }
 0x5f5   :  { %v3862_v40 = vadd.f32 %v3861_v33, %v3773_v19 }
 0x5f6   :  { %v3718_v46 = vpop.f32.mrf.mxu3 }
 0x5f7   :  { %v3941_v3 = vmax.f32 %v3862_v40, 0.0  ;;  %v3719_v34 = vadd.f32 %v3718_v46, %v3630_v51 }
 0x5f9   :  { %v3968_v42 = vmax.f32 %v3719_v34, 0.0  ;;  %v4001_v49 = vpack.c.bf16 %v3941_v3, %v3939_v54 }
 0x5fa   :  { %v3775_v53 = vpop.f32.mrf.mxu0  ;;  %v3864_v8 = vpop.f32.mrf.mxu1 }
 0x5fb   :  { %4264 = vmatmul.bf16.gmra.mxu3 %v4001_v49  ;;  %v4014_v6 = vpack.c.bf16 %v3968_v42, %v3966_v56  ;;  %v3776_v16 = vadd.f32 %v3775_v53, %v7498_v20  ;;  %v7543_v33 = vpop.f32.mrf.mxu2  ;;  %v8175_v56 = vld [vmem:[#allocation37_spill] sm:$0xff] }
 0x5fd   :  { %3814 = vmatmul.bf16.gmra.mxu0 %v8173_v28  ;;  %3903 = vmatmul.bf16.gmra.mxu1 %v7413_v12  ;;  %v3865_v5 = vadd.f32 %v3864_v8, %v3776_v16  ;;  %v3645_v16 = vadd.f32 %v7484_v13, %v7383_v47 }
 0x5fe   :  { %4210 = vmatmul.bf16.gmra.mxu2 %v4014_v6  ;;  %v3721_v4 = vpop.f32.mrf.mxu3  ;;  %v3643_v6 = vadd.f32 %v7477_v2, %v7383_v47 }
 0x5ff   :  { %v3722_v14 = vadd.f32 %v3721_v4, %v3633_v52  ;;  %v3943_v63 = vmax.f32 %v3865_v5, 0.0 }
 0x601   :  { %v3970_v29 = vmax.f32 %v3722_v14, 0.0 }
 0x602   :  { %v3777_v10 = vpop.f32.mrf.mxu0  ;;  %v3866_v35 = vpop.f32.mrf.mxu1 }
 0x603   :  { %v3778_v38 = vadd.f32 %v3777_v10, %v7498_v20  ;;  %v7547_v42 = vpop.f32.mrf.mxu2 }
 0x605   :  { %v3867_v37 = vadd.f32 %v3866_v35, %v3778_v38 }
 0x606   :  { %v3723_v12 = vpop.f32.mrf.mxu3 }
 0x607   :  { %v3945_v27 = vmax.f32 %v3867_v37, 0.0  ;;  %v3724_v59 = vadd.f32 %v3723_v12, %v3635_v32 }
 0x609   :  { %v3972_v58 = vmax.f32 %v3724_v59, 0.0  ;;  %v4003_v30 = vpack.c.bf16 %v3945_v27, %v3943_v63  ;;  %v8176_v59 = vld [vmem:[#allocation11_spill] sm:$0xff] }
 0x60a   :  { %v3780_v45 = vpop.f32.mrf.mxu0  ;;  %v3869_v1 = vpop.f32.mrf.mxu1 }
 0x60b   :  { %4269 = vmatmul.bf16.gmra.mxu3 %v4003_v30  ;;  %v4016_v25 = vpack.c.bf16 %v3972_v58, %v3970_v29  ;;  %v3781_v39 = vadd.f32 %v3780_v45, %v7498_v20  ;;  %v7555_v52 = vpop.f32.mrf.mxu2 }
 0x60d   :  { %3819 = vmatmul.bf16.gmra.mxu0 %v8174_v0  ;;  %3908 = vmatmul.bf16.gmra.mxu1 %v7430_v23  ;;  %v3870_v31 = vadd.f32 %v3869_v1, %v3781_v39  ;;  %v3648_v1 = vadd.f32 %v7493_v11, %v7383_v47 }
 0x60e   :  { %4215 = vmatmul.bf16.gmra.mxu2 %v4016_v25  ;;  %v3726_v44 = vpop.f32.mrf.mxu3 }
 0x60f   :  { %v3727_v50 = vadd.f32 %v3726_v44, %v3638_v60  ;;  %v3947_v19 = vmax.f32 %v3870_v31, 0.0  ;;  %v3650_v44 = vadd.f32 %v7506_v17, %v7383_v47 }
 0x611   :  { %v3974_v40 = vmax.f32 %v3727_v50, 0.0 }
 0x612   :  { %v3782_v15 = vpop.f32.mrf.mxu0  ;;  %v3871_v7 = vpop.f32.mrf.mxu1 }
 0x613   :  { %v3783_v48 = vadd.f32 %v3782_v15, %v7498_v20  ;;  %v7560_v58 = vpop.f32.mrf.mxu2 }
 0x615   :  { %v3872_v22 = vadd.f32 %v3871_v7, %v3783_v48 }
 0x616   :  { %v3728_v23 = vpop.f32.mrf.mxu3 }
 0x617   :  { %v3949_v51 = vmax.f32 %v3872_v22, 0.0  ;;  %v3729_v36 = vadd.f32 %v3728_v23, %v3640_v61 }
 0x619   :  { %v3976_v46 = vmax.f32 %v3729_v36, 0.0  ;;  %v4005_v54 = vpack.c.bf16 %v3949_v51, %v3947_v19  ;;  %v8177_v51 = vld [vmem:[#allocation108_spill] sm:$0xff] }
 0x61a   :  { %v3785_v3 = vpop.f32.mrf.mxu0  ;;  %v3874_v34 = vpop.f32.mrf.mxu1 }
 0x61b   :  { %4274 = vmatmul.bf16.gmra.mxu3 %v4005_v54  ;;  %v4018_v55 = vpack.c.bf16 %v3976_v46, %v3974_v40  ;;  %v3786_v49 = vadd.f32 %v3785_v3, %v7498_v20  ;;  %v7567_v19 = vpop.f32.mrf.mxu2  ;;  %v3653_v54 = vadd.f32 %v7511_v43, %v7383_v47 }
 0x61d   :  { %3824 = vmatmul.bf16.gmra.mxu0 %v8175_v56  ;;  %3913 = vmatmul.bf16.gmra.mxu1 %v7446_v41  ;;  %v3875_v28 = vadd.f32 %v3874_v34, %v3786_v49 }
 0x61e   :  { %4220 = vmatmul.bf16.gmra.mxu2 %v4018_v55  ;;  %v3731_v57 = vpop.f32.mrf.mxu3  ;;  %v3655_v55 = vadd.f32 %v7521_v24, %v7383_v47 }
 0x61f   :  { %v3732_v10 = vadd.f32 %v3731_v57, %v3643_v6  ;;  %v3951_v5 = vmax.f32 %v3875_v28, 0.0 }
 0x621   :  { %v3978_v14 = vmax.f32 %v3732_v10, 0.0 }
 0x622   :  { %v3787_v53 = vpop.f32.mrf.mxu0  ;;  %v3876_v8 = vpop.f32.mrf.mxu1 }
 0x623   :  { %v3788_v4 = vadd.f32 %v3787_v53, %v7498_v20  ;;  %v7577_v56 = vpop.f32.mrf.mxu2 }
 0x625   :  { %v3877_v35 = vadd.f32 %v3876_v8, %v3788_v4 }
 0x626   :  { %v3733_v41 = vpop.f32.mrf.mxu3 }
 0x627   :  { %v3953_v38 = vmax.f32 %v3877_v35, 0.0  ;;  %v3734_v32 = vadd.f32 %v3733_v41, %v3645_v16  ;;  %v8178_v41 = vld [vmem:[#allocation12_spill] sm:$0xff] }
 0x629   :  { %v4007_v37 = vpack.c.bf16 %v3953_v38, %v3951_v5  ;;  %v3980_v12 = vmax.f32 %v3734_v32, 0.0 }
 0x62a   :  { %v3790_v63 = vpop.f32.mrf.mxu0  ;;  %v3879_v27 = vpop.f32.mrf.mxu1 }
 0x62b   :  { %4279 = vmatmul.bf16.gmra.mxu3 %v4007_v37  ;;  %v4020_v2 = vpack.c.bf16 %v3980_v12, %v3978_v14  ;;  %v3791_v29 = vadd.f32 %v3790_v63, %v7498_v20  ;;  %v7581_v5 = vpop.f32.mrf.mxu2  ;;  %v3658_v37 = vadd.f32 %v7526_v9, %v7383_v47 }
 0x62d   :  { %3829 = vmatmul.bf16.gmra.mxu0 %v8176_v59  ;;  %3918 = vmatmul.bf16.gmra.mxu1 %v7463_v26  ;;  %v3880_v25 = vadd.f32 %v3879_v27, %v3791_v29  ;;  %v3660_v27 = vadd.f32 %v7533_v18, %v7383_v47 }
 0x62e   :  { %4225 = vmatmul.bf16.gmra.mxu2 %v4020_v2  ;;  %v3736_v13 = vpop.f32.mrf.mxu3 }
 0x62f   :  { %v3737_v39 = vadd.f32 %v3736_v13, %v3648_v1  ;;  %v3955_v7 = vmax.f32 %v3880_v25, 0.0 }
 0x631   :  { %v3982_v48 = vmax.f32 %v3737_v39, 0.0 }
 0x632   :  { %v3792_v30 = vpop.f32.mrf.mxu0  ;;  %v3881_v45 = vpop.f32.mrf.mxu1 }
 0x633   :  { %v3793_v0 = vadd.f32 %v3792_v30, %v7498_v20 }
 0x635   :  { %v3882_v15 = vadd.f32 %v3881_v45, %v3793_v0  ;;  %v7589_v45 = vpop.f32.mrf.mxu2 }
 0x636   :  { %v3738_v26 = vpop.f32.mrf.mxu3 }
 0x637   :  { %v3957_v60 = vmax.f32 %v3882_v15, 0.0  ;;  %v3739_v31 = vadd.f32 %v3738_v26, %v3650_v44 }
 0x639   :  { %v4009_v61 = vpack.c.bf16 %v3957_v60, %v3955_v7  ;;  %v3984_v50 = vmax.f32 %v3739_v31, 0.0  ;;  %v3663_v60 = vadd.f32 %v7543_v33, %v7383_v47 }
 0x63a   :  { %v3795_v22 = vpop.f32.mrf.mxu0  ;;  %v3884_v23 = vpop.f32.mrf.mxu1 }
 0x63b   :  { %4284 = vmatmul.bf16.gmra.mxu3 %v4009_v61  ;;  %v4022_v11 = vpack.c.bf16 %v3984_v50, %v3982_v48  ;;  %v3796_v36 = vadd.f32 %v3795_v22, %v7498_v20  ;;  %v3665_v50 = vadd.f32 %v7547_v42, %v7383_v47 }
 0x63d   :  { %3834 = vmatmul.bf16.gmra.mxu0 %v8177_v51  ;;  %3923 = vmatmul.bf16.gmra.mxu1 %v7479_v62  ;;  %v3885_v3 = vadd.f32 %v3884_v23, %v3796_v36  ;;  %v7595_v61 = vpop.f32.mrf.mxu2 }
 0x63e   :  { %4230 = vmatmul.bf16.gmra.mxu2 %v4022_v11  ;;  %v3741_v17 = vpop.f32.mrf.mxu3 }
 0x63f   :  { %v3742_v57 = vadd.f32 %v3741_v17, %v3653_v54  ;;  %v3959_v53 = vmax.f32 %v3885_v3, 0.0 }
 0x641   :  { %v3986_v28 = vmax.f32 %v3742_v57, 0.0 }
 0x642   :  { %v3797_v40 = vpop.f32.mrf.mxu0  ;;  %v3886_v46 = vpop.f32.mrf.mxu1 }
 0x643   :  { %v3798_v34 = vadd.f32 %v3797_v40, %v7498_v20  ;;  %v7602_v40 = vld [vmem:[%s7678_s6] ss:$0 sm:$0xff] }
 0x644   :  { %v4172_v47 = vadd.f32 %v7602_v40, %v7555_v52 }
 0x645   :  { %v3887_v49 = vadd.f32 %v3886_v46, %v3798_v34  ;;  %v7606_v42 = vpop.f32.mrf.mxu2 }
 0x646   :  { %v3743_v62 = vpop.f32.mrf.mxu3 }
 0x647   :  { %v3961_v8 = vmax.f32 %v3887_v49, 0.0  ;;  %v3744_v6 = vadd.f32 %v3743_v62, %v3655_v55 }
 0x649   :  { %v4011_v4 = vpack.c.bf16 %v3961_v8, %v3959_v53  ;;  %v3988_v16 = vmax.f32 %v3744_v6, 0.0 }
 0x64a   :  { %v3800_v10 = vpop.f32.mrf.mxu0  ;;  %v3889_v35 = vpop.f32.mrf.mxu1 }
 0x64b   :  { %4289 = vmatmul.bf16.gmra.mxu3 %v4011_v4  ;;  %v4024_v43 = vpack.c.bf16 %v3988_v16, %v3986_v28  ;;  %v3801_v38 = vadd.f32 %v3800_v10, %v7498_v20  ;;  %v4174_v4 = vadd.f32 %v7602_v40, %v7560_v58 }
 0x64d   :  { %3839 = vmatmul.bf16.gmra.mxu0 %v8178_v41  ;;  %3928 = vmatmul.bf16.gmra.mxu1 %v7495_v21  ;;  %v3890_v12 = vadd.f32 %v3889_v35, %v3801_v38 }
 0x64e   :  { %4235 = vmatmul.bf16.gmra.mxu2 %v4024_v43  ;;  %v3746_v24 = vpop.f32.mrf.mxu3 }
 0x64f   :  { %v3747_v2 = vadd.f32 %v3746_v24, %v3658_v37  ;;  %v3963_v13 = vmax.f32 %v3890_v12, 0.0 }
 0x651   :  { %v3990_v1 = vmax.f32 %v3747_v2, 0.0 }
 0x652   :  { %v3802_v32 = vpop.f32.mrf.mxu0  ;;  %v3891_v14 = vpop.f32.mrf.mxu1 }
 0x653   :  { %v3803_v63 = vadd.f32 %v3802_v32, %v7498_v20  ;;  %v7612_v32 = vpop.f32.mrf.mxu2 }
 0x655   :  { %v3892_v59 = vadd.f32 %v3891_v14, %v3803_v63  ;;  %v4177_v14 = vadd.f32 %v7602_v40, %v7567_v19 }
 0x656   :  { %v3748_v21 = vpop.f32.mrf.mxu3 }
 0x657   :  { %v3965_v29 = vmax.f32 %v3892_v59, 0.0  ;;  %v3749_v30 = vadd.f32 %v3748_v21, %v3660_v27  ;;  %v4179_v21 = vadd.f32 %v7602_v40, %v7577_v56 }
 0x659   :  { %v4013_v25 = vpack.c.bf16 %v3965_v29, %v3963_v13  ;;  %v3992_v0 = vmax.f32 %v3749_v30, 0.0 }
 0x65a   :  { %v3805_v44 = vpop.f32.mrf.mxu0  ;;  %v3894_v39 = vpop.f32.mrf.mxu1 }
 0x65b   :  { %4294 = vmatmul.bf16.gmra.mxu3 %v4013_v25  ;;  %v4026_v9 = vpack.c.bf16 %v3992_v0, %v3990_v1  ;;  %v3806_v26 = vadd.f32 %v3805_v44, %v7498_v20  ;;  %v7620_v13 = vpop.f32.mrf.mxu2 }
 0x65d   :  { %v3895_v31 = vadd.f32 %v3894_v39, %v3806_v26 }
 0x65e   :  { %4240 = vmatmul.bf16.gmra.mxu2 %v4026_v9  ;;  %v3751_v15 = vpop.f32.mrf.mxu3  ;;  %v4182_v9 = vadd.f32 %v7602_v40, %v7581_v5 }
 0x65f   :  { %v3752_v22 = vadd.f32 %v3751_v15, %v3663_v60  ;;  %v3967_v51 = vmax.f32 %v3895_v31, 0.0 }
 0x661   :  { %v3994_v33 = vmax.f32 %v3752_v22, 0.0 }
 0x662   :  { %v3807_v18 = vpop.f32.mrf.mxu0  ;;  %v3896_v7 = vpop.f32.mrf.mxu1 }
 0x663   :  { %v3808_v48 = vadd.f32 %v3807_v18, %v7498_v20  ;;  %v7624_v26 = vpop.f32.mrf.mxu2 }
 0x665   :  { %v3897_v23 = vadd.f32 %v3896_v7, %v3808_v48 }
 0x666   :  { %v3753_v11 = vpop.f32.mrf.mxu3 }
 0x667   :  { %v3969_v17 = vmax.f32 %v3897_v23, 0.0  ;;  %v3754_v36 = vadd.f32 %v3753_v11, %v3665_v50  ;;  %v4184_v50 = vadd.f32 %v7602_v40, %v7589_v45 }
 0x669   :  { %v4015_v46 = vpack.c.bf16 %v3969_v17, %v3967_v51  ;;  %v3996_v54 = vmax.f32 %v3754_v36, 0.0 }
 0x66a   :  { %v3810_v3 = vpop.f32.mrf.mxu0  ;;  %v3899_v34 = vpop.f32.mrf.mxu1 }
 0x66b   :  { %4299 = vmatmul.bf16.gmra.mxu3 %v4015_v46  ;;  %v4028_v55 = vpack.c.bf16 %v3996_v54, %v3994_v33  ;;  %v3811_v49 = vadd.f32 %v3810_v3, %v7498_v20  ;;  %v4198_v17 = vpop.f32.mrf.mxu2  ;;  %v4187_v54 = vadd.f32 %v7602_v40, %v7595_v61 }
 0x66d   :  { %v3900_v6 = vadd.f32 %v3899_v34, %v3811_v49 }
 0x66e   :  { %4245 = vmatmul.bf16.gmra.mxu2 %v4028_v55  ;;  %v4260_v57 = vpop.f32.mrf.mxu3 }
 0x66f   :  { %v4261_v62 = vadd.f32 %v4260_v57, %v4172_v47  ;;  %v3971_v35 = vmax.f32 %v3900_v6, 0.0 }
 0x671   :  { %4340 = vst [vmem:[#allocation7] sm:$0xff] %v4261_v62 }
 0x672   :  { %v3812_v53 = vpop.f32.mrf.mxu0  ;;  %v3901_v8 = vpop.f32.mrf.mxu1 }
 0x673   :  { %v3813_v28 = vadd.f32 %v3812_v53, %v7498_v20  ;;  %v4201_v57 = vpop.f32.mrf.mxu2  ;;  %v4189_v53 = vadd.f32 %v7602_v40, %v7606_v42 }
 0x675   :  { %v3902_v16 = vadd.f32 %v3901_v8, %v3813_v28 }
 0x676   :  { %v4262_v10 = vpop.f32.mrf.mxu3 }
 0x677   :  { %v3973_v52 = vmax.f32 %v3902_v16, 0.0  ;;  %v4263_v43 = vadd.f32 %v4262_v10, %v4174_v4 }
 0x679   :  { %v4017_v41 = vpack.c.bf16 %v3973_v52, %v3971_v35  ;;  %4341 = vst [vmem:[#allocation7 + $0x8] sm:$0xff] %v4263_v43  ;;  %v4192_v52 = vadd.f32 %v7602_v40, %v7612_v32 }
 0x67a   :  { %v3815_v24 = vpop.f32.mrf.mxu0  ;;  %v3904_v38 = vpop.f32.mrf.mxu1 }
 0x67b   :  { %4304 = vmatmul.bf16.gmra.mxu3 %v4017_v41  ;;  %v3816_v12 = vadd.f32 %v3815_v24, %v7498_v20  ;;  %v4203_v43 = vpop.f32.mrf.mxu2 }
 0x67d   :  { %v3905_v2 = vadd.f32 %v3904_v38, %v3816_v12 }
 0x67e   :  { %v4265_v37 = vpop.f32.mrf.mxu3 }
 0x67f   :  { %v4266_v63 = vadd.f32 %v4265_v37, %v4177_v14  ;;  %v3975_v1 = vmax.f32 %v3905_v2, 0.0 }
 0x681   :  { %4342 = vst [vmem:[#allocation7 + $0x10] sm:$0xff] %v4266_v63  ;;  %v4194_v63 = vadd.f32 %v7602_v40, %v7620_v13 }
 0x682   :  { %v3817_v58 = vpop.f32.mrf.mxu0  ;;  %v3906_v27 = vpop.f32.mrf.mxu1 }
 0x683   :  { %v3818_v59 = vadd.f32 %v3817_v58, %v7498_v20  ;;  %v4206_v2 = vpop.f32.mrf.mxu2 }
 0x685   :  { %v3907_v29 = vadd.f32 %v3906_v27, %v3818_v59 }
 0x686   :  { %v4267_v30 = vpop.f32.mrf.mxu3 }
 0x687   :  { %v3977_v25 = vmax.f32 %v3907_v29, 0.0  ;;  %v4268_v19 = vadd.f32 %v4267_v30, %v4179_v21 }
 0x689   :  { %v4019_v0 = vpack.c.bf16 %v3977_v25, %v3975_v1  ;;  %4343 = vst [vmem:[#allocation7 + $0x18] sm:$0xff] %v4268_v19  ;;  %v4197_v25 = vadd.f32 %v7602_v40, %v7624_v26 }
 0x68a   :  { %v3820_v44 = vpop.f32.mrf.mxu0  ;;  %v3909_v39 = vpop.f32.mrf.mxu1 }
 0x68b   :  { %4309 = vmatmul.bf16.gmra.mxu3 %v4019_v0  ;;  %v3821_v56 = vadd.f32 %v3820_v44, %v7498_v20 }
 0x68d   :  { %v3910_v31 = vadd.f32 %v3909_v39, %v3821_v56  ;;  %v4208_v39 = vpop.f32.mrf.mxu2 }
 0x68e   :  { %v4270_v15 = vpop.f32.mrf.mxu3 }
 0x68f   :  { %v4271_v18 = vadd.f32 %v4270_v15, %v4182_v9  ;;  %v3979_v11 = vmax.f32 %v3910_v31, 0.0 }
 0x691   :  { %4344 = vst [vmem:[#allocation7 + $0x20] sm:$0xff] %v4271_v18  ;;  %v4199_v18 = vadd.f32 %v7602_v40, %v4198_v17 }
 0x692   :  { %v3822_v7 = vpop.f32.mrf.mxu0  ;;  %v3911_v60 = vpop.f32.mrf.mxu1 }
 0x693   :  { %v3823_v48 = vadd.f32 %v3822_v7, %v7498_v20 }
 0x695   :  { %v3912_v22 = vadd.f32 %v3911_v60, %v3823_v48 }
 0x696   :  { %v4272_v23 = vpop.f32.mrf.mxu3 }
 0x697   :  { %v3981_v51 = vmax.f32 %v3912_v22, 0.0  ;;  %v4273_v5 = vadd.f32 %v4272_v23, %v4184_v50 }
 0x699   :  { %v4021_v36 = vpack.c.bf16 %v3981_v51, %v3979_v11  ;;  %4345 = vst [vmem:[#allocation7 + $0x28] sm:$0xff] %v4273_v5  ;;  %v4211_v11 = vpop.f32.mrf.mxu2  ;;  %v4202_v51 = vadd.f32 %v7602_v40, %v4201_v57  ;;  %v4207_v57 = vadd.f32 %v7602_v40, %v4206_v2 }
 0x69a   :  { %v3825_v33 = vpop.f32.mrf.mxu0  ;;  %v3914_v46 = vpop.f32.mrf.mxu1 }
 0x69b   :  { %4314 = vmatmul.bf16.gmra.mxu3 %v4021_v36  ;;  %v3826_v34 = vadd.f32 %v3825_v33, %v7498_v20 }
 0x69d   :  { %v3915_v49 = vadd.f32 %v3914_v46, %v3826_v34  ;;  %v4204_v34 = vadd.f32 %v7602_v40, %v4203_v43 }
 0x69e   :  { %v4275_v3 = vpop.f32.mrf.mxu3 }
 0x69f   :  { %v4276_v55 = vadd.f32 %v4275_v3, %v4187_v54  ;;  %v3983_v28 = vmax.f32 %v3915_v49, 0.0 }
 0x6a1   :  { %4346 = vst [vmem:[#allocation7 + $0x30] sm:$0xff] %v4276_v55 }
 0x6a2   :  { %v3827_v45 = vpop.f32.mrf.mxu0  ;;  %v3916_v47 = vpop.f32.mrf.mxu1 }
 0x6a3   :  { %v3828_v62 = vadd.f32 %v3827_v45, %v7498_v20  ;;  %v4213_v45 = vpop.f32.mrf.mxu2 }
 0x6a5   :  { %v3917_v8 = vadd.f32 %v3916_v47, %v3828_v62 }
 0x6a6   :  { %v4277_v6 = vpop.f32.mrf.mxu3 }
 0x6a7   :  { %v3985_v4 = vmax.f32 %v3917_v8, 0.0  ;;  %v4278_v16 = vadd.f32 %v4277_v6, %v4189_v53 }
 0x6a9   :  { %v4023_v61 = vpack.c.bf16 %v3985_v4, %v3983_v28  ;;  %4347 = vst [vmem:[#allocation7 + $0x38] sm:$0xff] %v4278_v16 }
 0x6aa   :  { %v3830_v10 = vpop.f32.mrf.mxu0  ;;  %v3919_v35 = vpop.f32.mrf.mxu1 }
 0x6ab   :  { %4319 = vmatmul.bf16.gmra.mxu3 %v4023_v61  ;;  %v3831_v24 = vadd.f32 %v3830_v10, %v7498_v20  ;;  %v4216_v4 = vpop.f32.mrf.mxu2 }
 0x6ad   :  { %v3920_v37 = vadd.f32 %v3919_v35, %v3831_v24  ;;  %v4212_v35 = vadd.f32 %v7602_v40, %v4211_v11  ;;  %v4214_v24 = vadd.f32 %v7602_v40, %v4213_v45 }
 0x6ae   :  { %v4280_v41 = vpop.f32.mrf.mxu3 }
 0x6af   :  { %v4281_v38 = vadd.f32 %v4280_v41, %v4192_v52  ;;  %v3987_v59 = vmax.f32 %v3920_v37, 0.0 }
 0x6b1   :  { %4348 = vst [vmem:[#allocation7 + $0x40] sm:$0xff] %v4281_v38 }
 0x6b2   :  { %v3832_v42 = vpop.f32.mrf.mxu0  ;;  %v3921_v14 = vpop.f32.mrf.mxu1 }
 0x6b3   :  { %v3833_v12 = vadd.f32 %v3832_v42, %v7498_v20  ;;  %v4218_v10 = vpop.f32.mrf.mxu2 }
 0x6b5   :  { %v3922_v58 = vadd.f32 %v3921_v14, %v3833_v12  ;;  %v4217_v14 = vadd.f32 %v7602_v40, %v4216_v4 }
 0x6b6   :  { %v4282_v27 = vpop.f32.mrf.mxu3 }
 0x6b7   :  { %v3989_v21 = vmax.f32 %v3922_v58, 0.0  ;;  %v4283_v32 = vadd.f32 %v4282_v27, %v4194_v63  ;;  %v4219_v58 = vadd.f32 %v7602_v40, %v4218_v10 }
 0x6b9   :  { %v4025_v29 = vpack.c.bf16 %v3989_v21, %v3987_v59  ;;  %4349 = vst [vmem:[#allocation7 + $0x48] sm:$0xff] %v4283_v32 }
 0x6ba   :  { %v3835_v30 = vpop.f32.mrf.mxu0  ;;  %v3924_v1 = vpop.f32.mrf.mxu1 }
 0x6bb   :  { %4324 = vmatmul.bf16.gmra.mxu3 %v4025_v29  ;;  %v3836_v0 = vadd.f32 %v3835_v30, %v7498_v20  ;;  %v4221_v41 = vpop.f32.mrf.mxu2 }
 0x6bc   :  { %v4222_v21 = vadd.f32 %v7602_v40, %v4221_v41 }
 0x6bd   :  { %v3925_v15 = vadd.f32 %v3924_v1, %v3836_v0 }
 0x6be   :  { %v4285_v19 = vpop.f32.mrf.mxu3 }
 0x6bf   :  { %v4286_v44 = vadd.f32 %v4285_v19, %v4197_v25  ;;  %v3991_v31 = vmax.f32 %v3925_v15, 0.0 }
 0x6c1   :  { %4350 = vst [vmem:[#allocation7 + $0x50] sm:$0xff] %v4286_v44 }
 0x6c2   :  { %v3837_v13 = vpop.f32.mrf.mxu0  ;;  %v3926_v9 = vpop.f32.mrf.mxu1 }
 0x6c3   :  { %v3838_v56 = vadd.f32 %v3837_v13, %v7498_v20  ;;  %v4223_v37 = vpop.f32.mrf.mxu2 }
 0x6c4   :  { %v4224_v1 = vadd.f32 %v7602_v40, %v4223_v37 }
 0x6c5   :  { %v3927_v7 = vadd.f32 %v3926_v9, %v3838_v56 }
 0x6c6   :  { %v4287_v60 = vpop.f32.mrf.mxu3 }
 0x6c7   :  { %v3993_v48 = vmax.f32 %v3927_v7, 0.0  ;;  %v4288_v50 = vadd.f32 %v4287_v60, %v4199_v18 }
 0x6c9   :  { %v4027_v22 = vpack.c.bf16 %v3993_v48, %v3991_v31  ;;  %4351 = vst [vmem:[#allocation7 + $0x58] sm:$0xff] %v4288_v50 }
 0x6ca   :  { %v3840_v26 = vpop.f32.mrf.mxu0  ;;  %v3929_v23 = vpop.f32.mrf.mxu1 }
 0x6cb   :  { %4329 = vmatmul.bf16.gmra.mxu3 %v4027_v22  ;;  %v3841_v36 = vadd.f32 %v3840_v26, %v7498_v20  ;;  %v4226_v59 = vpop.f32.mrf.mxu2 }
 0x6cc   :  { %v4227_v44 = vadd.f32 %v7602_v40, %v4226_v59 }
 0x6cd   :  { %v3930_v17 = vadd.f32 %v3929_v23, %v3841_v36 }
 0x6ce   :  { %v4290_v5 = vpop.f32.mrf.mxu3 }
 0x6cf   :  { %v4291_v33 = vadd.f32 %v4290_v5, %v4202_v51  ;;  %v3995_v49 = vmax.f32 %v3930_v17, 0.0 }
 0x6d1   :  { %4352 = vst [vmem:[#allocation7 + $0x60] sm:$0xff] %v4291_v33 }
 0x6d2   :  { %v3842_v46 = vpop.f32.mrf.mxu0  ;;  %v3931_v3 = vpop.f32.mrf.mxu1 }
 0x6d3   :  { %v3843_v54 = vadd.f32 %v3842_v46, %v7498_v20  ;;  %v4209_v20 = vadd.f32 %v7602_v40, %v4208_v39  ;;  %v4228_v30 = vpop.f32.mrf.mxu2 }
 0x6d4   :  { %v4229_v9 = vadd.f32 %v7602_v40, %v4228_v30 }
 0x6d5   :  { %v3932_v55 = vadd.f32 %v3931_v3, %v3843_v54 }
 0x6d6   :  { %v4292_v47 = vpop.f32.mrf.mxu3 }
 0x6d7   :  { %v3997_v62 = vmax.f32 %v3932_v55, 0.0  ;;  %v4293_v53 = vadd.f32 %v4292_v47, %v4204_v34 }
 0x6d9   :  { %v4029_v8 = vpack.c.bf16 %v3997_v62, %v3995_v49  ;;  %4353 = vst [vmem:[#allocation7 + $0x68] sm:$0xff] %v4293_v53 }
 0x6db   :  { %4334 = vmatmul.bf16.gmra.mxu3 %v4029_v8  ;;  %v4231_v0 = vpop.f32.mrf.mxu2 }
 0x6dc   :  { %v4232_v7 = vadd.f32 %v7602_v40, %v4231_v0 }
 0x6de   :  { %v4295_v6 = vpop.f32.mrf.mxu3 }
 0x6df   :  { %v4296_v28 = vadd.f32 %v4295_v6, %v4207_v57 }
 0x6e1   :  { %4354 = vst [vmem:[#allocation7 + $0x70] sm:$0xff] %v4296_v28 }
 0x6e3   :  { %v4233_v15 = vpop.f32.mrf.mxu2 }
 0x6e4   :  { %v4234_v50 = vadd.f32 %v7602_v40, %v4233_v15 }
 0x6e6   :  { %v4297_v16 = vpop.f32.mrf.mxu3 }
 0x6e7   :  { %v4298_v61 = vadd.f32 %v4297_v16, %v4209_v20 }
 0x6e9   :  { %4355 = vst [vmem:[#allocation7 + $0x78] sm:$0xff] %v4298_v61 }
 0x6eb   :  { %v4236_v48 = vpop.f32.mrf.mxu2 }
 0x6ec   :  { %v4237_v11 = vadd.f32 %v7602_v40, %v4236_v48 }
 0x6ee   :  { %v4300_v52 = vpop.f32.mrf.mxu3 }
 0x6ef   :  { %v4301_v43 = vadd.f32 %v4300_v52, %v4212_v35 }
 0x6f1   :  { %4356 = vst [vmem:[#allocation7 + $0x80] sm:$0xff] %v4301_v43 }
 0x6f3   :  { %v4238_v23 = vpop.f32.mrf.mxu2 }
 0x6f4   :  { %v4239_v33 = vadd.f32 %v7602_v40, %v4238_v23 }
 0x6f6   :  { %v4302_v38 = vpop.f32.mrf.mxu3 }
 0x6f7   :  { %v4303_v42 = vadd.f32 %v4302_v38, %v4214_v24 }
 0x6f9   :  { %4357 = vst [vmem:[#allocation7 + $0x88] sm:$0xff] %v4303_v42 }
 0x6fb   :  { %v4241_v36 = vpop.f32.mrf.mxu2 }
 0x6fc   :  { %v4242_v54 = vadd.f32 %v7602_v40, %v4241_v36 }
 0x6fe   :  { %v4305_v12 = vpop.f32.mrf.mxu3 }
 0x6ff   :  { %v4306_v63 = vadd.f32 %v4305_v12, %v4217_v14 }
 0x701   :  { %4358 = vst [vmem:[#allocation7 + $0x90] sm:$0xff] %v4306_v63 }
 0x703   :  { %v4243_v3 = vpop.f32.mrf.mxu2 }
 0x704   :  { %v4244_v45 = vadd.f32 %v7602_v40, %v4243_v3 }
 0x706   :  { %v4307_v27 = vpop.f32.mrf.mxu3 }
 0x707   :  { %v4308_v2 = vadd.f32 %v4307_v27, %v4219_v58 }
 0x709   :  { %4359 = vst [vmem:[#allocation7 + $0x98] sm:$0xff] %v4308_v2 }
 0x70b   :  { %v4246_v62 = vpop.f32.mrf.mxu2 }
 0x70c   :  { %v4247_v53 = vadd.f32 %v7602_v40, %v4246_v62 }
 0x70e   :  { %v4310_v32 = vpop.f32.mrf.mxu3 }
 0x70f   :  { %v4311_v29 = vadd.f32 %v4310_v32, %v4222_v21 }
 0x711   :  { %4360 = vst [vmem:[#allocation7 + $0xa0] sm:$0xff] %v4311_v29 }
 0x713   :  { %v4248_v6 = vpop.f32.mrf.mxu2 }
 0x714   :  { %v4249_v28 = vadd.f32 %v7602_v40, %v4248_v6 }
 0x716   :  { %v4312_v25 = vpop.f32.mrf.mxu3 }
 0x717   :  { %v4313_v19 = vadd.f32 %v4312_v25, %v4224_v1 }
 0x719   :  { %4361 = vst [vmem:[#allocation7 + $0xa8] sm:$0xff] %v4313_v19 }
 0x71e   :  { %v4315_v39 = vpop.f32.mrf.mxu3 }
 0x71f   :  { %v4316_v13 = vadd.f32 %v4315_v39, %v4227_v44 }
 0x721   :  { %4362 = vst [vmem:[#allocation7 + $0xb0] sm:$0xff] %v4316_v13 }
 0x726   :  { %v4317_v56 = vpop.f32.mrf.mxu3 }
 0x727   :  { %v4318_v18 = vadd.f32 %v4317_v56, %v4229_v9 }
 0x729   :  { %4363 = vst [vmem:[#allocation7 + $0xb8] sm:$0xff] %v4318_v18 }
 0x72e   :  { %v4320_v60 = vpop.f32.mrf.mxu3 }
 0x72f   :  { %v4321_v31 = vadd.f32 %v4320_v60, %v4232_v7 }
 0x731   :  { %4364 = vst [vmem:[#allocation7 + $0xc0] sm:$0xff] %v4321_v31 }
 0x736   :  { %v4322_v22 = vpop.f32.mrf.mxu3 }
 0x737   :  { %v4323_v26 = vadd.f32 %v4322_v22, %v4234_v50 }
 0x739   :  { %4365 = vst [vmem:[#allocation7 + $0xc8] sm:$0xff] %v4323_v26 }
 0x73e   :  { %v4325_v51 = vpop.f32.mrf.mxu3 }
 0x73f   :  { %v4326_v5 = vadd.f32 %v4325_v51, %v4237_v11 }
 0x741   :  { %4366 = vst [vmem:[#allocation7 + $0xd0] sm:$0xff] %v4326_v5 }
 0x746   :  { %v4327_v46 = vpop.f32.mrf.mxu3 }
 0x747   :  { %v4328_v17 = vadd.f32 %v4327_v46, %v4239_v33 }
 0x749   :  { %4367 = vst [vmem:[#allocation7 + $0xd8] sm:$0xff] %v4328_v17 }
 0x74e   :  { %v4330_v34 = vpop.f32.mrf.mxu3 }
 0x74f   :  { %v4331_v55 = vadd.f32 %v4330_v34, %v4242_v54 }
 0x751   :  { %4368 = vst [vmem:[#allocation7 + $0xe0] sm:$0xff] %v4331_v55 }
 0x756   :  { %v4332_v47 = vpop.f32.mrf.mxu3 }
 0x757   :  { %v4333_v49 = vadd.f32 %v4332_v47, %v4244_v45 }
 0x759   :  { %4369 = vst [vmem:[#allocation7 + $0xe8] sm:$0xff] %v4333_v49 }
 0x75e   :  { %v4335_v8 = vpop.f32.mrf.mxu3 }
 0x75f   :  { %v4336_v57 = vadd.f32 %v4335_v8, %v4247_v53 }
 0x761   :  { %4370 = vst [vmem:[#allocation7 + $0xf0] sm:$0xff] %v4336_v57 }
 0x766   :  { %v4337_v4 = vpop.f32.mrf.mxu3 }
 0x767   :  { %v4338_v20 = vadd.f32 %v4337_v4, %v4249_v28 }
 0x769   :  { %4371 = vst [vmem:[#allocation7 + $0xf8] sm:$0xff] %v4338_v20 }
 0x76a   :  { %4375 = vsyncadd [#allocation4], 4064  ;;  %s4378_s10 = sshll.u32 %s7679_s7, 4  ;;  %s5245_s11 = smov [#allocation7]   ;;  %s4379_s10 = int_to_ptr.hbm [resolvable:$true] %s4378_s10 }
 0x76b   :  { %s4376_s12 = sshll.u32 %s5245_s11, 4  ;;  %s5246_s1 = smov 32   ;;  %s4377_s12 = int_to_ptr.vmem [resolvable:$true] %s4376_s12 }
 0x76c   :  { %s5247_s3 = smov 2  }
 0x76d   :  { %4384 = dma.vmem_to_hbm [thread:$0]  %s4377_s12, 32, %s4379_s10, [#allocation4], %s5246_s1, %s5246_s1, %s5247_s3  }
 0x76e   :  { %5239 = dma.done.wait [#allocation4], 4096  }
 0x76f   :  { %5240 = vsyncadd [#allocation4], 4294963200 }
 0x770   :  { %4389 = vsyncpa [#allocation3], 1 }
 0x771   :  { %4390 = vsyncpa [#allocation6], 1 }
 0x772   :  { %4391 = vsyncpa [#allocation4], 1 }

</bundles_post_ra>
